<compile_context>
chip_gen: v7x
topology: tpu7x:2x2x1
jax: 0.10.0
libtpu: 0.0.40
codegen_flags: <defaults>
</compile_context>

<pallas_src>
import functools

import numpy as np
import jax
import jax.numpy as jnp
from jax.experimental import pallas as pl
from jax.experimental.pallas import tpu as pltpu


# ----------------------------------------------------------------------------
# Kernel 1: row-tiled fused q/k/v projection
#   x (tm, Din) f32, w (Din, 3D) bf16, b (1, 3D) f32
#   -> q (tm, D) bf16, k (tm, D) bf16, v (tm, D) f32
# ----------------------------------------------------------------------------

def _qkv_linear_kernel(x_ref, w_ref, b_ref, q_ref, k_ref, v_ref):
    D = q_ref.shape[-1]
    x = x_ref[...].astype(jnp.bfloat16)
    y = jnp.dot(x, w_ref[...], preferred_element_type=jnp.float32) + b_ref[...]
    # NOTE: when M is not a multiple of tm, Pallas-padded rows compute garbage
    # that is masked out on store.  Do not change these stores to accumulate.
    q_ref[...] = y[:, :D].astype(jnp.bfloat16)
    k_ref[...] = y[:, D:2 * D].astype(jnp.bfloat16)
    v_ref[...] = y[:, 2 * D:]


def _row_tile(n_rows, max_tile=512):
    """Row-tile size: multiple of 8, capped at 512 (review item 9, HBM-bound
    roofline), and >= 2 tiles when possible so both TensorCores get work."""
    if n_rows <= 16:
        return n_rows
    half = -(-n_rows // 2)
    t = min(max_tile, ((half + 7) // 8) * 8)
    return min(t, n_rows)


def pallas_fused_linear(x, w_bf16, b):
    """x: (M, Din) f32, w: (Din, 3D) bf16, b: (3D,) f32
    -> (q, k, v): (M, D) bf16, (M, D) bf16, (M, D) f32."""
    M, Din = x.shape
    Dout3 = w_bf16.shape[1]
    D = Dout3 // 3
    tm = _row_tile(M)
    return pl.pallas_call(
        _qkv_linear_kernel,
        out_shape=(jax.ShapeDtypeStruct((M, D), jnp.bfloat16),
                   jax.ShapeDtypeStruct((M, D), jnp.bfloat16),
                   jax.ShapeDtypeStruct((M, D), jnp.float32)),
        grid=(pl.cdiv(M, tm),),
        in_specs=[pl.BlockSpec((tm, Din), lambda i: (i, 0)),
                  pl.BlockSpec((Din, Dout3), lambda i: (0, 0)),  # VMEM-resident
                  pl.BlockSpec((1, Dout3), lambda i: (0, 0))],
        out_specs=(pl.BlockSpec((tm, D), lambda i: (i, 0)),
                   pl.BlockSpec((tm, D), lambda i: (i, 0)),
                   pl.BlockSpec((tm, D), lambda i: (i, 0))),
        compiler_params=pltpu.CompilerParams(dimension_semantics=("parallel",)),
    )(x, w_bf16, b.reshape(1, Dout3))


# ----------------------------------------------------------------------------
# Kernel 2: ProbSparse sparsity measure (per batch, lane-dense blocks)
# ----------------------------------------------------------------------------

def _measure_kernel(q_ref, k_ref, cnt_ref, m_ref, *, num_heads, inv_keys):
    L, D = q_ref.shape[1], q_ref.shape[2]
    dh = D // num_heads

    q = q_ref[0]                      # (L, D) bf16
    k = k_ref[0]                      # (L, D) bf16
    cnt = cnt_ref[...]                # (L, L) bf16 sample counts (exact ints)
    sampled = cnt > 0                 # (L, L) bool

    # sum_j q . k[idx[l, j]]  (duplicates counted) for ALL heads at once:
    #   = sum_d q[l, d] * (cnt @ k)[l, d], reduced per head column block.
    ck = jnp.dot(cnt, k, preferred_element_type=jnp.float32)       # (L, D) MXU
    qck = q.astype(jnp.float32) * ck                               # (L, D)

    m_cols = []
    for h in range(num_heads):        # static head loop, static column slices
        sl = slice(h * dh, (h + 1) * dh)
        s = jax.lax.dot_general(q[:, sl], k[:, sl], (((1,), (1,)), ((), ())),
                                preferred_element_type=jnp.float32)  # (L, L)
        smax = jnp.max(jnp.where(sampled, s, -jnp.inf),
                       axis=-1, keepdims=True)                       # (L, 1)
        ssum = jnp.sum(qck[:, sl], axis=-1, keepdims=True)           # (L, 1)
        # reference: m = max_j(q.k_sample) - sum_j(q.k_sample) / num_keys
        m_cols.append(smax - ssum * inv_keys)
    m_ref[0] = jnp.concatenate(m_cols, axis=-1)                      # (L, H)


def pallas_prob_measure(q, k, cnt, num_heads):
    """q, k: (B, L, D) bf16; cnt: (L, L) bf16 -> measure (B, L, H) f32."""
    B, L, D = q.shape
    H = num_heads
    kernel = functools.partial(_measure_kernel, num_heads=H,
                               inv_keys=1.0 / float(L))
    return pl.pallas_call(
        kernel,
        out_shape=jax.ShapeDtypeStruct((B, L, H), jnp.float32),
        grid=(B,),
        in_specs=[pl.BlockSpec((1, L, D), lambda b: (b, 0, 0)),
                  pl.BlockSpec((1, L, D), lambda b: (b, 0, 0)),
                  pl.BlockSpec((L, L), lambda b: (0, 0))],           # resident
        out_specs=pl.BlockSpec((1, L, H), lambda b: (b, 0, 0)),
        compiler_params=pltpu.CompilerParams(dimension_semantics=("parallel",)),
    )(q, k, cnt)


# ----------------------------------------------------------------------------
# Kernel 3: sparse attention + scatter-to-mean(V) + fused output projection
# ----------------------------------------------------------------------------

def _sparse_attn_kernel(mt_ref, q_ref, k_ref, v_ref, wo_ref, bo_ref, o_ref,
                        *, num_heads, scale):
    L, D = q_ref.shape[1], q_ref.shape[2]
    dh = D // num_heads
    NQP = mt_ref.shape[-1]            # padded top-k count (pad index == L)

    mt = mt_ref[0]                    # (H, NQP) int32
    q = q_ref[0]                      # (L, D) bf16
    k = k_ref[0]                      # (L, D) bf16
    v = v_ref[0]                      # (L, D) f32
    v_bf = v.astype(jnp.bfloat16)

    # mean(V) baseline: ONE sublane reduction on the full lane-dense slab.
    v_mean = jnp.mean(v, axis=0, keepdims=True)                    # (1, D) f32

    row_iota = jax.lax.broadcasted_iota(jnp.int32, (L, NQP), 0)

    head_outs = []
    for h in range(num_heads):        # static head loop, static column slices
        sl = slice(h * dh, (h + 1) * dh)

        # one-hot (L, NQP): column i is hot at row m_top[h, i]; pad columns
        # (index L) never match and stay all-zero.  bf16 0/1 is exact.
        oh = (row_iota == mt[h:h + 1, :]).astype(jnp.bfloat16)

        # gather the top-k queries via a bf16 one-hot matmul (lossless)
        q_sel = jax.lax.dot_general(oh, q[:, sl], (((0,), (0,)), ((), ())),
                                    preferred_element_type=jnp.float32)
        q_sel = (q_sel * scale).astype(jnp.bfloat16)               # (NQP, dh)

        # scores against all keys, softmax over keys
        s = jax.lax.dot_general(q_sel, k[:, sl], (((1,), (1,)), ((), ())),
                                preferred_element_type=jnp.float32)  # (NQP, L)
        p = jnp.exp(s - jnp.max(s, axis=-1, keepdims=True))
        p = p * pl.reciprocal(jnp.sum(p, axis=-1, keepdims=True), approx=True)

        o_sel = jnp.dot(p.astype(jnp.bfloat16), v_bf[:, sl],
                        preferred_element_type=jnp.float32)        # (NQP, dh)

        # scatter attended rows back (bf16 one-hot matmul); non-selected rows
        # get the per-head slice of the mean(V) baseline.
        scat = jnp.dot(oh, o_sel.astype(jnp.bfloat16),
                       preferred_element_type=jnp.float32)         # (L, dh)
        selected = jnp.sum(oh, axis=-1, keepdims=True) > 0.0       # (L, 1)
        head_outs.append(jnp.where(selected, scat, v_mean[:, sl]))

    # (L, D) slab: concatenating heads along the feature axis realizes the
    # mix=False (H, L, dh) -> (L, H*dh) transpose implicitly.
    slab = jnp.concatenate(head_outs, axis=-1).astype(jnp.bfloat16)

    # ONE fused output projection with full-D contraction depth (MXU-friendly),
    # lane-dense (L, D) store.
    out = jnp.dot(slab, wo_ref[...], preferred_element_type=jnp.float32)
    o_ref[0] = out + bo_ref[...]


def pallas_sparse_attention(q, k, v, m_top, wo_bf16, bo, num_heads, scale):
    """q/k: (B,L,D) bf16; v: (B,L,D) f32; m_top: (B,H,NQP) i32 -> (B,L,D) f32."""
    B, L, D = q.shape
    H, NQP = m_top.shape[1], m_top.shape[2]
    kernel = functools.partial(_sparse_attn_kernel, num_heads=num_heads,
                               scale=scale)
    return pl.pallas_call(
        kernel,
        out_shape=jax.ShapeDtypeStruct((B, L, D), jnp.float32),
        grid=(B,),
        in_specs=[pl.BlockSpec((1, H, NQP), lambda b: (b, 0, 0)),
                  pl.BlockSpec((1, L, D), lambda b: (b, 0, 0)),
                  pl.BlockSpec((1, L, D), lambda b: (b, 0, 0)),
                  pl.BlockSpec((1, L, D), lambda b: (b, 0, 0)),
                  pl.BlockSpec((D, D), lambda b: (0, 0)),      # resident
                  pl.BlockSpec((1, D), lambda b: (0, 0))],
        out_specs=pl.BlockSpec((1, L, D), lambda b: (b, 0, 0)),
        compiler_params=pltpu.CompilerParams(dimension_semantics=("parallel",)),
    )(m_top, q, k, v, wo_bf16, bo.reshape(1, D))


# ----------------------------------------------------------------------------
# Forward pass (ProbSparseSelfAttention.forward with q = k = v = x)
# ----------------------------------------------------------------------------

@functools.partial(jax.jit, static_argnames=("num_heads", "contraction_factor"))
def prob_sparse_self_attention(x, params, sample_key, num_heads=8,
                               contraction_factor=5):
    B, L, D = x.shape
    dh = D // num_heads

    # fused q/k/v projection; outputs stay in lane-dense (B, L, D) layout
    # (no head transpose anywhere), q/k in bf16, v in f32.
    q2, k2, v2 = pallas_fused_linear(x.reshape(B * L, D),
                                     params["wqkv"], params["bqkv"])
    q2 = q2.reshape(B, L, D)
    k2 = k2.reshape(B, L, D)
    v2 = v2.reshape(B, L, D)

    # number of sampled queries / keys (Informer rule)
    n_q = min(int(np.ceil(np.log(L)) * contraction_factor), L)
    n_k = min(int(np.ceil(np.log(L)) * contraction_factor), L)

    # random key sampling (torch.randint analogue; shared across batch & head),
    # encoded as a per-query sample-count matrix so the sampled scoring runs as
    # dense MXU work inside the measure kernel (no 5-D gathered intermediate).
    idx = jax.random.randint(sample_key, (L, n_k), 0, L)
    cnt = jnp.zeros((L, L), jnp.float32).at[jnp.arange(L)[:, None], idx].add(1.0)
    cnt = cnt.astype(jnp.bfloat16)     # small integer counts: exact in bf16

    measure = pallas_prob_measure(q2, k2, cnt, num_heads)       # (B, L, H)
    # tiny (B*L*H elements) axis swap so top_k reduces over L; negligible.
    m_top = jax.lax.top_k(jnp.swapaxes(measure, 1, 2), n_q)[1]  # (B, H, n_q)

    # pad selected-query count to a sublane multiple; pad index L never matches
    nqp = ((n_q + 7) // 8) * 8
    m_top = jnp.pad(m_top, ((0, 0), (0, 0), (0, nqp - n_q)),
                    constant_values=L).astype(jnp.int32)

    scale = 1.0 / float(np.sqrt(dh))
    return pallas_sparse_attention(q2, k2, v2, m_top, params["wo"],
                                   params["bo"], num_heads, scale)  # (B, L, D)


# ----------------------------------------------------------------------------
# Deterministic parameter init (shapes follow the PyTorch module __init__)
# ----------------------------------------------------------------------------

def init_params(key, D):
    ks = jax.random.split(key, 8)

    def lin(k, fan_in, shape):
        bound = 1.0 / np.sqrt(fan_in)
        return jax.random.uniform(k, shape, jnp.float32, -bound, bound)

    wq = lin(ks[0], D, (D, D)); bq = lin(ks[1], D, (D,))
    wk = lin(ks[2], D, (D, D)); bk = lin(ks[3], D, (D,))
    wv = lin(ks[4], D, (D, D)); bv = lin(ks[5], D, (D,))
    wo = lin(ks[6], D, (D, D)); bo = lin(ks[7], D, (D,))
    return {
        # fused qkv weight, pre-cast to bf16 (MXU-native, halves weight DMA)
        "wqkv": jnp.concatenate([wq, wk, wv], axis=1).astype(jnp.bfloat16),
        "bqkv": jnp.concatenate([bq, bk, bv], axis=0),
        "wo": wo.astype(jnp.bfloat16),
        "bo": bo,
    }


# ----------------------------------------------------------------------------

if __name__ == "__main__":
    key = jax.random.PRNGKey(0)
    k_param, k_x, k_samp = jax.random.split(key, 3)

    B, L, D, H = 2, 32, 64, 8          # num_in_feats = num_out_feats = 64
    params = init_params(k_param, D)
    x = jax.random.normal(k_x, (B, L, D), jnp.float32)

    out = prob_sparse_self_attention(x, params, k_samp, num_heads=H,
                                     contraction_factor=5)
    out = jax.block_until_ready(out)

    assert out.shape == (B, L, D)
    assert bool(jnp.isfinite(out).all())
    print("KERNEL_OK")
</pallas_src>

<mosaic_0001>
module attributes {stable_mosaic.version = 11 : i64} {
  func.func private @main(%arg0: i32) attributes {dimension_semantics = [#tpu.dimension_semantics<core_parallel>], iteration_bounds = array<i64: 2>, tpu.core_type = #tpu.core_type<sc_scalar_subcore>, window_params = []} {
    return
  }
}

module attributes {stable_mosaic.version = 11 : i64} {
  func.func private @main(%arg0: i32) attributes {dimension_semantics = [#tpu.dimension_semantics<core_parallel>], iteration_bounds = array<i64: 2>, tpu.core_type = #tpu.core_type<sc_scalar_subcore>, window_params = []} {
    return
  }
}

module attributes {stable_mosaic.version = 11 : i64} {
  func.func @_qkv_linear_kernel(%arg0: i32, %arg1: memref<32x64xf32, #tpu.memory_space<vmem>>, %arg2: memref<64x192xbf16, #tpu.memory_space<vmem>>, %arg3: memref<1x192xf32, #tpu.memory_space<vmem>>, %arg4: memref<32x64xbf16, #tpu.memory_space<vmem>>, %arg5: memref<32x64xbf16, #tpu.memory_space<vmem>>, %arg6: memref<32x64xf32, #tpu.memory_space<vmem>>) attributes {dimension_semantics = [#tpu.dimension_semantics<parallel>], iteration_bounds = array<i64: 2>, scalar_prefetch = 0 : i64, scratch_operands = 0 : i64, tpu.core_type = #tpu.core_type<tc>, window_params = [{transform_indices = @transform_0, window_bounds = array<i64: 32, 64>}, {pipeline_mode = #tpu.pipeline_mode<synchronous>, transform_indices = @transform_1, window_bounds = array<i64: 64, 192>}, {pipeline_mode = #tpu.pipeline_mode<synchronous>, transform_indices = @transform_2, window_bounds = array<i64: 1, 192>}, {transform_indices = @transform_3, window_bounds = array<i64: 32, 64>}, {transform_indices = @transform_4, window_bounds = array<i64: 32, 64>}, {transform_indices = @transform_5, window_bounds = array<i64: 32, 64>}]} {
    %c0 = arith.constant 0 : index
    %c0_0 = arith.constant 0 : index
    %0 = vector.load %arg1[%c0, %c0_0] : memref<32x64xf32, #tpu.memory_space<vmem>>, vector<32x64xf32>
    %1 = arith.truncf %0 : vector<32x64xf32> to vector<32x64xbf16>
    %c0_1 = arith.constant 0 : index
    %c0_2 = arith.constant 0 : index
    %2 = vector.load %arg2[%c0_1, %c0_2] : memref<64x192xbf16, #tpu.memory_space<vmem>>, vector<64x192xbf16>
    %cst = arith.constant dense<0.000000e+00> : vector<32x192xf32>
    %3 = tpu.matmul %1, %2, %cst {dimension_numbers = #tpu.dot_dimension_numbers<[1], [0], [0], [1], [0, 0, 1, 1], [], []>} : vector<32x64xbf16>, vector<64x192xbf16>, vector<32x192xf32> -> vector<32x192xf32>
    %c0_3 = arith.constant 0 : index
    %c0_4 = arith.constant 0 : index
    %4 = vector.load %arg3[%c0_3, %c0_4] : memref<1x192xf32, #tpu.memory_space<vmem>>, vector<1x192xf32>
    %5 = vector.broadcast %4 : vector<1x192xf32> to vector<32x192xf32>
    %6 = arith.addf %3, %5 : vector<32x192xf32>
    %7 = vector.extract_strided_slice %6 {offsets = [0, 0], sizes = [32, 64], strides = [1, 1]} : vector<32x192xf32> to vector<32x64xf32>
    %8 = arith.truncf %7 : vector<32x64xf32> to vector<32x64xbf16>
    %c0_5 = arith.constant 0 : index
    %c0_6 = arith.constant 0 : index
    %9 = vector.load %arg4[%c0_5, %c0_6] : memref<32x64xbf16, #tpu.memory_space<vmem>>, vector<32x64xbf16>
    tpu.vector_store %arg4[%c0_5, %c0_6], %8 {strides = array<i32>} : memref<32x64xbf16, #tpu.memory_space<vmem>>, vector<32x64xbf16>,
    %10 = vector.extract_strided_slice %6 {offsets = [0, 64], sizes = [32, 64], strides = [1, 1]} : vector<32x192xf32> to vector<32x64xf32>
    %11 = arith.truncf %10 : vector<32x64xf32> to vector<32x64xbf16>
    %c0_7 = arith.constant 0 : index
    %c0_8 = arith.constant 0 : index
    %12 = vector.load %arg5[%c0_7, %c0_8] : memref<32x64xbf16, #tpu.memory_space<vmem>>, vector<32x64xbf16>
    tpu.vector_store %arg5[%c0_7, %c0_8], %11 {strides = array<i32>} : memref<32x64xbf16, #tpu.memory_space<vmem>>, vector<32x64xbf16>,
    %13 = vector.extract_strided_slice %6 {offsets = [0, 128], sizes = [32, 64], strides = [1, 1]} : vector<32x192xf32> to vector<32x64xf32>
    %c0_9 = arith.constant 0 : index
    %c0_10 = arith.constant 0 : index
    %14 = vector.load %arg6[%c0_9, %c0_10] : memref<32x64xf32, #tpu.memory_space<vmem>>, vector<32x64xf32>
    tpu.vector_store %arg6[%c0_9, %c0_10], %13 {strides = array<i32>} : memref<32x64xf32, #tpu.memory_space<vmem>>, vector<32x64xf32>,
    return
  }
  func.func @transform_0(%arg0: i32) -> (i32, i32) {
    %c0_i32 = arith.constant 0 : i32
    %c0_i32_0 = arith.constant 0 : i32
    return %arg0, %c0_i32 : i32, i32
  }
  func.func @transform_1(%arg0: i32) -> (i32, i32) {
    %c0_i32 = arith.constant 0 : i32
    %c0_i32_0 = arith.constant 0 : i32
    %c0_i32_1 = arith.constant 0 : i32
    return %c0_i32, %c0_i32_0 : i32, i32
  }
  func.func @transform_2(%arg0: i32) -> (i32, i32) {
    %c0_i32 = arith.constant 0 : i32
    %c0_i32_0 = arith.constant 0 : i32
    %c0_i32_1 = arith.constant 0 : i32
    return %c0_i32, %c0_i32_0 : i32, i32
  }
  func.func @transform_3(%arg0: i32) -> (i32, i32) {
    %c0_i32 = arith.constant 0 : i32
    %c0_i32_0 = arith.constant 0 : i32
    return %arg0, %c0_i32 : i32, i32
  }
  func.func @transform_4(%arg0: i32) -> (i32, i32) {
    %c0_i32 = arith.constant 0 : i32
    %c0_i32_0 = arith.constant 0 : i32
    return %arg0, %c0_i32 : i32, i32
  }
  func.func @transform_5(%arg0: i32) -> (i32, i32) {
    %c0_i32 = arith.constant 0 : i32
    %c0_i32_0 = arith.constant 0 : i32
    return %arg0, %c0_i32 : i32, i32
  }
}

module attributes {stable_mosaic.version = 11 : i64} {
  func.func @_measure_kernel(%arg0: i32, %arg1: memref<1x32x64xbf16, #tpu.memory_space<vmem>>, %arg2: memref<1x32x64xbf16, #tpu.memory_space<vmem>>, %arg3: memref<32x32xbf16, #tpu.memory_space<vmem>>, %arg4: memref<1x32x8xf32, #tpu.memory_space<vmem>>) attributes {dimension_semantics = [#tpu.dimension_semantics<parallel>], iteration_bounds = array<i64: 2>, scalar_prefetch = 0 : i64, scratch_operands = 0 : i64, tpu.core_type = #tpu.core_type<tc>, window_params = [{transform_indices = @transform_0, window_bounds = array<i64: 1, 32, 64>}, {transform_indices = @transform_1, window_bounds = array<i64: 1, 32, 64>}, {pipeline_mode = #tpu.pipeline_mode<synchronous>, transform_indices = @transform_2, window_bounds = array<i64: 32, 32>}, {transform_indices = @transform_3, window_bounds = array<i64: 1, 32, 8>}]} {
    %c0 = arith.constant 0 : index
    %c0_0 = arith.constant 0 : index
    %c0_1 = arith.constant 0 : index
    %0 = vector.load %arg1[%c0, %c0_0, %c0_1] : memref<1x32x64xbf16, #tpu.memory_space<vmem>>, vector<1x32x64xbf16>
    %1 = vector.shape_cast %0 : vector<1x32x64xbf16> to vector<32x64xbf16>
    %c0_2 = arith.constant 0 : index
    %c0_3 = arith.constant 0 : index
    %c0_4 = arith.constant 0 : index
    %2 = vector.load %arg2[%c0_2, %c0_3, %c0_4] : memref<1x32x64xbf16, #tpu.memory_space<vmem>>, vector<1x32x64xbf16>
    %3 = vector.shape_cast %2 : vector<1x32x64xbf16> to vector<32x64xbf16>
    %c0_5 = arith.constant 0 : index
    %c0_6 = arith.constant 0 : index
    %4 = vector.load %arg3[%c0_5, %c0_6] : memref<32x32xbf16, #tpu.memory_space<vmem>>, vector<32x32xbf16>
    %cst = arith.constant 0.000000e+00 : bf16
    %5 = vector.broadcast %cst : bf16 to vector<32x32xbf16>
    %6 = arith.cmpf ogt, %4, %5 : vector<32x32xbf16>
    %cst_7 = arith.constant dense<0.000000e+00> : vector<32x64xf32>
    %7 = tpu.matmul %4, %3, %cst_7 {dimension_numbers = #tpu.dot_dimension_numbers<[1], [0], [0], [1], [0, 0, 1, 1], [], []>} : vector<32x32xbf16>, vector<32x64xbf16>, vector<32x64xf32> -> vector<32x64xf32>
    %8 = arith.extf %1 : vector<32x64xbf16> to vector<32x64xf32>
    %9 = arith.mulf %8, %7 : vector<32x64xf32>
    %10 = vector.extract_strided_slice %1 {offsets = [0, 0], sizes = [32, 8], strides = [1, 1]} : vector<32x64xbf16> to vector<32x8xbf16>
    %11 = vector.extract_strided_slice %3 {offsets = [0, 0], sizes = [32, 8], strides = [1, 1]} : vector<32x64xbf16> to vector<32x8xbf16>
    %cst_8 = arith.constant dense<0.000000e+00> : vector<32x32xf32>
    %12 = tpu.matmul %10, %11, %cst_8 {dimension_numbers = #tpu.dot_dimension_numbers<[1], [1], [0], [0], [0, 0, 1, 0], [], []>} : vector<32x8xbf16>, vector<32x8xbf16>, vector<32x32xf32> -> vector<32x32xf32>
    %cst_9 = arith.constant 0xFF800000 : f32
    %13 = vector.broadcast %cst_9 : f32 to vector<32x32xf32>
    %14 = arith.select %6, %12, %13 : vector<32x32xi1>, vector<32x32xf32>
    %cst_10 = arith.constant dense<0xFF800000> : vector<32xf32>
    %15 = vector.multi_reduction <maximumf>, %14, %cst_10 [1] : vector<32x32xf32> to vector<32xf32>
    %16 = vector.shape_cast %15 : vector<32xf32> to vector<32x1xf32>
    %17 = vector.extract_strided_slice %9 {offsets = [0, 0], sizes = [32, 8], strides = [1, 1]} : vector<32x64xf32> to vector<32x8xf32>
    %cst_11 = arith.constant dense<0.000000e+00> : vector<32xf32>
    %18 = vector.multi_reduction <add>, %17, %cst_11 [1] : vector<32x8xf32> to vector<32xf32>
    %19 = vector.shape_cast %18 : vector<32xf32> to vector<32x1xf32>
    %cst_12 = arith.constant 3.125000e-02 : f32
    %20 = vector.broadcast %cst_12 : f32 to vector<32x1xf32>
    %21 = arith.mulf %19, %20 : vector<32x1xf32>
    %22 = arith.subf %16, %21 : vector<32x1xf32>
    %23 = vector.extract_strided_slice %1 {offsets = [0, 8], sizes = [32, 8], strides = [1, 1]} : vector<32x64xbf16> to vector<32x8xbf16>
    %24 = vector.extract_strided_slice %3 {offsets = [0, 8], sizes = [32, 8], strides = [1, 1]} : vector<32x64xbf16> to vector<32x8xbf16>
    %cst_13 = arith.constant dense<0.000000e+00> : vector<32x32xf32>
    %25 = tpu.matmul %23, %24, %cst_13 {dimension_numbers = #tpu.dot_dimension_numbers<[1], [1], [0], [0], [0, 0, 1, 0], [], []>} : vector<32x8xbf16>, vector<32x8xbf16>, vector<32x32xf32> -> vector<32x32xf32>
    %cst_14 = arith.constant 0xFF800000 : f32
    %26 = vector.broadcast %cst_14 : f32 to vector<32x32xf32>
    %27 = arith.select %6, %25, %26 : vector<32x32xi1>, vector<32x32xf32>
    %cst_15 = arith.constant dense<0xFF800000> : vector<32xf32>
    %28 = vector.multi_reduction <maximumf>, %27, %cst_15 [1] : vector<32x32xf32> to vector<32xf32>
    %29 = vector.shape_cast %28 : vector<32xf32> to vector<32x1xf32>
    %30 = vector.extract_strided_slice %9 {offsets = [0, 8], sizes = [32, 8], strides = [1, 1]} : vector<32x64xf32> to vector<32x8xf32>
    %cst_16 = arith.constant dense<0.000000e+00> : vector<32xf32>
    %31 = vector.multi_reduction <add>, %30, %cst_16 [1] : vector<32x8xf32> to vector<32xf32>
    %32 = vector.shape_cast %31 : vector<32xf32> to vector<32x1xf32>
    %cst_17 = arith.constant 3.125000e-02 : f32
    %33 = vector.broadcast %cst_17 : f32 to vector<32x1xf32>
    %34 = arith.mulf %32, %33 : vector<32x1xf32>
    %35 = arith.subf %29, %34 : vector<32x1xf32>
    %36 = vector.extract_strided_slice %1 {offsets = [0, 16], sizes = [32, 8], strides = [1, 1]} : vector<32x64xbf16> to vector<32x8xbf16>
    %37 = vector.extract_strided_slice %3 {offsets = [0, 16], sizes = [32, 8], strides = [1, 1]} : vector<32x64xbf16> to vector<32x8xbf16>
    %cst_18 = arith.constant dense<0.000000e+00> : vector<32x32xf32>
    %38 = tpu.matmul %36, %37, %cst_18 {dimension_numbers = #tpu.dot_dimension_numbers<[1], [1], [0], [0], [0, 0, 1, 0], [], []>} : vector<32x8xbf16>, vector<32x8xbf16>, vector<32x32xf32> -> vector<32x32xf32>
    %cst_19 = arith.constant 0xFF800000 : f32
    %39 = vector.broadcast %cst_19 : f32 to vector<32x32xf32>
    %40 = arith.select %6, %38, %39 : vector<32x32xi1>, vector<32x32xf32>
    %cst_20 = arith.constant dense<0xFF800000> : vector<32xf32>
    %41 = vector.multi_reduction <maximumf>, %40, %cst_20 [1] : vector<32x32xf32> to vector<32xf32>
    %42 = vector.shape_cast %41 : vector<32xf32> to vector<32x1xf32>
    %43 = vector.extract_strided_slice %9 {offsets = [0, 16], sizes = [32, 8], strides = [1, 1]} : vector<32x64xf32> to vector<32x8xf32>
    %cst_21 = arith.constant dense<0.000000e+00> : vector<32xf32>
    %44 = vector.multi_reduction <add>, %43, %cst_21 [1] : vector<32x8xf32> to vector<32xf32>
    %45 = vector.shape_cast %44 : vector<32xf32> to vector<32x1xf32>
    %cst_22 = arith.constant 3.125000e-02 : f32
    %46 = vector.broadcast %cst_22 : f32 to vector<32x1xf32>
    %47 = arith.mulf %45, %46 : vector<32x1xf32>
    %48 = arith.subf %42, %47 : vector<32x1xf32>
    %49 = vector.extract_strided_slice %1 {offsets = [0, 24], sizes = [32, 8], strides = [1, 1]} : vector<32x64xbf16> to vector<32x8xbf16>
    %50 = vector.extract_strided_slice %3 {offsets = [0, 24], sizes = [32, 8], strides = [1, 1]} : vector<32x64xbf16> to vector<32x8xbf16>
    %cst_23 = arith.constant dense<0.000000e+00> : vector<32x32xf32>
    %51 = tpu.matmul %49, %50, %cst_23 {dimension_numbers = #tpu.dot_dimension_numbers<[1], [1], [0], [0], [0, 0, 1, 0], [], []>} : vector<32x8xbf16>, vector<32x8xbf16>, vector<32x32xf32> -> vector<32x32xf32>
    %cst_24 = arith.constant 0xFF800000 : f32
    %52 = vector.broadcast %cst_24 : f32 to vector<32x32xf32>
    %53 = arith.select %6, %51, %52 : vector<32x32xi1>, vector<32x32xf32>
    %cst_25 = arith.constant dense<0xFF800000> : vector<32xf32>
    %54 = vector.multi_reduction <maximumf>, %53, %cst_25 [1] : vector<32x32xf32> to vector<32xf32>
    %55 = vector.shape_cast %54 : vector<32xf32> to vector<32x1xf32>
    %56 = vector.extract_strided_slice %9 {offsets = [0, 24], sizes = [32, 8], strides = [1, 1]} : vector<32x64xf32> to vector<32x8xf32>
    %cst_26 = arith.constant dense<0.000000e+00> : vector<32xf32>
    %57 = vector.multi_reduction <add>, %56, %cst_26 [1] : vector<32x8xf32> to vector<32xf32>
    %58 = vector.shape_cast %57 : vector<32xf32> to vector<32x1xf32>
    %cst_27 = arith.constant 3.125000e-02 : f32
    %59 = vector.broadcast %cst_27 : f32 to vector<32x1xf32>
    %60 = arith.mulf %58, %59 : vector<32x1xf32>
    %61 = arith.subf %55, %60 : vector<32x1xf32>
    %62 = vector.extract_strided_slice %1 {offsets = [0, 32], sizes = [32, 8], strides = [1, 1]} : vector<32x64xbf16> to vector<32x8xbf16>
    %63 = vector.extract_strided_slice %3 {offsets = [0, 32], sizes = [32, 8], strides = [1, 1]} : vector<32x64xbf16> to vector<32x8xbf16>
    %cst_28 = arith.constant dense<0.000000e+00> : vector<32x32xf32>
    %64 = tpu.matmul %62, %63, %cst_28 {dimension_numbers = #tpu.dot_dimension_numbers<[1], [1], [0], [0], [0, 0, 1, 0], [], []>} : vector<32x8xbf16>, vector<32x8xbf16>, vector<32x32xf32> -> vector<32x32xf32>
    %cst_29 = arith.constant 0xFF800000 : f32
    %65 = vector.broadcast %cst_29 : f32 to vector<32x32xf32>
    %66 = arith.select %6, %64, %65 : vector<32x32xi1>, vector<32x32xf32>
    %cst_30 = arith.constant dense<0xFF800000> : vector<32xf32>
    %67 = vector.multi_reduction <maximumf>, %66, %cst_30 [1] : vector<32x32xf32> to vector<32xf32>
    %68 = vector.shape_cast %67 : vector<32xf32> to vector<32x1xf32>
    %69 = vector.extract_strided_slice %9 {offsets = [0, 32], sizes = [32, 8], strides = [1, 1]} : vector<32x64xf32> to vector<32x8xf32>
    %cst_31 = arith.constant dense<0.000000e+00> : vector<32xf32>
    %70 = vector.multi_reduction <add>, %69, %cst_31 [1] : vector<32x8xf32> to vector<32xf32>
    %71 = vector.shape_cast %70 : vector<32xf32> to vector<32x1xf32>
    %cst_32 = arith.constant 3.125000e-02 : f32
    %72 = vector.broadcast %cst_32 : f32 to vector<32x1xf32>
    %73 = arith.mulf %71, %72 : vector<32x1xf32>
    %74 = arith.subf %68, %73 : vector<32x1xf32>
    %75 = vector.extract_strided_slice %1 {offsets = [0, 40], sizes = [32, 8], strides = [1, 1]} : vector<32x64xbf16> to vector<32x8xbf16>
    %76 = vector.extract_strided_slice %3 {offsets = [0, 40], sizes = [32, 8], strides = [1, 1]} : vector<32x64xbf16> to vector<32x8xbf16>
    %cst_33 = arith.constant dense<0.000000e+00> : vector<32x32xf32>
    %77 = tpu.matmul %75, %76, %cst_33 {dimension_numbers = #tpu.dot_dimension_numbers<[1], [1], [0], [0], [0, 0, 1, 0], [], []>} : vector<32x8xbf16>, vector<32x8xbf16>, vector<32x32xf32> -> vector<32x32xf32>
    %cst_34 = arith.constant 0xFF800000 : f32
    %78 = vector.broadcast %cst_34 : f32 to vector<32x32xf32>
    %79 = arith.select %6, %77, %78 : vector<32x32xi1>, vector<32x32xf32>
    %cst_35 = arith.constant dense<0xFF800000> : vector<32xf32>
    %80 = vector.multi_reduction <maximumf>, %79, %cst_35 [1] : vector<32x32xf32> to vector<32xf32>
    %81 = vector.shape_cast %80 : vector<32xf32> to vector<32x1xf32>
    %82 = vector.extract_strided_slice %9 {offsets = [0, 40], sizes = [32, 8], strides = [1, 1]} : vector<32x64xf32> to vector<32x8xf32>
    %cst_36 = arith.constant dense<0.000000e+00> : vector<32xf32>
    %83 = vector.multi_reduction <add>, %82, %cst_36 [1] : vector<32x8xf32> to vector<32xf32>
    %84 = vector.shape_cast %83 : vector<32xf32> to vector<32x1xf32>
    %cst_37 = arith.constant 3.125000e-02 : f32
    %85 = vector.broadcast %cst_37 : f32 to vector<32x1xf32>
    %86 = arith.mulf %84, %85 : vector<32x1xf32>
    %87 = arith.subf %81, %86 : vector<32x1xf32>
    %88 = vector.extract_strided_slice %1 {offsets = [0, 48], sizes = [32, 8], strides = [1, 1]} : vector<32x64xbf16> to vector<32x8xbf16>
    %89 = vector.extract_strided_slice %3 {offsets = [0, 48], sizes = [32, 8], strides = [1, 1]} : vector<32x64xbf16> to vector<32x8xbf16>
    %cst_38 = arith.constant dense<0.000000e+00> : vector<32x32xf32>
    %90 = tpu.matmul %88, %89, %cst_38 {dimension_numbers = #tpu.dot_dimension_numbers<[1], [1], [0], [0], [0, 0, 1, 0], [], []>} : vector<32x8xbf16>, vector<32x8xbf16>, vector<32x32xf32> -> vector<32x32xf32>
    %cst_39 = arith.constant 0xFF800000 : f32
    %91 = vector.broadcast %cst_39 : f32 to vector<32x32xf32>
    %92 = arith.select %6, %90, %91 : vector<32x32xi1>, vector<32x32xf32>
    %cst_40 = arith.constant dense<0xFF800000> : vector<32xf32>
    %93 = vector.multi_reduction <maximumf>, %92, %cst_40 [1] : vector<32x32xf32> to vector<32xf32>
    %94 = vector.shape_cast %93 : vector<32xf32> to vector<32x1xf32>
    %95 = vector.extract_strided_slice %9 {offsets = [0, 48], sizes = [32, 8], strides = [1, 1]} : vector<32x64xf32> to vector<32x8xf32>
    %cst_41 = arith.constant dense<0.000000e+00> : vector<32xf32>
    %96 = vector.multi_reduction <add>, %95, %cst_41 [1] : vector<32x8xf32> to vector<32xf32>
    %97 = vector.shape_cast %96 : vector<32xf32> to vector<32x1xf32>
    %cst_42 = arith.constant 3.125000e-02 : f32
    %98 = vector.broadcast %cst_42 : f32 to vector<32x1xf32>
    %99 = arith.mulf %97, %98 : vector<32x1xf32>
    %100 = arith.subf %94, %99 : vector<32x1xf32>
    %101 = vector.extract_strided_slice %1 {offsets = [0, 56], sizes = [32, 8], strides = [1, 1]} : vector<32x64xbf16> to vector<32x8xbf16>
    %102 = vector.extract_strided_slice %3 {offsets = [0, 56], sizes = [32, 8], strides = [1, 1]} : vector<32x64xbf16> to vector<32x8xbf16>
    %cst_43 = arith.constant dense<0.000000e+00> : vector<32x32xf32>
    %103 = tpu.matmul %101, %102, %cst_43 {dimension_numbers = #tpu.dot_dimension_numbers<[1], [1], [0], [0], [0, 0, 1, 0], [], []>} : vector<32x8xbf16>, vector<32x8xbf16>, vector<32x32xf32> -> vector<32x32xf32>
    %cst_44 = arith.constant 0xFF800000 : f32
    %104 = vector.broadcast %cst_44 : f32 to vector<32x32xf32>
    %105 = arith.select %6, %103, %104 : vector<32x32xi1>, vector<32x32xf32>
    %cst_45 = arith.constant dense<0xFF800000> : vector<32xf32>
    %106 = vector.multi_reduction <maximumf>, %105, %cst_45 [1] : vector<32x32xf32> to vector<32xf32>
    %107 = vector.shape_cast %106 : vector<32xf32> to vector<32x1xf32>
    %108 = vector.extract_strided_slice %9 {offsets = [0, 56], sizes = [32, 8], strides = [1, 1]} : vector<32x64xf32> to vector<32x8xf32>
    %cst_46 = arith.constant dense<0.000000e+00> : vector<32xf32>
    %109 = vector.multi_reduction <add>, %108, %cst_46 [1] : vector<32x8xf32> to vector<32xf32>
    %110 = vector.shape_cast %109 : vector<32xf32> to vector<32x1xf32>
    %cst_47 = arith.constant 3.125000e-02 : f32
    %111 = vector.broadcast %cst_47 : f32 to vector<32x1xf32>
    %112 = arith.mulf %110, %111 : vector<32x1xf32>
    %113 = arith.subf %107, %112 : vector<32x1xf32>
    %114 = tpu.concatenate %22, %35, %48, %61, %74, %87, %100, %113 in 1 : vector<32x1xf32>, vector<32x1xf32>, vector<32x1xf32>, vector<32x1xf32>, vector<32x1xf32>, vector<32x1xf32>, vector<32x1xf32>, vector<32x1xf32> -> vector<32x8xf32>
    %c0_48 = arith.constant 0 : index
    %c0_49 = arith.constant 0 : index
    %c0_50 = arith.constant 0 : index
    %115 = vector.load %arg4[%c0_48, %c0_49, %c0_50] : memref<1x32x8xf32, #tpu.memory_space<vmem>>, vector<1x32x8xf32>
    %116 = vector.shape_cast %115 : vector<1x32x8xf32> to vector<32x8xf32>
    %117 = vector.shape_cast %114 : vector<32x8xf32> to vector<1x32x8xf32>
    tpu.vector_store %arg4[%c0_48, %c0_49, %c0_50], %117 {strides = array<i32>} : memref<1x32x8xf32, #tpu.memory_space<vmem>>, vector<1x32x8xf32>,
    return
  }
  func.func @transform_0(%arg0: i32) -> (i32, i32, i32) {
    %c0_i32 = arith.constant 0 : i32
    %c0_i32_0 = arith.constant 0 : i32
    %c0_i32_1 = arith.constant 0 : i32
    return %arg0, %c0_i32, %c0_i32_0 : i32, i32, i32
  }
  func.func @transform_1(%arg0: i32) -> (i32, i32, i32) {
    %c0_i32 = arith.constant 0 : i32
    %c0_i32_0 = arith.constant 0 : i32
    %c0_i32_1 = arith.constant 0 : i32
    return %arg0, %c0_i32, %c0_i32_0 : i32, i32, i32
  }
  func.func @transform_2(%arg0: i32) -> (i32, i32) {
    %c0_i32 = arith.constant 0 : i32
    %c0_i32_0 = arith.constant 0 : i32
    %c0_i32_1 = arith.constant 0 : i32
    return %c0_i32, %c0_i32_0 : i32, i32
  }
  func.func @transform_3(%arg0: i32) -> (i32, i32, i32) {
    %c0_i32 = arith.constant 0 : i32
    %c0_i32_0 = arith.constant 0 : i32
    %c0_i32_1 = arith.constant 0 : i32
    return %arg0, %c0_i32, %c0_i32_0 : i32, i32, i32
  }
}

module attributes {stable_mosaic.version = 11 : i64} {
  func.func @_sparse_attn_kernel(%arg0: i32, %arg1: memref<1x8x24xi32, #tpu.memory_space<vmem>>, %arg2: memref<1x32x64xbf16, #tpu.memory_space<vmem>>, %arg3: memref<1x32x64xbf16, #tpu.memory_space<vmem>>, %arg4: memref<1x32x64xf32, #tpu.memory_space<vmem>>, %arg5: memref<64x64xbf16, #tpu.memory_space<vmem>>, %arg6: memref<1x64xf32, #tpu.memory_space<vmem>>, %arg7: memref<1x32x64xf32, #tpu.memory_space<vmem>>) attributes {dimension_semantics = [#tpu.dimension_semantics<parallel>], iteration_bounds = array<i64: 2>, scalar_prefetch = 0 : i64, scratch_operands = 0 : i64, tpu.core_type = #tpu.core_type<tc>, window_params = [{transform_indices = @transform_0, window_bounds = array<i64: 1, 8, 24>}, {transform_indices = @transform_1, window_bounds = array<i64: 1, 32, 64>}, {transform_indices = @transform_2, window_bounds = array<i64: 1, 32, 64>}, {transform_indices = @transform_3, window_bounds = array<i64: 1, 32, 64>}, {pipeline_mode = #tpu.pipeline_mode<synchronous>, transform_indices = @transform_4, window_bounds = array<i64: 64, 64>}, {pipeline_mode = #tpu.pipeline_mode<synchronous>, transform_indices = @transform_5, window_bounds = array<i64: 1, 64>}, {transform_indices = @transform_6, window_bounds = array<i64: 1, 32, 64>}]} {
    %c0 = arith.constant 0 : index
    %c0_0 = arith.constant 0 : index
    %c0_1 = arith.constant 0 : index
    %0 = vector.load %arg1[%c0, %c0_0, %c0_1] : memref<1x8x24xi32, #tpu.memory_space<vmem>>, vector<1x8x24xi32>
    %1 = vector.shape_cast %0 : vector<1x8x24xi32> to vector<8x24xi32>
    %c0_2 = arith.constant 0 : index
    %c0_3 = arith.constant 0 : index
    %c0_4 = arith.constant 0 : index
    %2 = vector.load %arg2[%c0_2, %c0_3, %c0_4] : memref<1x32x64xbf16, #tpu.memory_space<vmem>>, vector<1x32x64xbf16>
    %3 = vector.shape_cast %2 : vector<1x32x64xbf16> to vector<32x64xbf16>
    %c0_5 = arith.constant 0 : index
    %c0_6 = arith.constant 0 : index
    %c0_7 = arith.constant 0 : index
    %4 = vector.load %arg3[%c0_5, %c0_6, %c0_7] : memref<1x32x64xbf16, #tpu.memory_space<vmem>>, vector<1x32x64xbf16>
    %5 = vector.shape_cast %4 : vector<1x32x64xbf16> to vector<32x64xbf16>
    %c0_8 = arith.constant 0 : index
    %c0_9 = arith.constant 0 : index
    %c0_10 = arith.constant 0 : index
    %6 = vector.load %arg4[%c0_8, %c0_9, %c0_10] : memref<1x32x64xf32, #tpu.memory_space<vmem>>, vector<1x32x64xf32>
    %7 = vector.shape_cast %6 : vector<1x32x64xf32> to vector<32x64xf32>
    %8 = arith.truncf %7 : vector<32x64xf32> to vector<32x64xbf16>
    %cst = arith.constant dense<0.000000e+00> : vector<64xf32>
    %9 = vector.multi_reduction <add>, %7, %cst [0] : vector<32x64xf32> to vector<64xf32>
    %10 = vector.shape_cast %9 : vector<64xf32> to vector<1x64xf32>
    %cst_11 = arith.constant 3.200000e+01 : f32
    %11 = vector.broadcast %cst_11 : f32 to vector<1x64xf32>
    %12 = arith.divf %10, %11 : vector<1x64xf32>
    %13 = tpu.iota {dimensions = array<i32: 0>} : vector<32x24xi32>
    %14 = vector.extract_strided_slice %1 {offsets = [0, 0], sizes = [1, 24], strides = [1, 1]} : vector<8x24xi32> to vector<1x24xi32>
    %15 = vector.broadcast %14 : vector<1x24xi32> to vector<32x24xi32>
    %16 = arith.cmpi eq, %13, %15 : vector<32x24xi32>
    %17 = arith.extui %16 : vector<32x24xi1> to vector<32x24xi32>
    %18 = arith.sitofp %17 : vector<32x24xi32> to vector<32x24xf32>
    %19 = arith.truncf %18 : vector<32x24xf32> to vector<32x24xbf16>
    %20 = vector.extract_strided_slice %3 {offsets = [0, 0], sizes = [32, 8], strides = [1, 1]} : vector<32x64xbf16> to vector<32x8xbf16>
    %cst_12 = arith.constant dense<0.000000e+00> : vector<24x8xf32>
    %21 = tpu.matmul %19, %20, %cst_12 {dimension_numbers = #tpu.dot_dimension_numbers<[0], [0], [1], [1], [0, 1, 1, 1], [], []>} : vector<32x24xbf16>, vector<32x8xbf16>, vector<24x8xf32> -> vector<24x8xf32>
    %cst_13 = arith.constant 0.353553385 : f32
    %22 = vector.broadcast %cst_13 : f32 to vector<24x8xf32>
    %23 = arith.mulf %21, %22 : vector<24x8xf32>
    %24 = arith.truncf %23 : vector<24x8xf32> to vector<24x8xbf16>
    %25 = vector.extract_strided_slice %5 {offsets = [0, 0], sizes = [32, 8], strides = [1, 1]} : vector<32x64xbf16> to vector<32x8xbf16>
    %cst_14 = arith.constant dense<0.000000e+00> : vector<24x32xf32>
    %26 = tpu.matmul %24, %25, %cst_14 {dimension_numbers = #tpu.dot_dimension_numbers<[1], [1], [0], [0], [0, 0, 1, 0], [], []>} : vector<24x8xbf16>, vector<32x8xbf16>, vector<24x32xf32> -> vector<24x32xf32>
    %cst_15 = arith.constant dense<0xFF800000> : vector<24xf32>
    %27 = vector.multi_reduction <maximumf>, %26, %cst_15 [1] : vector<24x32xf32> to vector<24xf32>
    %28 = vector.shape_cast %27 : vector<24xf32> to vector<24x1xf32>
    %29 = vector.broadcast %28 : vector<24x1xf32> to vector<24x32xf32>
    %30 = arith.subf %26, %29 : vector<24x32xf32>
    %31 = math.exp %30 : vector<24x32xf32>
    %cst_16 = arith.constant dense<0.000000e+00> : vector<24xf32>
    %32 = vector.multi_reduction <add>, %31, %cst_16 [1] : vector<24x32xf32> to vector<24xf32>
    %33 = vector.shape_cast %32 : vector<24xf32> to vector<24x1xf32>
    %34 = tpu.reciprocal %33 {approx = true} : vector<24x1xf32> -> vector<24x1xf32>
    %35 = vector.broadcast %34 : vector<24x1xf32> to vector<24x32xf32>
    %36 = arith.mulf %31, %35 : vector<24x32xf32>
    %37 = arith.truncf %36 : vector<24x32xf32> to vector<24x32xbf16>
    %38 = vector.extract_strided_slice %8 {offsets = [0, 0], sizes = [32, 8], strides = [1, 1]} : vector<32x64xbf16> to vector<32x8xbf16>
    %cst_17 = arith.constant dense<0.000000e+00> : vector<24x8xf32>
    %39 = tpu.matmul %37, %38, %cst_17 {dimension_numbers = #tpu.dot_dimension_numbers<[1], [0], [0], [1], [0, 0, 1, 1], [], []>} : vector<24x32xbf16>, vector<32x8xbf16>, vector<24x8xf32> -> vector<24x8xf32>
    %40 = arith.truncf %39 : vector<24x8xf32> to vector<24x8xbf16>
    %cst_18 = arith.constant dense<0.000000e+00> : vector<32x8xf32>
    %41 = tpu.matmul %19, %40, %cst_18 {dimension_numbers = #tpu.dot_dimension_numbers<[1], [0], [0], [1], [0, 0, 1, 1], [], []>} : vector<32x24xbf16>, vector<24x8xbf16>, vector<32x8xf32> -> vector<32x8xf32>
    %42 = arith.extf %19 : vector<32x24xbf16> to vector<32x24xf32>
    %cst_19 = arith.constant dense<0.000000e+00> : vector<32xf32>
    %43 = vector.multi_reduction <add>, %42, %cst_19 [1] : vector<32x24xf32> to vector<32xf32>
    %44 = vector.shape_cast %43 : vector<32xf32> to vector<32x1xf32>
    %45 = arith.truncf %44 : vector<32x1xf32> to vector<32x1xbf16>
    %cst_20 = arith.constant 0.000000e+00 : bf16
    %46 = vector.broadcast %cst_20 : bf16 to vector<32x1xbf16>
    %47 = arith.cmpf ogt, %45, %46 : vector<32x1xbf16>
    %48 = vector.extract_strided_slice %12 {offsets = [0, 0], sizes = [1, 8], strides = [1, 1]} : vector<1x64xf32> to vector<1x8xf32>
    %49 = vector.shape_cast %47 : vector<32x1xi1> to vector<32x1xi1>
    %50 = vector.broadcast %49 : vector<32x1xi1> to vector<32x8xi1>
    %51 = vector.shape_cast %48 : vector<1x8xf32> to vector<1x8xf32>
    %52 = vector.broadcast %51 : vector<1x8xf32> to vector<32x8xf32>
    %53 = arith.select %50, %41, %52 : vector<32x8xi1>, vector<32x8xf32>
    %54 = vector.extract_strided_slice %1 {offsets = [1, 0], sizes = [1, 24], strides = [1, 1]} : vector<8x24xi32> to vector<1x24xi32>
    %55 = vector.broadcast %54 : vector<1x24xi32> to vector<32x24xi32>
    %56 = arith.cmpi eq, %13, %55 : vector<32x24xi32>
    %57 = arith.extui %56 : vector<32x24xi1> to vector<32x24xi32>
    %58 = arith.sitofp %57 : vector<32x24xi32> to vector<32x24xf32>
    %59 = arith.truncf %58 : vector<32x24xf32> to vector<32x24xbf16>
    %60 = vector.extract_strided_slice %3 {offsets = [0, 8], sizes = [32, 8], strides = [1, 1]} : vector<32x64xbf16> to vector<32x8xbf16>
    %cst_21 = arith.constant dense<0.000000e+00> : vector<24x8xf32>
    %61 = tpu.matmul %59, %60, %cst_21 {dimension_numbers = #tpu.dot_dimension_numbers<[0], [0], [1], [1], [0, 1, 1, 1], [], []>} : vector<32x24xbf16>, vector<32x8xbf16>, vector<24x8xf32> -> vector<24x8xf32>
    %cst_22 = arith.constant 0.353553385 : f32
    %62 = vector.broadcast %cst_22 : f32 to vector<24x8xf32>
    %63 = arith.mulf %61, %62 : vector<24x8xf32>
    %64 = arith.truncf %63 : vector<24x8xf32> to vector<24x8xbf16>
    %65 = vector.extract_strided_slice %5 {offsets = [0, 8], sizes = [32, 8], strides = [1, 1]} : vector<32x64xbf16> to vector<32x8xbf16>
    %cst_23 = arith.constant dense<0.000000e+00> : vector<24x32xf32>
    %66 = tpu.matmul %64, %65, %cst_23 {dimension_numbers = #tpu.dot_dimension_numbers<[1], [1], [0], [0], [0, 0, 1, 0], [], []>} : vector<24x8xbf16>, vector<32x8xbf16>, vector<24x32xf32> -> vector<24x32xf32>
    %cst_24 = arith.constant dense<0xFF800000> : vector<24xf32>
    %67 = vector.multi_reduction <maximumf>, %66, %cst_24 [1] : vector<24x32xf32> to vector<24xf32>
    %68 = vector.shape_cast %67 : vector<24xf32> to vector<24x1xf32>
    %69 = vector.broadcast %68 : vector<24x1xf32> to vector<24x32xf32>
    %70 = arith.subf %66, %69 : vector<24x32xf32>
    %71 = math.exp %70 : vector<24x32xf32>
    %cst_25 = arith.constant dense<0.000000e+00> : vector<24xf32>
    %72 = vector.multi_reduction <add>, %71, %cst_25 [1] : vector<24x32xf32> to vector<24xf32>
    %73 = vector.shape_cast %72 : vector<24xf32> to vector<24x1xf32>
    %74 = tpu.reciprocal %73 {approx = true} : vector<24x1xf32> -> vector<24x1xf32>
    %75 = vector.broadcast %74 : vector<24x1xf32> to vector<24x32xf32>
    %76 = arith.mulf %71, %75 : vector<24x32xf32>
    %77 = arith.truncf %76 : vector<24x32xf32> to vector<24x32xbf16>
    %78 = vector.extract_strided_slice %8 {offsets = [0, 8], sizes = [32, 8], strides = [1, 1]} : vector<32x64xbf16> to vector<32x8xbf16>
    %cst_26 = arith.constant dense<0.000000e+00> : vector<24x8xf32>
    %79 = tpu.matmul %77, %78, %cst_26 {dimension_numbers = #tpu.dot_dimension_numbers<[1], [0], [0], [1], [0, 0, 1, 1], [], []>} : vector<24x32xbf16>, vector<32x8xbf16>, vector<24x8xf32> -> vector<24x8xf32>
    %80 = arith.truncf %79 : vector<24x8xf32> to vector<24x8xbf16>
    %cst_27 = arith.constant dense<0.000000e+00> : vector<32x8xf32>
    %81 = tpu.matmul %59, %80, %cst_27 {dimension_numbers = #tpu.dot_dimension_numbers<[1], [0], [0], [1], [0, 0, 1, 1], [], []>} : vector<32x24xbf16>, vector<24x8xbf16>, vector<32x8xf32> -> vector<32x8xf32>
    %82 = arith.extf %59 : vector<32x24xbf16> to vector<32x24xf32>
    %cst_28 = arith.constant dense<0.000000e+00> : vector<32xf32>
    %83 = vector.multi_reduction <add>, %82, %cst_28 [1] : vector<32x24xf32> to vector<32xf32>
    %84 = vector.shape_cast %83 : vector<32xf32> to vector<32x1xf32>
    %85 = arith.truncf %84 : vector<32x1xf32> to vector<32x1xbf16>
    %cst_29 = arith.constant 0.000000e+00 : bf16
    %86 = vector.broadcast %cst_29 : bf16 to vector<32x1xbf16>
    %87 = arith.cmpf ogt, %85, %86 : vector<32x1xbf16>
    %88 = vector.extract_strided_slice %12 {offsets = [0, 8], sizes = [1, 8], strides = [1, 1]} : vector<1x64xf32> to vector<1x8xf32>
    %89 = vector.shape_cast %87 : vector<32x1xi1> to vector<32x1xi1>
    %90 = vector.broadcast %89 : vector<32x1xi1> to vector<32x8xi1>
    %91 = vector.shape_cast %88 : vector<1x8xf32> to vector<1x8xf32>
    %92 = vector.broadcast %91 : vector<1x8xf32> to vector<32x8xf32>
    %93 = arith.select %90, %81, %92 : vector<32x8xi1>, vector<32x8xf32>
    %94 = vector.extract_strided_slice %1 {offsets = [2, 0], sizes = [1, 24], strides = [1, 1]} : vector<8x24xi32> to vector<1x24xi32>
    %95 = vector.broadcast %94 : vector<1x24xi32> to vector<32x24xi32>
    %96 = arith.cmpi eq, %13, %95 : vector<32x24xi32>
    %97 = arith.extui %96 : vector<32x24xi1> to vector<32x24xi32>
    %98 = arith.sitofp %97 : vector<32x24xi32> to vector<32x24xf32>
    %99 = arith.truncf %98 : vector<32x24xf32> to vector<32x24xbf16>
    %100 = vector.extract_strided_slice %3 {offsets = [0, 16], sizes = [32, 8], strides = [1, 1]} : vector<32x64xbf16> to vector<32x8xbf16>
    %cst_30 = arith.constant dense<0.000000e+00> : vector<24x8xf32>
    %101 = tpu.matmul %99, %100, %cst_30 {dimension_numbers = #tpu.dot_dimension_numbers<[0], [0], [1], [1], [0, 1, 1, 1], [], []>} : vector<32x24xbf16>, vector<32x8xbf16>, vector<24x8xf32> -> vector<24x8xf32>
    %cst_31 = arith.constant 0.353553385 : f32
    %102 = vector.broadcast %cst_31 : f32 to vector<24x8xf32>
    %103 = arith.mulf %101, %102 : vector<24x8xf32>
    %104 = arith.truncf %103 : vector<24x8xf32> to vector<24x8xbf16>
    %105 = vector.extract_strided_slice %5 {offsets = [0, 16], sizes = [32, 8], strides = [1, 1]} : vector<32x64xbf16> to vector<32x8xbf16>
    %cst_32 = arith.constant dense<0.000000e+00> : vector<24x32xf32>
    %106 = tpu.matmul %104, %105, %cst_32 {dimension_numbers = #tpu.dot_dimension_numbers<[1], [1], [0], [0], [0, 0, 1, 0], [], []>} : vector<24x8xbf16>, vector<32x8xbf16>, vector<24x32xf32> -> vector<24x32xf32>
    %cst_33 = arith.constant dense<0xFF800000> : vector<24xf32>
    %107 = vector.multi_reduction <maximumf>, %106, %cst_33 [1] : vector<24x32xf32> to vector<24xf32>
    %108 = vector.shape_cast %107 : vector<24xf32> to vector<24x1xf32>
    %109 = vector.broadcast %108 : vector<24x1xf32> to vector<24x32xf32>
    %110 = arith.subf %106, %109 : vector<24x32xf32>
    %111 = math.exp %110 : vector<24x32xf32>
    %cst_34 = arith.constant dense<0.000000e+00> : vector<24xf32>
    %112 = vector.multi_reduction <add>, %111, %cst_34 [1] : vector<24x32xf32> to vector<24xf32>
    %113 = vector.shape_cast %112 : vector<24xf32> to vector<24x1xf32>
    %114 = tpu.reciprocal %113 {approx = true} : vector<24x1xf32> -> vector<24x1xf32>
    %115 = vector.broadcast %114 : vector<24x1xf32> to vector<24x32xf32>
    %116 = arith.mulf %111, %115 : vector<24x32xf32>
    %117 = arith.truncf %116 : vector<24x32xf32> to vector<24x32xbf16>
    %118 = vector.extract_strided_slice %8 {offsets = [0, 16], sizes = [32, 8], strides = [1, 1]} : vector<32x64xbf16> to vector<32x8xbf16>
    %cst_35 = arith.constant dense<0.000000e+00> : vector<24x8xf32>
    %119 = tpu.matmul %117, %118, %cst_35 {dimension_numbers = #tpu.dot_dimension_numbers<[1], [0], [0], [1], [0, 0, 1, 1], [], []>} : vector<24x32xbf16>, vector<32x8xbf16>, vector<24x8xf32> -> vector<24x8xf32>
    %120 = arith.truncf %119 : vector<24x8xf32> to vector<24x8xbf16>
    %cst_36 = arith.constant dense<0.000000e+00> : vector<32x8xf32>
    %121 = tpu.matmul %99, %120, %cst_36 {dimension_numbers = #tpu.dot_dimension_numbers<[1], [0], [0], [1], [0, 0, 1, 1], [], []>} : vector<32x24xbf16>, vector<24x8xbf16>, vector<32x8xf32> -> vector<32x8xf32>
    %122 = arith.extf %99 : vector<32x24xbf16> to vector<32x24xf32>
    %cst_37 = arith.constant dense<0.000000e+00> : vector<32xf32>
    %123 = vector.multi_reduction <add>, %122, %cst_37 [1] : vector<32x24xf32> to vector<32xf32>
    %124 = vector.shape_cast %123 : vector<32xf32> to vector<32x1xf32>
    %125 = arith.truncf %124 : vector<32x1xf32> to vector<32x1xbf16>
    %cst_38 = arith.constant 0.000000e+00 : bf16
    %126 = vector.broadcast %cst_38 : bf16 to vector<32x1xbf16>
    %127 = arith.cmpf ogt, %125, %126 : vector<32x1xbf16>
    %128 = vector.extract_strided_slice %12 {offsets = [0, 16], sizes = [1, 8], strides = [1, 1]} : vector<1x64xf32> to vector<1x8xf32>
    %129 = vector.shape_cast %127 : vector<32x1xi1> to vector<32x1xi1>
    %130 = vector.broadcast %129 : vector<32x1xi1> to vector<32x8xi1>
    %131 = vector.shape_cast %128 : vector<1x8xf32> to vector<1x8xf32>
    %132 = vector.broadcast %131 : vector<1x8xf32> to vector<32x8xf32>
    %133 = arith.select %130, %121, %132 : vector<32x8xi1>, vector<32x8xf32>
    %134 = vector.extract_strided_slice %1 {offsets = [3, 0], sizes = [1, 24], strides = [1, 1]} : vector<8x24xi32> to vector<1x24xi32>
    %135 = vector.broadcast %134 : vector<1x24xi32> to vector<32x24xi32>
    %136 = arith.cmpi eq, %13, %135 : vector<32x24xi32>
    %137 = arith.extui %136 : vector<32x24xi1> to vector<32x24xi32>
    %138 = arith.sitofp %137 : vector<32x24xi32> to vector<32x24xf32>
    %139 = arith.truncf %138 : vector<32x24xf32> to vector<32x24xbf16>
    %140 = vector.extract_strided_slice %3 {offsets = [0, 24], sizes = [32, 8], strides = [1, 1]} : vector<32x64xbf16> to vector<32x8xbf16>
    %cst_39 = arith.constant dense<0.000000e+00> : vector<24x8xf32>
    %141 = tpu.matmul %139, %140, %cst_39 {dimension_numbers = #tpu.dot_dimension_numbers<[0], [0], [1], [1], [0, 1, 1, 1], [], []>} : vector<32x24xbf16>, vector<32x8xbf16>, vector<24x8xf32> -> vector<24x8xf32>
    %cst_40 = arith.constant 0.353553385 : f32
    %142 = vector.broadcast %cst_40 : f32 to vector<24x8xf32>
    %143 = arith.mulf %141, %142 : vector<24x8xf32>
    %144 = arith.truncf %143 : vector<24x8xf32> to vector<24x8xbf16>
    %145 = vector.extract_strided_slice %5 {offsets = [0, 24], sizes = [32, 8], strides = [1, 1]} : vector<32x64xbf16> to vector<32x8xbf16>
    %cst_41 = arith.constant dense<0.000000e+00> : vector<24x32xf32>
    %146 = tpu.matmul %144, %145, %cst_41 {dimension_numbers = #tpu.dot_dimension_numbers<[1], [1], [0], [0], [0, 0, 1, 0], [], []>} : vector<24x8xbf16>, vector<32x8xbf16>, vector<24x32xf32> -> vector<24x32xf32>
    %cst_42 = arith.constant dense<0xFF800000> : vector<24xf32>
    %147 = vector.multi_reduction <maximumf>, %146, %cst_42 [1] : vector<24x32xf32> to vector<24xf32>
    %148 = vector.shape_cast %147 : vector<24xf32> to vector<24x1xf32>
    %149 = vector.broadcast %148 : vector<24x1xf32> to vector<24x32xf32>
    %150 = arith.subf %146, %149 : vector<24x32xf32>
    %151 = math.exp %150 : vector<24x32xf32>
    %cst_43 = arith.constant dense<0.000000e+00> : vector<24xf32>
    %152 = vector.multi_reduction <add>, %151, %cst_43 [1] : vector<24x32xf32> to vector<24xf32>
    %153 = vector.shape_cast %152 : vector<24xf32> to vector<24x1xf32>
    %154 = tpu.reciprocal %153 {approx = true} : vector<24x1xf32> -> vector<24x1xf32>
    %155 = vector.broadcast %154 : vector<24x1xf32> to vector<24x32xf32>
    %156 = arith.mulf %151, %155 : vector<24x32xf32>
    %157 = arith.truncf %156 : vector<24x32xf32> to vector<24x32xbf16>
    %158 = vector.extract_strided_slice %8 {offsets = [0, 24], sizes = [32, 8], strides = [1, 1]} : vector<32x64xbf16> to vector<32x8xbf16>
    %cst_44 = arith.constant dense<0.000000e+00> : vector<24x8xf32>
    %159 = tpu.matmul %157, %158, %cst_44 {dimension_numbers = #tpu.dot_dimension_numbers<[1], [0], [0], [1], [0, 0, 1, 1], [], []>} : vector<24x32xbf16>, vector<32x8xbf16>, vector<24x8xf32> -> vector<24x8xf32>
    %160 = arith.truncf %159 : vector<24x8xf32> to vector<24x8xbf16>
    %cst_45 = arith.constant dense<0.000000e+00> : vector<32x8xf32>
    %161 = tpu.matmul %139, %160, %cst_45 {dimension_numbers = #tpu.dot_dimension_numbers<[1], [0], [0], [1], [0, 0, 1, 1], [], []>} : vector<32x24xbf16>, vector<24x8xbf16>, vector<32x8xf32> -> vector<32x8xf32>
    %162 = arith.extf %139 : vector<32x24xbf16> to vector<32x24xf32>
    %cst_46 = arith.constant dense<0.000000e+00> : vector<32xf32>
    %163 = vector.multi_reduction <add>, %162, %cst_46 [1] : vector<32x24xf32> to vector<32xf32>
    %164 = vector.shape_cast %163 : vector<32xf32> to vector<32x1xf32>
    %165 = arith.truncf %164 : vector<32x1xf32> to vector<32x1xbf16>
    %cst_47 = arith.constant 0.000000e+00 : bf16
    %166 = vector.broadcast %cst_47 : bf16 to vector<32x1xbf16>
    %167 = arith.cmpf ogt, %165, %166 : vector<32x1xbf16>
    %168 = vector.extract_strided_slice %12 {offsets = [0, 24], sizes = [1, 8], strides = [1, 1]} : vector<1x64xf32> to vector<1x8xf32>
    %169 = vector.shape_cast %167 : vector<32x1xi1> to vector<32x1xi1>
    %170 = vector.broadcast %169 : vector<32x1xi1> to vector<32x8xi1>
    %171 = vector.shape_cast %168 : vector<1x8xf32> to vector<1x8xf32>
    %172 = vector.broadcast %171 : vector<1x8xf32> to vector<32x8xf32>
    %173 = arith.select %170, %161, %172 : vector<32x8xi1>, vector<32x8xf32>
    %174 = vector.extract_strided_slice %1 {offsets = [4, 0], sizes = [1, 24], strides = [1, 1]} : vector<8x24xi32> to vector<1x24xi32>
    %175 = vector.broadcast %174 : vector<1x24xi32> to vector<32x24xi32>
    %176 = arith.cmpi eq, %13, %175 : vector<32x24xi32>
    %177 = arith.extui %176 : vector<32x24xi1> to vector<32x24xi32>
    %178 = arith.sitofp %177 : vector<32x24xi32> to vector<32x24xf32>
    %179 = arith.truncf %178 : vector<32x24xf32> to vector<32x24xbf16>
    %180 = vector.extract_strided_slice %3 {offsets = [0, 32], sizes = [32, 8], strides = [1, 1]} : vector<32x64xbf16> to vector<32x8xbf16>
    %cst_48 = arith.constant dense<0.000000e+00> : vector<24x8xf32>
    %181 = tpu.matmul %179, %180, %cst_48 {dimension_numbers = #tpu.dot_dimension_numbers<[0], [0], [1], [1], [0, 1, 1, 1], [], []>} : vector<32x24xbf16>, vector<32x8xbf16>, vector<24x8xf32> -> vector<24x8xf32>
    %cst_49 = arith.constant 0.353553385 : f32
    %182 = vector.broadcast %cst_49 : f32 to vector<24x8xf32>
    %183 = arith.mulf %181, %182 : vector<24x8xf32>
    %184 = arith.truncf %183 : vector<24x8xf32> to vector<24x8xbf16>
    %185 = vector.extract_strided_slice %5 {offsets = [0, 32], sizes = [32, 8], strides = [1, 1]} : vector<32x64xbf16> to vector<32x8xbf16>
    %cst_50 = arith.constant dense<0.000000e+00> : vector<24x32xf32>
    %186 = tpu.matmul %184, %185, %cst_50 {dimension_numbers = #tpu.dot_dimension_numbers<[1], [1], [0], [0], [0, 0, 1, 0], [], []>} : vector<24x8xbf16>, vector<32x8xbf16>, vector<24x32xf32> -> vector<24x32xf32>
    %cst_51 = arith.constant dense<0xFF800000> : vector<24xf32>
    %187 = vector.multi_reduction <maximumf>, %186, %cst_51 [1] : vector<24x32xf32> to vector<24xf32>
    %188 = vector.shape_cast %187 : vector<24xf32> to vector<24x1xf32>
    %189 = vector.broadcast %188 : vector<24x1xf32> to vector<24x32xf32>
    %190 = arith.subf %186, %189 : vector<24x32xf32>
    %191 = math.exp %190 : vector<24x32xf32>
    %cst_52 = arith.constant dense<0.000000e+00> : vector<24xf32>
    %192 = vector.multi_reduction <add>, %191, %cst_52 [1] : vector<24x32xf32> to vector<24xf32>
    %193 = vector.shape_cast %192 : vector<24xf32> to vector<24x1xf32>
    %194 = tpu.reciprocal %193 {approx = true} : vector<24x1xf32> -> vector<24x1xf32>
    %195 = vector.broadcast %194 : vector<24x1xf32> to vector<24x32xf32>
    %196 = arith.mulf %191, %195 : vector<24x32xf32>
    %197 = arith.truncf %196 : vector<24x32xf32> to vector<24x32xbf16>
    %198 = vector.extract_strided_slice %8 {offsets = [0, 32], sizes = [32, 8], strides = [1, 1]} : vector<32x64xbf16> to vector<32x8xbf16>
    %cst_53 = arith.constant dense<0.000000e+00> : vector<24x8xf32>
    %199 = tpu.matmul %197, %198, %cst_53 {dimension_numbers = #tpu.dot_dimension_numbers<[1], [0], [0], [1], [0, 0, 1, 1], [], []>} : vector<24x32xbf16>, vector<32x8xbf16>, vector<24x8xf32> -> vector<24x8xf32>
    %200 = arith.truncf %199 : vector<24x8xf32> to vector<24x8xbf16>
    %cst_54 = arith.constant dense<0.000000e+00> : vector<32x8xf32>
    %201 = tpu.matmul %179, %200, %cst_54 {dimension_numbers = #tpu.dot_dimension_numbers<[1], [0], [0], [1], [0, 0, 1, 1], [], []>} : vector<32x24xbf16>, vector<24x8xbf16>, vector<32x8xf32> -> vector<32x8xf32>
    %202 = arith.extf %179 : vector<32x24xbf16> to vector<32x24xf32>
    %cst_55 = arith.constant dense<0.000000e+00> : vector<32xf32>
    %203 = vector.multi_reduction <add>, %202, %cst_55 [1] : vector<32x24xf32> to vector<32xf32>
    %204 = vector.shape_cast %203 : vector<32xf32> to vector<32x1xf32>
    %205 = arith.truncf %204 : vector<32x1xf32> to vector<32x1xbf16>
    %cst_56 = arith.constant 0.000000e+00 : bf16
    %206 = vector.broadcast %cst_56 : bf16 to vector<32x1xbf16>
    %207 = arith.cmpf ogt, %205, %206 : vector<32x1xbf16>
    %208 = vector.extract_strided_slice %12 {offsets = [0, 32], sizes = [1, 8], strides = [1, 1]} : vector<1x64xf32> to vector<1x8xf32>
    %209 = vector.shape_cast %207 : vector<32x1xi1> to vector<32x1xi1>
    %210 = vector.broadcast %209 : vector<32x1xi1> to vector<32x8xi1>
    %211 = vector.shape_cast %208 : vector<1x8xf32> to vector<1x8xf32>
    %212 = vector.broadcast %211 : vector<1x8xf32> to vector<32x8xf32>
    %213 = arith.select %210, %201, %212 : vector<32x8xi1>, vector<32x8xf32>
    %214 = vector.extract_strided_slice %1 {offsets = [5, 0], sizes = [1, 24], strides = [1, 1]} : vector<8x24xi32> to vector<1x24xi32>
    %215 = vector.broadcast %214 : vector<1x24xi32> to vector<32x24xi32>
    %216 = arith.cmpi eq, %13, %215 : vector<32x24xi32>
    %217 = arith.extui %216 : vector<32x24xi1> to vector<32x24xi32>
    %218 = arith.sitofp %217 : vector<32x24xi32> to vector<32x24xf32>
    %219 = arith.truncf %218 : vector<32x24xf32> to vector<32x24xbf16>
    %220 = vector.extract_strided_slice %3 {offsets = [0, 40], sizes = [32, 8], strides = [1, 1]} : vector<32x64xbf16> to vector<32x8xbf16>
    %cst_57 = arith.constant dense<0.000000e+00> : vector<24x8xf32>
    %221 = tpu.matmul %219, %220, %cst_57 {dimension_numbers = #tpu.dot_dimension_numbers<[0], [0], [1], [1], [0, 1, 1, 1], [], []>} : vector<32x24xbf16>, vector<32x8xbf16>, vector<24x8xf32> -> vector<24x8xf32>
    %cst_58 = arith.constant 0.353553385 : f32
    %222 = vector.broadcast %cst_58 : f32 to vector<24x8xf32>
    %223 = arith.mulf %221, %222 : vector<24x8xf32>
    %224 = arith.truncf %223 : vector<24x8xf32> to vector<24x8xbf16>
    %225 = vector.extract_strided_slice %5 {offsets = [0, 40], sizes = [32, 8], strides = [1, 1]} : vector<32x64xbf16> to vector<32x8xbf16>
    %cst_59 = arith.constant dense<0.000000e+00> : vector<24x32xf32>
    %226 = tpu.matmul %224, %225, %cst_59 {dimension_numbers = #tpu.dot_dimension_numbers<[1], [1], [0], [0], [0, 0, 1, 0], [], []>} : vector<24x8xbf16>, vector<32x8xbf16>, vector<24x32xf32> -> vector<24x32xf32>
    %cst_60 = arith.constant dense<0xFF800000> : vector<24xf32>
    %227 = vector.multi_reduction <maximumf>, %226, %cst_60 [1] : vector<24x32xf32> to vector<24xf32>
    %228 = vector.shape_cast %227 : vector<24xf32> to vector<24x1xf32>
    %229 = vector.broadcast %228 : vector<24x1xf32> to vector<24x32xf32>
    %230 = arith.subf %226, %229 : vector<24x32xf32>
    %231 = math.exp %230 : vector<24x32xf32>
    %cst_61 = arith.constant dense<0.000000e+00> : vector<24xf32>
    %232 = vector.multi_reduction <add>, %231, %cst_61 [1] : vector<24x32xf32> to vector<24xf32>
    %233 = vector.shape_cast %232 : vector<24xf32> to vector<24x1xf32>
    %234 = tpu.reciprocal %233 {approx = true} : vector<24x1xf32> -> vector<24x1xf32>
    %235 = vector.broadcast %234 : vector<24x1xf32> to vector<24x32xf32>
    %236 = arith.mulf %231, %235 : vector<24x32xf32>
    %237 = arith.truncf %236 : vector<24x32xf32> to vector<24x32xbf16>
    %238 = vector.extract_strided_slice %8 {offsets = [0, 40], sizes = [32, 8], strides = [1, 1]} : vector<32x64xbf16> to vector<32x8xbf16>
    %cst_62 = arith.constant dense<0.000000e+00> : vector<24x8xf32>
    %239 = tpu.matmul %237, %238, %cst_62 {dimension_numbers = #tpu.dot_dimension_numbers<[1], [0], [0], [1], [0, 0, 1, 1], [], []>} : vector<24x32xbf16>, vector<32x8xbf16>, vector<24x8xf32> -> vector<24x8xf32>
    %240 = arith.truncf %239 : vector<24x8xf32> to vector<24x8xbf16>
    %cst_63 = arith.constant dense<0.000000e+00> : vector<32x8xf32>
    %241 = tpu.matmul %219, %240, %cst_63 {dimension_numbers = #tpu.dot_dimension_numbers<[1], [0], [0], [1], [0, 0, 1, 1], [], []>} : vector<32x24xbf16>, vector<24x8xbf16>, vector<32x8xf32> -> vector<32x8xf32>
    %242 = arith.extf %219 : vector<32x24xbf16> to vector<32x24xf32>
    %cst_64 = arith.constant dense<0.000000e+00> : vector<32xf32>
    %243 = vector.multi_reduction <add>, %242, %cst_64 [1] : vector<32x24xf32> to vector<32xf32>
    %244 = vector.shape_cast %243 : vector<32xf32> to vector<32x1xf32>
    %245 = arith.truncf %244 : vector<32x1xf32> to vector<32x1xbf16>
    %cst_65 = arith.constant 0.000000e+00 : bf16
    %246 = vector.broadcast %cst_65 : bf16 to vector<32x1xbf16>
    %247 = arith.cmpf ogt, %245, %246 : vector<32x1xbf16>
    %248 = vector.extract_strided_slice %12 {offsets = [0, 40], sizes = [1, 8], strides = [1, 1]} : vector<1x64xf32> to vector<1x8xf32>
    %249 = vector.shape_cast %247 : vector<32x1xi1> to vector<32x1xi1>
    %250 = vector.broadcast %249 : vector<32x1xi1> to vector<32x8xi1>
    %251 = vector.shape_cast %248 : vector<1x8xf32> to vector<1x8xf32>
    %252 = vector.broadcast %251 : vector<1x8xf32> to vector<32x8xf32>
    %253 = arith.select %250, %241, %252 : vector<32x8xi1>, vector<32x8xf32>
    %254 = vector.extract_strided_slice %1 {offsets = [6, 0], sizes = [1, 24], strides = [1, 1]} : vector<8x24xi32> to vector<1x24xi32>
    %255 = vector.broadcast %254 : vector<1x24xi32> to vector<32x24xi32>
    %256 = arith.cmpi eq, %13, %255 : vector<32x24xi32>
    %257 = arith.extui %256 : vector<32x24xi1> to vector<32x24xi32>
    %258 = arith.sitofp %257 : vector<32x24xi32> to vector<32x24xf32>
    %259 = arith.truncf %258 : vector<32x24xf32> to vector<32x24xbf16>
    %260 = vector.extract_strided_slice %3 {offsets = [0, 48], sizes = [32, 8], strides = [1, 1]} : vector<32x64xbf16> to vector<32x8xbf16>
    %cst_66 = arith.constant dense<0.000000e+00> : vector<24x8xf32>
    %261 = tpu.matmul %259, %260, %cst_66 {dimension_numbers = #tpu.dot_dimension_numbers<[0], [0], [1], [1], [0, 1, 1, 1], [], []>} : vector<32x24xbf16>, vector<32x8xbf16>, vector<24x8xf32> -> vector<24x8xf32>
    %cst_67 = arith.constant 0.353553385 : f32
    %262 = vector.broadcast %cst_67 : f32 to vector<24x8xf32>
    %263 = arith.mulf %261, %262 : vector<24x8xf32>
    %264 = arith.truncf %263 : vector<24x8xf32> to vector<24x8xbf16>
    %265 = vector.extract_strided_slice %5 {offsets = [0, 48], sizes = [32, 8], strides = [1, 1]} : vector<32x64xbf16> to vector<32x8xbf16>
    %cst_68 = arith.constant dense<0.000000e+00> : vector<24x32xf32>
    %266 = tpu.matmul %264, %265, %cst_68 {dimension_numbers = #tpu.dot_dimension_numbers<[1], [1], [0], [0], [0, 0, 1, 0], [], []>} : vector<24x8xbf16>, vector<32x8xbf16>, vector<24x32xf32> -> vector<24x32xf32>
    %cst_69 = arith.constant dense<0xFF800000> : vector<24xf32>
    %267 = vector.multi_reduction <maximumf>, %266, %cst_69 [1] : vector<24x32xf32> to vector<24xf32>
    %268 = vector.shape_cast %267 : vector<24xf32> to vector<24x1xf32>
    %269 = vector.broadcast %268 : vector<24x1xf32> to vector<24x32xf32>
    %270 = arith.subf %266, %269 : vector<24x32xf32>
    %271 = math.exp %270 : vector<24x32xf32>
    %cst_70 = arith.constant dense<0.000000e+00> : vector<24xf32>
    %272 = vector.multi_reduction <add>, %271, %cst_70 [1] : vector<24x32xf32> to vector<24xf32>
    %273 = vector.shape_cast %272 : vector<24xf32> to vector<24x1xf32>
    %274 = tpu.reciprocal %273 {approx = true} : vector<24x1xf32> -> vector<24x1xf32>
    %275 = vector.broadcast %274 : vector<24x1xf32> to vector<24x32xf32>
    %276 = arith.mulf %271, %275 : vector<24x32xf32>
    %277 = arith.truncf %276 : vector<24x32xf32> to vector<24x32xbf16>
    %278 = vector.extract_strided_slice %8 {offsets = [0, 48], sizes = [32, 8], strides = [1, 1]} : vector<32x64xbf16> to vector<32x8xbf16>
    %cst_71 = arith.constant dense<0.000000e+00> : vector<24x8xf32>
    %279 = tpu.matmul %277, %278, %cst_71 {dimension_numbers = #tpu.dot_dimension_numbers<[1], [0], [0], [1], [0, 0, 1, 1], [], []>} : vector<24x32xbf16>, vector<32x8xbf16>, vector<24x8xf32> -> vector<24x8xf32>
    %280 = arith.truncf %279 : vector<24x8xf32> to vector<24x8xbf16>
    %cst_72 = arith.constant dense<0.000000e+00> : vector<32x8xf32>
    %281 = tpu.matmul %259, %280, %cst_72 {dimension_numbers = #tpu.dot_dimension_numbers<[1], [0], [0], [1], [0, 0, 1, 1], [], []>} : vector<32x24xbf16>, vector<24x8xbf16>, vector<32x8xf32> -> vector<32x8xf32>
    %282 = arith.extf %259 : vector<32x24xbf16> to vector<32x24xf32>
    %cst_73 = arith.constant dense<0.000000e+00> : vector<32xf32>
    %283 = vector.multi_reduction <add>, %282, %cst_73 [1] : vector<32x24xf32> to vector<32xf32>
    %284 = vector.shape_cast %283 : vector<32xf32> to vector<32x1xf32>
    %285 = arith.truncf %284 : vector<32x1xf32> to vector<32x1xbf16>
    %cst_74 = arith.constant 0.000000e+00 : bf16
    %286 = vector.broadcast %cst_74 : bf16 to vector<32x1xbf16>
    %287 = arith.cmpf ogt, %285, %286 : vector<32x1xbf16>
    %288 = vector.extract_strided_slice %12 {offsets = [0, 48], sizes = [1, 8], strides = [1, 1]} : vector<1x64xf32> to vector<1x8xf32>
    %289 = vector.shape_cast %287 : vector<32x1xi1> to vector<32x1xi1>
    %290 = vector.broadcast %289 : vector<32x1xi1> to vector<32x8xi1>
    %291 = vector.shape_cast %288 : vector<1x8xf32> to vector<1x8xf32>
    %292 = vector.broadcast %291 : vector<1x8xf32> to vector<32x8xf32>
    %293 = arith.select %290, %281, %292 : vector<32x8xi1>, vector<32x8xf32>
    %294 = vector.extract_strided_slice %1 {offsets = [7, 0], sizes = [1, 24], strides = [1, 1]} : vector<8x24xi32> to vector<1x24xi32>
    %295 = vector.broadcast %294 : vector<1x24xi32> to vector<32x24xi32>
    %296 = arith.cmpi eq, %13, %295 : vector<32x24xi32>
    %297 = arith.extui %296 : vector<32x24xi1> to vector<32x24xi32>
    %298 = arith.sitofp %297 : vector<32x24xi32> to vector<32x24xf32>
    %299 = arith.truncf %298 : vector<32x24xf32> to vector<32x24xbf16>
    %300 = vector.extract_strided_slice %3 {offsets = [0, 56], sizes = [32, 8], strides = [1, 1]} : vector<32x64xbf16> to vector<32x8xbf16>
    %cst_75 = arith.constant dense<0.000000e+00> : vector<24x8xf32>
    %301 = tpu.matmul %299, %300, %cst_75 {dimension_numbers = #tpu.dot_dimension_numbers<[0], [0], [1], [1], [0, 1, 1, 1], [], []>} : vector<32x24xbf16>, vector<32x8xbf16>, vector<24x8xf32> -> vector<24x8xf32>
    %cst_76 = arith.constant 0.353553385 : f32
    %302 = vector.broadcast %cst_76 : f32 to vector<24x8xf32>
    %303 = arith.mulf %301, %302 : vector<24x8xf32>
    %304 = arith.truncf %303 : vector<24x8xf32> to vector<24x8xbf16>
    %305 = vector.extract_strided_slice %5 {offsets = [0, 56], sizes = [32, 8], strides = [1, 1]} : vector<32x64xbf16> to vector<32x8xbf16>
    %cst_77 = arith.constant dense<0.000000e+00> : vector<24x32xf32>
    %306 = tpu.matmul %304, %305, %cst_77 {dimension_numbers = #tpu.dot_dimension_numbers<[1], [1], [0], [0], [0, 0, 1, 0], [], []>} : vector<24x8xbf16>, vector<32x8xbf16>, vector<24x32xf32> -> vector<24x32xf32>
    %cst_78 = arith.constant dense<0xFF800000> : vector<24xf32>
    %307 = vector.multi_reduction <maximumf>, %306, %cst_78 [1] : vector<24x32xf32> to vector<24xf32>
    %308 = vector.shape_cast %307 : vector<24xf32> to vector<24x1xf32>
    %309 = vector.broadcast %308 : vector<24x1xf32> to vector<24x32xf32>
    %310 = arith.subf %306, %309 : vector<24x32xf32>
    %311 = math.exp %310 : vector<24x32xf32>
    %cst_79 = arith.constant dense<0.000000e+00> : vector<24xf32>
    %312 = vector.multi_reduction <add>, %311, %cst_79 [1] : vector<24x32xf32> to vector<24xf32>
    %313 = vector.shape_cast %312 : vector<24xf32> to vector<24x1xf32>
    %314 = tpu.reciprocal %313 {approx = true} : vector<24x1xf32> -> vector<24x1xf32>
    %315 = vector.broadcast %314 : vector<24x1xf32> to vector<24x32xf32>
    %316 = arith.mulf %311, %315 : vector<24x32xf32>
    %317 = arith.truncf %316 : vector<24x32xf32> to vector<24x32xbf16>
    %318 = vector.extract_strided_slice %8 {offsets = [0, 56], sizes = [32, 8], strides = [1, 1]} : vector<32x64xbf16> to vector<32x8xbf16>
    %cst_80 = arith.constant dense<0.000000e+00> : vector<24x8xf32>
    %319 = tpu.matmul %317, %318, %cst_80 {dimension_numbers = #tpu.dot_dimension_numbers<[1], [0], [0], [1], [0, 0, 1, 1], [], []>} : vector<24x32xbf16>, vector<32x8xbf16>, vector<24x8xf32> -> vector<24x8xf32>
    %320 = arith.truncf %319 : vector<24x8xf32> to vector<24x8xbf16>
    %cst_81 = arith.constant dense<0.000000e+00> : vector<32x8xf32>
    %321 = tpu.matmul %299, %320, %cst_81 {dimension_numbers = #tpu.dot_dimension_numbers<[1], [0], [0], [1], [0, 0, 1, 1], [], []>} : vector<32x24xbf16>, vector<24x8xbf16>, vector<32x8xf32> -> vector<32x8xf32>
    %322 = arith.extf %299 : vector<32x24xbf16> to vector<32x24xf32>
    %cst_82 = arith.constant dense<0.000000e+00> : vector<32xf32>
    %323 = vector.multi_reduction <add>, %322, %cst_82 [1] : vector<32x24xf32> to vector<32xf32>
    %324 = vector.shape_cast %323 : vector<32xf32> to vector<32x1xf32>
    %325 = arith.truncf %324 : vector<32x1xf32> to vector<32x1xbf16>
    %cst_83 = arith.constant 0.000000e+00 : bf16
    %326 = vector.broadcast %cst_83 : bf16 to vector<32x1xbf16>
    %327 = arith.cmpf ogt, %325, %326 : vector<32x1xbf16>
    %328 = vector.extract_strided_slice %12 {offsets = [0, 56], sizes = [1, 8], strides = [1, 1]} : vector<1x64xf32> to vector<1x8xf32>
    %329 = vector.shape_cast %327 : vector<32x1xi1> to vector<32x1xi1>
    %330 = vector.broadcast %329 : vector<32x1xi1> to vector<32x8xi1>
    %331 = vector.shape_cast %328 : vector<1x8xf32> to vector<1x8xf32>
    %332 = vector.broadcast %331 : vector<1x8xf32> to vector<32x8xf32>
    %333 = arith.select %330, %321, %332 : vector<32x8xi1>, vector<32x8xf32>
    %334 = tpu.concatenate %53, %93, %133, %173, %213, %253, %293, %333 in 1 : vector<32x8xf32>, vector<32x8xf32>, vector<32x8xf32>, vector<32x8xf32>, vector<32x8xf32>, vector<32x8xf32>, vector<32x8xf32>, vector<32x8xf32> -> vector<32x64xf32>
    %335 = arith.truncf %334 : vector<32x64xf32> to vector<32x64xbf16>
    %c0_84 = arith.constant 0 : index
    %c0_85 = arith.constant 0 : index
    %336 = vector.load %arg5[%c0_84, %c0_85] : memref<64x64xbf16, #tpu.memory_space<vmem>>, vector<64x64xbf16>
    %cst_86 = arith.constant dense<0.000000e+00> : vector<32x64xf32>
    %337 = tpu.matmul %335, %336, %cst_86 {dimension_numbers = #tpu.dot_dimension_numbers<[1], [0], [0], [1], [0, 0, 1, 1], [], []>} : vector<32x64xbf16>, vector<64x64xbf16>, vector<32x64xf32> -> vector<32x64xf32>
    %c0_87 = arith.constant 0 : index
    %c0_88 = arith.constant 0 : index
    %338 = vector.load %arg6[%c0_87, %c0_88] : memref<1x64xf32, #tpu.memory_space<vmem>>, vector<1x64xf32>
    %339 = vector.broadcast %338 : vector<1x64xf32> to vector<32x64xf32>
    %340 = arith.addf %337, %339 : vector<32x64xf32>
    %c0_89 = arith.constant 0 : index
    %c0_90 = arith.constant 0 : index
    %c0_91 = arith.constant 0 : index
    %341 = vector.load %arg7[%c0_89, %c0_90, %c0_91] : memref<1x32x64xf32, #tpu.memory_space<vmem>>, vector<1x32x64xf32>
    %342 = vector.shape_cast %341 : vector<1x32x64xf32> to vector<32x64xf32>
    %343 = vector.shape_cast %340 : vector<32x64xf32> to vector<1x32x64xf32>
    tpu.vector_store %arg7[%c0_89, %c0_90, %c0_91], %343 {strides = array<i32>} : memref<1x32x64xf32, #tpu.memory_space<vmem>>, vector<1x32x64xf32>,
    return
  }
  func.func @transform_0(%arg0: i32) -> (i32, i32, i32) {
    %c0_i32 = arith.constant 0 : i32
    %c0_i32_0 = arith.constant 0 : i32
    %c0_i32_1 = arith.constant 0 : i32
    return %arg0, %c0_i32, %c0_i32_0 : i32, i32, i32
  }
  func.func @transform_1(%arg0: i32) -> (i32, i32, i32) {
    %c0_i32 = arith.constant 0 : i32
    %c0_i32_0 = arith.constant 0 : i32
    %c0_i32_1 = arith.constant 0 : i32
    return %arg0, %c0_i32, %c0_i32_0 : i32, i32, i32
  }
  func.func @transform_2(%arg0: i32) -> (i32, i32, i32) {
    %c0_i32 = arith.constant 0 : i32
    %c0_i32_0 = arith.constant 0 : i32
    %c0_i32_1 = arith.constant 0 : i32
    return %arg0, %c0_i32, %c0_i32_0 : i32, i32, i32
  }
  func.func @transform_3(%arg0: i32) -> (i32, i32, i32) {
    %c0_i32 = arith.constant 0 : i32
    %c0_i32_0 = arith.constant 0 : i32
    %c0_i32_1 = arith.constant 0 : i32
    return %arg0, %c0_i32, %c0_i32_0 : i32, i32, i32
  }
  func.func @transform_4(%arg0: i32) -> (i32, i32) {
    %c0_i32 = arith.constant 0 : i32
    %c0_i32_0 = arith.constant 0 : i32
    %c0_i32_1 = arith.constant 0 : i32
    return %c0_i32, %c0_i32_0 : i32, i32
  }
  func.func @transform_5(%arg0: i32) -> (i32, i32) {
    %c0_i32 = arith.constant 0 : i32
    %c0_i32_0 = arith.constant 0 : i32
    %c0_i32_1 = arith.constant 0 : i32
    return %c0_i32, %c0_i32_0 : i32, i32
  }
  func.func @transform_6(%arg0: i32) -> (i32, i32, i32) {
    %c0_i32 = arith.constant 0 : i32
    %c0_i32_0 = arith.constant 0 : i32
    %c0_i32_1 = arith.constant 0 : i32
    return %arg0, %c0_i32, %c0_i32_0 : i32, i32, i32
  }
}

</mosaic_0001>

<bundles_post_ra>
// kernel: prob_sparse_self_attention.3
= control target key start
LH: loop header
LB: loop body
LE: loop exit
PB: predicated region body
PF: predicated region fallthrough
CT: control target
= control target key end

     0   :  { %s650_s18 = smov 0   ;;  %s726_s0 = inlined_call_operand.vmem [shape: f32[64,64], index: 0, kind: input, shape index: {}]   ;;  %s727_s1 = inlined_call_operand.vmem [shape: bf16[64,192], index: 1, kind: input, shape index: {}]   ;;  %s728_s2 = inlined_call_operand.vmem [shape: f32[1,192], index: 2, kind: input, shape index: {}]   ;;  %s729_s3 = inlined_call_operand.vmem [shape: bf16[64,64], index: 3, kind: output, shape index: {0}]   ;;  %s730_s4 = inlined_call_operand.vmem [shape: bf16[64,64], index: 4, kind: output, shape index: {1}]   ;;  %s731_s5 = inlined_call_operand.vmem [shape: f32[64,64], index: 5, kind: output, shape index: {2}]  }
   0x1 LB: > { %s547_s19 = sadd.s32 4294967295, %s616_s18   ;;  %p551_p0 = scmp.ge.s32.totalorder %s616_s18, 1  ;;  %s616_s18 = sphi %s650_s18, %s16_s18  }
   0x2   : > { %p193_p1 = scmp.lt.s32.totalorder %s616_s18, 3 }
   0x4   : > { %p194_p2 = pnand %p551_p0, %p193_p1 }
   0x5   : > { %v598_v0 = vld [vmem:[%s727_s1 + $0x4] ss:$8 sps:$4 sm:$0xff] (!%p194_p2)   ;;  %s552_s22 = sshll.u32 (!%p194_p2), %s547_s19, 2  ;;  %v600_v1 = vld [vmem:[%s727_s1] ss:$8 sps:$4 sm:$0xff] (!%p194_p2)   ;;  %v618_v2 = vmov (!%p194_p2), 0   ;;  %v272_v15 = vlaneseq (!%p194_p2) }
   0x6   : > { %197 = sbr.rel (%p194_p2) target bundleno = 359 (0x167), region = 32  ;;  %361 = vmatprep.mubr.bf16.mxu0 (!%p194_p2), %v618_v2  ;;  %371 = vmatprep.mubr.bf16.mxu1 (!%p194_p2), %v618_v2  ;;  %p232_p3 = scmp.lt.s32.totalorder (!%p194_p2), %s552_s22, 7  ;;  %v601_v3 = vld [vmem:[%s727_s1 + $0x14] ss:$8 sps:$4 sm:$0xff] (!%p194_p2)   ;;  %v603_v4 = vld [vmem:[%s727_s1 + $0x10] ss:$8 sps:$4 sm:$0xff] (!%p194_p2)  }
   0x7   : > { %329 = vmatprep.subr.bf16.mxu0 (!%p194_p2), %v598_v0  ;;  %580 = vmatprep.subr.bf16.mxu1 (!%p194_p2), %v598_v0  ;;  %v604_v5 = vld [vmem:[%s727_s1 + $0x24] ss:$8 sps:$4 sm:$0xff] (!%p194_p2)   ;;  %v606_v6 = vld [vmem:[%s727_s1 + $0x20] ss:$8 sps:$4 sm:$0xff] (!%p194_p2)   ;;  %v607_v7 = vld [vmem:[%s727_s1 + $0x34] ss:$8 sps:$4 sm:$0xff] (!%p194_p2)  }
   0x8   : > { %330 = vmatpush1.bf16.msra.mxu0 (!%p194_p2), %v600_v1  ;;  %584 = vmatpush1.bf16.msra.mxu1 (!%p194_p2), %v600_v1  ;;  %v609_v8 = vld [vmem:[%s727_s1 + $0x30] ss:$8 sps:$4 sm:$0xff] (!%p194_p2)   ;;  %vm322_vm0 = vcmask (!%p194_p2), 523264   ;;  %v273_v16 = vshrl.u32 (!%p194_p2), %v272_v15, 7  ;;  %v270_v18 = vld [vmem:[%s728_s2] sm:$0x3] (!%p194_p2) }
   0x9   : > { %331 = vmatprep.subr.bf16.mxu0 (!%p194_p2), %v601_v3  ;;  %581 = vmatprep.subr.bf16.mxu1 (!%p194_p2), %v601_v3  ;;  %vm398_vm1 = vcmask (!%p194_p2), 519168   ;;  %s619_s27 = smov (!%p194_p2), 64  }
   0xa   : > { %v274_v17 = vsub.s32 (!%p194_p2), 0, %v273_v16  ;;  %v278_v19 = vsub.s32 (!%p194_p2), 1, %v273_v16 }
   0xc   : > { %332 = vmatpush1.bf16.msra.mxu0 (!%p194_p2), %v603_v4  ;;  %585 = vmatpush1.bf16.msra.mxu1 (!%p194_p2), %v603_v4  ;;  %v275_v20 = vrot.slane (!%p194_p2), %v270_v18, %v274_v17  ;;  %v279_v21 = vrot.slane (!%p194_p2), %v270_v18, %v278_v19 }
   0xd   : > { %s733_s22 = smov (!%p232_p3, %s552_s22), 7  ;;  %333 = vmatprep.subr.bf16.mxu0 %v604_v5  ;;  %582 = vmatprep.subr.bf16.mxu1 %v604_v5 }
   0xe   : > { %s553_s6 = sshll.u32 %s733_s22, 3  ;;  %s555_s19 = sshll.u32 %s733_s22, 2 }
   0xf   : > { %s235_s11 = scalar_lea.vmem %s726_s0, %s553_s6  ;;  %s253_s23 = scalar_lea.vmem %s731_s5, %s553_s6 }
  0x10   : > { %v256_v9 = vld [vmem:[%s235_s11] sm:$0xff]  ;;  %334 = vmatpush1.bf16.msra.mxu0 %v606_v6  ;;  %586 = vmatpush1.bf16.msra.mxu1 %v606_v6  ;;  %v257_v10 = vld [vmem:[%s235_s11 + $0x8] sm:$0xff]  ;;  %v258_v11 = vld [vmem:[%s235_s11 + $0x10] sm:$0xff]  ;;  %s241_s26 = scalar_lea.vmem %s729_s3, %s555_s19  ;;  %s247_s30 = scalar_lea.vmem %s730_s4, %s555_s19 }
  0x11   : > { %v259_v12 = vld [vmem:[%s235_s11 + $0x18] sm:$0xff]  ;;  %335 = vmatprep.subr.bf16.mxu0 %v607_v7  ;;  %583 = vmatprep.subr.bf16.mxu1 %v607_v7  ;;  %v260_v13 = vpack.c.bf16 %v257_v10, %v256_v9 }
  0x12   : > { %v261_v14 = vpack.c.bf16 %v259_v12, %v258_v11 }
  0x14   : > { %336 = vmatpush1.bf16.msra.mxu0 %v609_v8  ;;  %587 = vmatpush1.bf16.msra.mxu1 %v609_v8 }
  0x17   : > { %568 = vmatmul.mubr.msk.bf16.vlgmr.msra.gmra.mrb[0].mxu0 %vm322_vm0, %v260_v13  ;;  %569 = vmatmul.mubr.msk.bf16.vlgmr.msra.gmra.mrb[0].mxu1 %vm322_vm0, %v261_v14 }
  0xea   : > { %v363_v22 = vpop.f32.mrb[0].mxu0  ;;  %v373_v23 = vpop.f32.mrb[0].mxu1 }
  0xeb   : > { %v364_v24 = vadd.f32 %v363_v22, %v275_v20  ;;  %v374_v25 = vadd.f32 %v373_v23, %v275_v20  ;;  %v365_v26 = vpop.f32.mrb[1].mxu0  ;;  %v375_v27 = vpop.f32.mrb[1].mxu1 }
  0xec   : > { %v366_v28 = vadd.f32 %v365_v26, %v279_v21  ;;  %v367_v29 = vpop.f32.mrb[2].mxu0  ;;  %v377_v30 = vpop.f32.mrb[2].mxu1  ;;  %v376_v38 = vadd.f32 %v375_v27, %v279_v21 }
  0xed   : > { %v576_v31 = vpack.c.bf16 %v364_v24, %v364_v24  ;;  %v578_v32 = vpack.c.bf16 %v374_v25, %v374_v25  ;;  %v368_v33 = vadd.f32 %v367_v29, %v275_v20  ;;  %v378_v34 = vadd.f32 %v377_v30, %v275_v20  ;;  %v369_v35 = vpop.f32.mrb[3].mxu0  ;;  %v379_v36 = vpop.f32.mrb[3].mxu1 }
  0xee   : > { %419 = vst.msk [vmem:[%s253_s23] sm:$0xff] %vm322_vm0, %v366_v28  ;;  %v370_v37 = vadd.f32 %v369_v35, %v279_v21  ;;  %v380_v40 = vadd.f32 %v379_v36, %v279_v21  ;;  %421 = vst.msk [vmem:[%s253_s23 + $0x10] sm:$0xff] %vm322_vm0, %v376_v38 }
  0xef   : > { %399 = vst.msk [vmem:[%s241_s26] sm:$0xf] %vm398_vm1, %v576_v31  ;;  %v577_v39 = vpack.c.bf16 %v368_v33, %v368_v33  ;;  %407 = vrot.lane.b32.xlu1 %v578_v32, %s619_s27  ;;  %403 = vrot.lane.b32.xlu0 %v576_v31, %s619_s27  ;;  %v579_v41 = vpack.c.bf16 %v378_v34, %v378_v34  ;;  %401 = vst.msk [vmem:[%s241_s26 + $0x8] sm:$0xf] %vm398_vm1, %v578_v32 }
  0xf0   : > { %420 = vst.msk [vmem:[%s253_s23 + $0x8] sm:$0xff] %vm322_vm0, %v370_v37  ;;  %422 = vst.msk [vmem:[%s253_s23 + $0x18] sm:$0xff] %vm322_vm0, %v380_v40 }
  0xf1   : > { %400 = vst.msk [vmem:[%s241_s26 + $0x4] sm:$0xf] %vm398_vm1, %v577_v39  ;;  %402 = vst.msk [vmem:[%s241_s26 + $0xc] sm:$0xf] %vm398_vm1, %v579_v41 }
  0xf3   : > { %409 = vrot.lane.b32.xlu1 %v579_v41, %s619_s27  ;;  %405 = vrot.lane.b32.xlu0 %v577_v39, %s619_s27 }
 0x161   : > { %v408_v42 = vpop.permute.xlu1 %407  ;;  %v404_v43 = vpop.permute.xlu0 %403 }
 0x162   : > { %415 = vst.msk [vmem:[%s247_s30] sm:$0xf] %vm398_vm1, %v404_v43  ;;  %417 = vst.msk [vmem:[%s247_s30 + $0x8] sm:$0xf] %vm398_vm1, %v408_v42 }
 0x165   : > { %v406_v44 = vpop.permute.xlu0 %405  ;;  %v410_v45 = vpop.permute.xlu1 %409 }
 0x166   : > { %416 = vst.msk [vmem:[%s247_s30 + $0x4] sm:$0xf] %vm398_vm1, %v406_v44  ;;  %418 = vst.msk [vmem:[%s247_s30 + $0xc] sm:$0xf] %vm398_vm1, %v410_v45 }
 0x167 PF: > { %s16_s18 = sadd.s32 1, %s616_s18  }
 0x168   : > { %p13_p4 = scmp.ge.s32.totalorder %s16_s18, 4  }
 0x16a   :  { %15 = sbr.rel (!%p13_p4) target bundleno = 1 (0x1), region = 86 }

// kernel: prob_sparse_self_attention.4
= control target key start
LH: loop header
LB: loop body
LE: loop exit
PB: predicated region body
PF: predicated region fallthrough
CT: control target
= control target key end

     0   :  { %s1569_s12 = smov 0   ;;  %s2072_s0 = inlined_call_operand.vmem [shape: bf16[2,32,64], index: 0, kind: input, shape index: {}]   ;;  %s2073_s1 = inlined_call_operand.vmem [shape: bf16[2,32,64], index: 1, kind: input, shape index: {}]   ;;  %s2074_s2 = inlined_call_operand.vmem [shape: bf16[32,32], index: 2, kind: input, shape index: {}]   ;;  %s2075_s3 = inlined_call_operand.vmem [shape: f32[2,32,8], index: 3, kind: output, shape index: {}]  }
   0x1 LB: > { %s1345_s13 = sadd.s32 4294967295, %s1539_s12   ;;  %p1349_p0 = scmp.ge.s32.totalorder %s1539_s12, 1  ;;  %s1539_s12 = sphi %s1569_s12, %s13_s12  }
   0x2   : > { %p147_p1 = scmp.lt.s32.totalorder %s1539_s12, 3 }
   0x4   : > { %p148_p2 = pnand %p1349_p0, %p147_p1 }
   0x5   : > { %p176_p3 = scmp.lt.s32.totalorder (!%p148_p2), %s1345_s13, 1  ;;  %v1580_v0 = vld [vmem:[%s2074_s2] sm:$0xf] (!%p148_p2)  ;;  %v1585_v1 = vld [vmem:[%s2074_s2 + $0x4] sm:$0xf] (!%p148_p2)  ;;  %vm232_vm0 = vcmask (!%p148_p2), 261120  }
   0x6   : > { %151 = sbr.rel (%p148_p2) target bundleno = 1311 (0x51f), region = 32  ;;  %v1356_v2 = vcombine.low (!%p148_p2), %v1580_v0, %v1585_v1  ;;  %vm306_vm1 = vcmask (!%p148_p2), 64512   ;;  %v1608_v8 = vld [vmem:[%s2074_s2 + $0x8] sm:$0xf] (!%p148_p2)  ;;  %v1613_v9 = vld [vmem:[%s2074_s2 + $0xc] sm:$0xf] (!%p148_p2) }
   0x7   : > { %s1541_s29 = smov (!%p148_p2), 120   ;;  %v1357_v10 = vcombine.low (!%p148_p2), %v1608_v8, %v1613_v9  ;;  %s1542_s30 = smov (!%p148_p2), 112   ;;  %vm206_vm2 = vcmp.gt.bf16.partialorder (!%p148_p2), %v1580_v0, 0  ;;  %vm207_vm3 = vcmp.gt.bf16.partialorder (!%p148_p2), %v1585_v1, 0  ;;  %vm208_vm6 = vcmp.gt.bf16.partialorder (!%p148_p2), %v1608_v8, 0 }
   0x8   : > { %1425 = vmatprep.mubr.msk.bf16.mxu0 (!%p148_p2), %vm232_vm0, %v1356_v2  ;;  %s1543_s4 = smov (!%p148_p2), 88   ;;  %s1544_s5 = smov (!%p148_p2), 96   ;;  %vm209_vm7 = vcmp.gt.bf16.partialorder (!%p148_p2), %v1613_v9, 0  ;;  %vm1239_vm10 = vcmask (!%p148_p2), 7168   ;;  %vm1244_vm11 = vcmask (!%p148_p2), 15360   ;;  %vm1249_vm12 = vcmask (!%p148_p2), 23552  }
   0x9   : > { %s1545_s6 = smov (!%p148_p2), 80   ;;  %s1546_s7 = smov (!%p148_p2), 104   ;;  %vm1254_vm13 = vcmask (!%p148_p2), 31744   ;;  %vm1259_vm14 = vcmask (!%p148_p2), 39936   ;;  %vm1264_vm15 = vcmask (!%p148_p2), 48128  }
   0xa   : > { %s1547_s8 = smov (!%p148_p2), 72  }
   0xd   : > { %s2085_s13 = smov (!%p176_p3, %s1345_s13), 1 }
   0xe   : > { %s1382_s18 = sshll.u32 %s2085_s13, 4  ;;  %s1384_s9 = sshll.u32 %s2085_s13, 5 }
   0xf   : > { %s185_s21 = scalar_lea.vmem %s2073_s1, %s1382_s18  ;;  %s180_s24 = scalar_lea.vmem %s2072_s0, %s1382_s18 }
  0x10   : > { %v1525_v3 = vld [vmem:[%s185_s21] sm:$0xff]   ;;  %v1526_v4 = vld [vmem:[%s185_s21 + $0x8] sm:$0xff]   ;;  %s190_s14 = scalar_lea.vmem %s2075_s3, %s1384_s9 }
  0x11   : > { %1421 = vmatprep.subr.bf16.mxu0 %v1525_v3  ;;  %v1599_v5 = vld [vmem:[%s180_s24 + $0x8] sm:$0xff]   ;;  %v1601_v6 = vld [vmem:[%s180_s24] sm:$0xff]   ;;  %1493 = vmatprep.subr.msk.bf16.mxu1 %vm306_vm1, %v1525_v3  ;;  %v314_v7 = vsel %vm306_vm1, %v1525_v3, 0  ;;  %v317_v11 = vsel %vm306_vm1, %v1526_v4, 0 }
  0x12   : > { %1422 = vmatpush3.bf16.msra.mxu0 %v1525_v3  ;;  %1430 = vmatpush3.bf16.xpose.msra.mxu1 %v314_v7  ;;  %v290_v54 = vunpack.c.l.bf16 %v1599_v5  ;;  %v291_v61 = vunpack.c.h.bf16 %v1599_v5  ;;  %v288_v7 = vunpack.c.l.bf16 %v1601_v6 }
  0x13   : > { %1423 = vmatprep.subr.bf16.mxu0 %v1526_v4  ;;  %1494 = vmatprep.subr.msk.bf16.mxu1 %vm306_vm1, %v1526_v4 }
  0x14   : > { %418 = vrot.lane.b32.xlu1 %v1599_v5, %s1541_s29  ;;  %416 = vrot.lane.b32.xlu0 %v1601_v6, %s1541_s29 }
  0x15   : > { %1433 = vmatprep.mubr.msk.bf16.mxu1 %vm306_vm1, %v1601_v6 }
  0x16   : > { %1424 = vmatpush3.bf16.msra.mxu0 %v1526_v4 }
  0x18   : > { %420 = vrot.lane.b32.xlu1 %v1525_v3, %s1541_s29  ;;  %537 = vrot.lane.b32.xlu0 %v1601_v6, %s1542_s30 }
  0x19   : > { %1426 = vmatmul.mubr.msk.bf16.vlgmr.msra.gmra.mrb[0].mxu0 %vm232_vm0, %v1357_v10 }
  0x1a   : > { %1432 = vmatpush3.bf16.xpose.msra.mxu1 %v317_v11 }
  0x1c   : > { %422 = vrot.lane.b32.xlu1 %v1526_v4, %s1541_s29  ;;  %894 = vrot.lane.b32.xlu0 %v1526_v4, %s1543_s4 }
  0x20   : > { %539 = vrot.lane.b32.xlu1 %v1599_v5, %s1542_s30  ;;  %771 = vrot.lane.b32.xlu0 %v1601_v6, %s1544_s5 }
  0x21   : > { %1434 = vmatmul.mubr.msk.bf16.vlgmr.msra.gmra.mrb[0].mxu1 %vm306_vm1, %v1599_v5 }
  0x24   : > { %541 = vrot.lane.b32.xlu1 %v1525_v3, %s1542_s30  ;;  %1009 = vrot.lane.b32.xlu0 %v1525_v3, %s1545_s6 }
  0x28   : > { %543 = vrot.lane.b32.xlu1 %v1526_v4, %s1542_s30  ;;  %773 = vrot.lane.b32.xlu0 %v1599_v5, %s1544_s5 }
  0x2c   : > { %658 = vrot.lane.b32.xlu1 %v1525_v3, %s1546_s7  ;;  %888 = vrot.lane.b32.xlu0 %v1601_v6, %s1543_s4 }
  0x30   : > { %660 = vrot.lane.b32.xlu1 %v1526_v4, %s1546_s7  ;;  %890 = vrot.lane.b32.xlu0 %v1599_v5, %s1543_s4 }
  0x34   : > { %775 = vrot.lane.b32.xlu1 %v1525_v3, %s1544_s5  ;;  %1011 = vrot.lane.b32.xlu0 %v1526_v4, %s1545_s6 }
  0x38   : > { %654 = vrot.lane.b32.xlu1 %v1601_v6, %s1546_s7  ;;  %1128 = vrot.lane.b32.xlu0 %v1526_v4, %s1547_s8 }
  0x3c   : > { %892 = vrot.lane.b32.xlu1 %v1525_v3, %s1543_s4  ;;  %1005 = vrot.lane.b32.xlu0 %v1601_v6, %s1545_s6 }
  0x40   : > { %656 = vrot.lane.b32.xlu1 %v1599_v5, %s1546_s7  ;;  %1122 = vrot.lane.b32.xlu0 %v1601_v6, %s1547_s8 }
  0x44   : > { %777 = vrot.lane.b32.xlu1 %v1526_v4, %s1544_s5 }
  0x48   : > { %1126 = vrot.lane.b32.xlu1 %v1525_v3, %s1547_s8 }
  0x4c   : > { %1007 = vrot.lane.b32.xlu1 %v1599_v5, %s1545_s6 }
  0x50   : > { %1124 = vrot.lane.b32.xlu1 %v1599_v5, %s1547_s8  ;;  %v1548_v5 = vmov 0  }
  0x51   : > { %v368_v11 = vsel %vm206_vm2, 65537, %v1548_v5 }
  0x86   : > { %v419_v12 = vpop.permute.xlu1 %418  ;;  %v417_v13 = vpop.permute.xlu0 %416 }
  0x87   : > { %1441 = vmatprep.mubr.msk.bf16.mxu0 %vm306_vm1, %v417_v13  ;;  %v372_v13 = vunpack.c.l.b16 %v368_v11 }
  0x89   : > { %vm1735_vm4 = vcmp.ne.s32.totalorder %v372_v13, 0 }
  0x8a   : > { %v421_v14 = vpop.permute.xlu1 %420  ;;  %v538_v15 = vpop.permute.xlu0 %537 }
  0x8b   : > { %1495 = vmatprep.subr.msk.bf16.mxu0 %vm306_vm1, %v421_v14  ;;  %v431_v16 = vsel %vm306_vm1, %v421_v14, 0  ;;  %1449 = vmatprep.mubr.msk.bf16.mxu1 %vm306_vm1, %v538_v15  ;;  %v369_v14 = vsel %vm207_vm3, 65537, %v1548_v5 }
  0x8c   : > { %1438 = vmatpush3.bf16.xpose.msra.mxu0 %v431_v16  ;;  %v373_v15 = vunpack.c.l.b16 %v369_v14 }
  0x8e   : > { %v423_v17 = vpop.permute.xlu1 %422  ;;  %v895_v34 = vpop.permute.xlu0 %894  ;;  %vm1741_vm5 = vcmp.ne.s32.totalorder %v373_v15, 0 }
  0x8f   : > { %1496 = vmatprep.subr.msk.bf16.mxu0 %vm306_vm1, %v423_v17  ;;  %v434_v18 = vsel %vm306_vm1, %v423_v17, 0  ;;  %v906_v38 = vsel %vm306_vm1, %v895_v34, 0 }
  0x92   : > { %v540_v19 = vpop.permute.xlu1 %539  ;;  %v772_v37 = vpop.permute.xlu0 %771 }
  0x94   : > { %1440 = vmatpush3.bf16.xpose.msra.mxu0 %v434_v18  ;;  %v289_v18 = vunpack.c.h.bf16 %v1601_v6  ;;  %v370_v6 = vsel %vm208_vm6, 65537, %v1548_v5 }
  0x96   : > { %v542_v20 = vpop.permute.xlu1 %541  ;;  %v1010_v40 = vpop.permute.xlu0 %1009 }
  0x97   : > { %1497 = vmatprep.subr.msk.bf16.mxu1 %vm306_vm1, %v542_v20  ;;  %v552_v21 = vsel %vm306_vm1, %v542_v20, 0  ;;  %v1020_v41 = vsel %vm306_vm1, %v1010_v40, 0 }
  0x98   : > { %1446 = vmatpush3.bf16.xpose.msra.mxu1 %v552_v21 }
  0x9a   : > { %v544_v22 = vpop.permute.xlu1 %543  ;;  %v774_v42 = vpop.permute.xlu0 %773 }
  0x9b   : > { %1498 = vmatprep.subr.msk.bf16.mxu1 %vm306_vm1, %v544_v22  ;;  %1442 = vmatmul.mubr.msk.bf16.vlgmr.msra.gmra.mrb[4].mxu0 %vm306_vm1, %v419_v12  ;;  %v555_v23 = vsel %vm306_vm1, %v544_v22, 0 }
  0x9e   : > { %v659_v24 = vpop.permute.xlu1 %658  ;;  %v889_v43 = vpop.permute.xlu0 %888 }
  0x9f   : > { %1499 = vmatprep.subr.msk.bf16.mxu0 %vm306_vm1, %v659_v24  ;;  %v669_v25 = vsel %vm306_vm1, %v659_v24, 0  ;;  %v371_v24 = vsel %vm209_vm7, 65537, %v1548_v5 }
  0xa0   : > { %1448 = vmatpush3.bf16.xpose.msra.mxu1 %v555_v23  ;;  %1454 = vmatpush3.bf16.xpose.msra.mxu0 %v669_v25  ;;  %v374_v23 = vunpack.c.l.b16 %v370_v6  ;;  %v375_v25 = vunpack.c.l.b16 %v371_v24 }
  0xa2   : > { %v661_v26 = vpop.permute.xlu1 %660  ;;  %v891_v45 = vpop.permute.xlu0 %890  ;;  %vm1760_vm8 = vcmp.ne.s32.totalorder %v374_v23, 0  ;;  %vm1766_vm9 = vcmp.ne.s32.totalorder %v375_v25, 0 }
  0xa3   : > { %1500 = vmatprep.subr.msk.bf16.mxu0 %vm306_vm1, %v661_v26  ;;  %v672_v27 = vsel %vm306_vm1, %v661_v26, 0 }
  0xa6   : > { %v776_v28 = vpop.permute.xlu1 %775  ;;  %v1012_v46 = vpop.permute.xlu0 %1011 }
  0xa7   : > { %1450 = vmatmul.mubr.msk.bf16.vlgmr.msra.gmra.mrb[4].mxu1 %vm306_vm1, %v540_v19  ;;  %1501 = vmatprep.subr.msk.bf16.mxu1 %vm306_vm1, %v776_v28  ;;  %v786_v29 = vsel %vm306_vm1, %v776_v28, 0  ;;  %v1023_v47 = vsel %vm306_vm1, %v1012_v46, 0 }
  0xa8   : > { %1456 = vmatpush3.bf16.xpose.msra.mxu0 %v672_v27  ;;  %1462 = vmatpush3.bf16.xpose.msra.mxu1 %v786_v29 }
  0xa9   : > { %1465 = vmatprep.mubr.msk.bf16.mxu1 %vm306_vm1, %v772_v37 }
  0xaa   : > { %v655_v30 = vpop.permute.xlu1 %654  ;;  %v1129_v48 = vpop.permute.xlu0 %1128 }
  0xab   : > { %1457 = vmatprep.mubr.msk.bf16.mxu0 %vm306_vm1, %v655_v30  ;;  %v1140_v49 = vsel %vm306_vm1, %v1129_v48, 0 }
  0xae   : > { %v893_v31 = vpop.permute.xlu1 %892  ;;  %v1006_v51 = vpop.permute.xlu0 %1005 }
  0xaf   : > { %1503 = vmatprep.subr.msk.bf16.mxu0 %vm306_vm1, %v893_v31  ;;  %v903_v32 = vsel %vm306_vm1, %v893_v31, 0 }
  0xb2   : > { %v657_v33 = vpop.permute.xlu1 %656  ;;  %v1123_v52 = vpop.permute.xlu0 %1122 }
  0xb3   : > { %1458 = vmatmul.mubr.msk.bf16.vlgmr.msra.gmra.mrb[8].mxu0 %vm306_vm1, %v657_v33 }
  0xb4   : > { %1470 = vmatpush3.bf16.xpose.msra.mxu0 %v903_v32  ;;  %1473 = vmatprep.mubr.msk.bf16.mxu0 %vm306_vm1, %v889_v43 }
  0xb5   : > { %1504 = vmatprep.subr.msk.bf16.mxu0 %vm306_vm1, %v895_v34 }
  0xb6   : > { %v778_v35 = vpop.permute.xlu1 %777 }
  0xb7   : > { %v789_v36 = vsel %vm306_vm1, %v778_v35, 0  ;;  %1502 = vmatprep.subr.msk.bf16.mxu1 %vm306_vm1, %v778_v35 }
  0xb8   : > { %1464 = vmatpush3.bf16.xpose.msra.mxu1 %v789_v36 }
  0xb9   : > { %1505 = vmatprep.subr.msk.bf16.mxu1 %vm306_vm1, %v1010_v40 }
  0xba   : > { %v1127_v39 = vpop.permute.xlu1 %1126 }
  0xbb   : > { %v1137_v44 = vsel %vm306_vm1, %v1127_v39, 0 }
  0xbc   : > { %1472 = vmatpush3.bf16.xpose.msra.mxu0 %v906_v38 }
  0xbd   : > { %1507 = vmatprep.subr.msk.bf16.mxu0 %vm306_vm1, %v1127_v39 }
  0xbe   : > { %v1008_v50 = vpop.permute.xlu1 %1007 }
  0xbf   : > { %1466 = vmatmul.mubr.msk.bf16.vlgmr.msra.gmra.mrb[8].mxu1 %vm306_vm1, %v774_v42 }
  0xc0   : > { %1478 = vmatpush3.bf16.xpose.msra.mxu1 %v1020_v41  ;;  %1481 = vmatprep.mubr.msk.bf16.mxu1 %vm306_vm1, %v1006_v51 }
  0xc1   : > { %1506 = vmatprep.subr.msk.bf16.mxu1 %vm306_vm1, %v1012_v46 }
  0xc2   : > { %v1125_v53 = vpop.permute.xlu1 %1124 }
  0xc3   : > { %1474 = vmatmul.mubr.msk.bf16.vlgmr.msra.gmra.mrb[12].mxu0 %vm306_vm1, %v891_v45 }
  0xc4   : > { %1486 = vmatpush3.bf16.xpose.msra.mxu0 %v1137_v44  ;;  %1489 = vmatprep.mubr.msk.bf16.mxu0 %vm306_vm1, %v1123_v52 }
  0xc5   : > { %1508 = vmatprep.subr.msk.bf16.mxu0 %vm306_vm1, %v1129_v48 }
  0xc8   : > { %1480 = vmatpush3.bf16.xpose.msra.mxu1 %v1023_v47 }
  0xcc   : > { %1488 = vmatpush3.bf16.xpose.msra.mxu0 %v1140_v49 }
  0xcf   : > { %1482 = vmatmul.mubr.msk.bf16.vlgmr.msra.gmra.mrb[12].mxu1 %vm306_vm1, %v1008_v50 }
  0xd3   : > { %1490 = vmatmul.mubr.msk.bf16.vlgmr.msra.gmra.mrb[16].mxu0 %vm306_vm1, %v1125_v53 }
  0xec   : > { %v1427_v55 = vpop.f32.mrb[0].mxu0 }
  0xed   : > { %v1709_v56 = vmul.f32 %v1427_v55, %v290_v54  ;;  %v273_v57 = vpop.f32.mrb[1].mxu0 }
  0xee   : > { %v1428_v58 = vpop.f32.mrb[2].mxu0  ;;  %v1725_v10 = vmul.f32 %v288_v7, %v273_v57 }
  0xef   : > { %v276_v59 = vpop.f32.mrb[3].mxu0  ;;  %509 = vrot.lane.b32.xlu1 %v1709_v56, %s1541_s29  ;;  %v402_v60 = vsel %vm306_vm1, %v1709_v56, 0.0  ;;  %v1718_v63 = vmul.f32 %v1428_v58, %v291_v61 }
  0xf0   : > { %403 = vadd.xlane.f32.xlu0 %v402_v60  ;;  %v396_v1 = vsel %vm306_vm1, %v1725_v10, 0.0  ;;  %v1751_v21 = vmul.f32 %v289_v18, %v276_v59 }
  0xf1   : > { %v405_v12 = vsel %vm306_vm1, %v1718_v63, 0.0 }
  0xf2   : > { %v399_v8 = vsel %vm306_vm1, %v1751_v21, 0.0 }
  0xf3   : > { %626 = vrot.lane.b32.xlu1 %v1709_v56, %s1542_s30 }
  0xf4   : > { %v1435_v62 = vpop.f32.mrb[0].mxu1 }
  0xf5   : > { %v353_v2 = vpop.f32.mrb[1].mxu1  ;;  %v382_v27 = vsel %vm1760_vm8, %v1435_v62, -inf }
  0xf6   : > { %v1436_v3 = vpop.f32.mrb[2].mxu1  ;;  %v380_v17 = vsel %vm1735_vm4, %v353_v2, -inf  ;;  %v390_v9 = vsel %vm232_vm0, %v382_v27, -inf }
  0xf7   : > { %511 = vrot.lane.b32.xlu1 %v1718_v63, %s1541_s29  ;;  %v356_v4 = vpop.f32.mrb[3].mxu1  ;;  %v384_v19 = vsel %vm232_vm0, %v380_v17, -inf  ;;  %v383_v29 = vsel %vm1766_vm9, %v1436_v3, -inf }
  0xf8   : > { %v381_v20 = vsel %vm1741_vm5, %v356_v4, -inf  ;;  %v393_v30 = vsel %vm232_vm0, %v383_v29, -inf }
  0xf9   : > { %v387_v22 = vsel %vm232_vm0, %v381_v20, -inf }
  0xfb   : > { %628 = vrot.lane.b32.xlu1 %v1718_v63, %s1542_s30 }
 0x106   : > { %505 = vrot.lane.b32.xlu0 %v1725_v10, %s1541_s29 }
 0x10a   : > { %622 = vrot.lane.b32.xlu0 %v1725_v10, %s1542_s30 }
 0x11f   : > { %406 = vadd.xlane.f32.xlu1 %v405_v12 }
 0x129   : > { %397 = vadd.xlane.f32.xlu0 %v396_v1 }
 0x12d   : > { %385 = vmax.xlane.f32.xlu0 %v384_v19 }
 0x130   : > { %507 = vrot.lane.b32.xlu1 %v1751_v21, %s1541_s29 }
 0x131   : > { %388 = vmax.xlane.f32.xlu0 %v387_v22 }
 0x134   : > { %624 = vrot.lane.b32.xlu1 %v1751_v21, %s1542_s30 }
 0x158   : > { %400 = vadd.xlane.f32.xlu1 %v399_v8 }
 0x15c   : > { %391 = vmax.xlane.f32.xlu1 %v390_v9 }
 0x160   : > { %394 = vmax.xlane.f32.xlu1 %v393_v30 }
 0x161   : > { %v510_v31 = vpop.permute.xlu1 %509 }
 0x162   : > { %v523_v32 = vsel %vm306_vm1, %v510_v31, 0.0 }
 0x163   : > { %524 = vadd.xlane.f32.xlu0 %v523_v32 }
 0x165   : > { %v627_v33 = vpop.permute.xlu1 %626 }
 0x166   : > { %v640_v34 = vsel %vm306_vm1, %v627_v33, 0.0 }
 0x167   : > { %641 = vadd.xlane.f32.xlu0 %v640_v34 }
 0x169   : > { %v512_v35 = vpop.permute.xlu1 %511 }
 0x16a   : > { %v526_v57 = vsel %vm306_vm1, %v512_v35, 0.0 }
 0x16d   : > { %v629_v36 = vpop.permute.xlu1 %628 }
 0x16e   : > { %v643_v37 = vsel %vm306_vm1, %v629_v36, 0.0  ;;  %v1443_v38 = vpop.f32.mrb[4].mxu0 }
 0x16f   : > { %644 = vadd.xlane.f32.xlu1 %v643_v37  ;;  %v470_v39 = vpop.f32.mrb[5].mxu0  ;;  %v487_v54 = vsel %vm1760_vm8, %v1443_v38, -inf }
 0x170   : > { %v1444_v40 = vpop.f32.mrb[6].mxu0  ;;  %v495_v58 = vsel %vm232_vm0, %v487_v54, -inf  ;;  %v485_v61 = vsel %vm1735_vm4, %v470_v39, -inf }
 0x171   : > { %v1779_v41 = vpop.f32.mrb[7].mxu0  ;;  %v489_v62 = vsel %vm232_vm0, %v485_v61, -inf  ;;  %v488_v4 = vsel %vm1766_vm9, %v1444_v40, -inf }
 0x172   : > { %v498_v5 = vsel %vm232_vm0, %v488_v4, -inf  ;;  %v486_v33 = vsel %vm1741_vm5, %v1779_v41, -inf }
 0x173   : > { %v492_v36 = vsel %vm232_vm0, %v486_v33, -inf }
 0x17a   : > { %v1451_v42 = vpop.f32.mrb[4].mxu1 }
 0x17b   : > { %v591_v43 = vpop.f32.mrb[5].mxu1  ;;  %v608_v59 = vsel %vm1760_vm8, %v1451_v42, -inf }
 0x17c   : > { %v1452_v44 = vpop.f32.mrb[6].mxu1  ;;  %v616_v60 = vsel %vm232_vm0, %v608_v59, -inf  ;;  %v606_v2 = vsel %vm1735_vm4, %v591_v43, -inf }
 0x17d   : > { %v1781_v45 = vpop.xlane.xlu0 %403  ;;  %v1783_v46 = vpop.f32.mrb[7].mxu1  ;;  %v610_v3 = vsel %vm232_vm0, %v606_v2, -inf  ;;  %v609_v7 = vsel %vm1766_vm9, %v1452_v44, -inf }
 0x17e   : > { %v619_v11 = vsel %vm232_vm0, %v609_v7, -inf  ;;  %v607_v37 = vsel %vm1741_vm5, %v1783_v46, -inf }
 0x17f   : > { %v613_v40 = vsel %vm232_vm0, %v607_v37, -inf }
 0x181   : > { %v506_v47 = vpop.permute.xlu0 %505 }
 0x182   : > { %v517_v48 = vsel %vm306_vm1, %v506_v47, 0.0 }
 0x183   : > { %518 = vadd.xlane.f32.xlu0 %v517_v48 }
 0x185   : > { %v623_v49 = vpop.permute.xlu0 %622 }
 0x186   : > { %v634_v50 = vsel %vm306_vm1, %v623_v49, 0.0  ;;  %v1787_v51 = vpop.f32.mrb[8].mxu0 }
 0x187   : > { %635 = vadd.xlane.f32.xlu0 %v634_v50  ;;  %v1789_v52 = vpop.f32.mrb[9].mxu0  ;;  %v725_v41 = vsel %vm1760_vm8, %v1787_v51, -inf  ;;  %v410_v51 = vmul.f32 0.03125, %v1781_v45 }
 0x188   : > { %v1791_v53 = vpop.f32.mrb[10].mxu0  ;;  %v733_v42 = vsel %vm232_vm0, %v725_v41, -inf  ;;  %v723_v43 = vsel %vm1735_vm4, %v1789_v52, -inf }
 0x189   : > { %v1795_v55 = vpop.f32.mrb[11].mxu0  ;;  %v727_v44 = vsel %vm232_vm0, %v723_v43, -inf  ;;  %v726_v61 = vsel %vm1766_vm9, %v1791_v53, -inf }
 0x18a   : > { %v724_v46 = vsel %vm1741_vm5, %v1795_v55, -inf  ;;  %v736_v55 = vsel %vm232_vm0, %v726_v61, -inf }
 0x18b   : > { %527 = vadd.xlane.f32.xlu0 %v526_v57  ;;  %v730_v47 = vsel %vm232_vm0, %v724_v46, -inf }
 0x18f   : > { %496 = vmax.xlane.f32.xlu0 %v495_v58 }
 0x192   : > { %v1814_v12 = vpop.f32.mrb[8].mxu1 }
 0x193   : > { %617 = vmax.xlane.f32.xlu0 %v616_v60  ;;  %v1816_v13 = vpop.f32.mrb[9].mxu1 }
 0x194   : > { %v1818_v14 = vpop.f32.mrb[10].mxu1 }
 0x195   : > { %v1820_v15 = vpop.f32.mrb[11].mxu1 }
 0x196   : > { %v1822_v17 = vpop.f32.mrb[12].mxu0 }
 0x197   : > { %490 = vmax.xlane.f32.xlu0 %v489_v62  ;;  %v1826_v18 = vpop.f32.mrb[13].mxu0 }
 0x198   : > { %v1830_v22 = vpop.f32.mrb[14].mxu0 }
 0x199   : > { %v1834_v23 = vpop.f32.mrb[15].mxu0 }
 0x19b   : > { %611 = vmax.xlane.f32.xlu0 %v610_v3 }
 0x19f   : > { %499 = vmax.xlane.f32.xlu0 %v498_v5 }
 0x1a2   : > { %v1824_v1 = vpop.f32.mrb[12].mxu1 }
 0x1a3   : > { %620 = vmax.xlane.f32.xlu0 %v619_v11  ;;  %v1828_v19 = vpop.f32.mrb[13].mxu1 }
 0x1a4   : > { %v1832_v6 = vpop.f32.mrb[14].mxu1 }
 0x1a5   : > { %v1836_v24 = vpop.f32.mrb[15].mxu1 }
 0x1a6   : > { %v1838_v25 = vpop.f32.mrb[16].mxu0 }
 0x1a7   : > { %v1840_v27 = vpop.f32.mrb[17].mxu0 }
 0x1a8   : > { %v1842_v9 = vpop.f32.mrb[18].mxu0 }
 0x1a9   : > { %v1845_v30 = vpop.f32.mrb[19].mxu0  ;;  %v1194_v16 = vsel %vm1766_vm9, %v1842_v9, -inf }
 0x1ac   : > { %v407_v20 = vpop.xlane.xlu1 %406 }
 0x1ad   : > { %v411_v52 = vmul.f32 0.03125, %v407_v20 }
 0x1b0   : > { %v508_v8 = vpop.permute.xlu1 %507 }
 0x1b1   : > { %v520_v29 = vsel %vm306_vm1, %v508_v8, 0.0 }
 0x1b2   : > { %521 = vadd.xlane.f32.xlu1 %v520_v29 }
 0x1b4   : > { %v625_v31 = vpop.permute.xlu1 %624 }
 0x1b5   : > { %v637_v32 = vsel %vm306_vm1, %v625_v31, 0.0 }
 0x1b6   : > { %638 = vadd.xlane.f32.xlu1 %v637_v32  ;;  %v398_v34 = vpop.xlane.xlu0 %397 }
 0x1b7   : > { %v408_v35 = vmul.f32 0.03125, %v398_v34 }
 0x1b9   : > { %739 = vrot.lane.b32.xlu0 %v1725_v10, %s1546_s7 }
 0x1ba   : > { %493 = vmax.xlane.f32.xlu1 %v492_v36  ;;  %v386_v38 = vpop.xlane.xlu0 %385 }
 0x1bb   : > { %v412_v39 = vsub.f32 %v386_v38, %v408_v35 }
 0x1be   : > { %614 = vmax.xlane.f32.xlu1 %v613_v40  ;;  %v389_v49 = vpop.xlane.xlu0 %388 }
 0x1cf   : > { %741 = vrot.lane.b32.xlu1 %v1751_v21, %s1546_s7 }
 0x1d3   : > { %743 = vrot.lane.b32.xlu1 %v1709_v56, %s1546_s7 }
 0x1d8   : > { %734 = vmax.xlane.f32.xlu0 %v733_v42 }
 0x1dc   : > { %728 = vmax.xlane.f32.xlu0 %v727_v44 }
 0x1e0   : > { %731 = vmax.xlane.f32.xlu0 %v730_v47 }
 0x1e5   : > { %v401_v48 = vpop.xlane.xlu1 %400 }
 0x1e6   : > { %v409_v50 = vmul.f32 0.03125, %v401_v48 }
 0x1e8   : > { %v413_v54 = vsub.f32 %v389_v49, %v409_v50 }
 0x1e9   : > { %v392_v57 = vpop.xlane.xlu1 %391 }
 0x1ea   : > { %v414_v58 = vsub.f32 %v392_v57, %v410_v51 }
 0x1ed   : > { %v395_v59 = vpop.xlane.xlu1 %394 }
 0x1ee   : > { %v415_v60 = vsub.f32 %v395_v59, %v411_v52 }
 0x1f0   : > { %v525_v62 = vpop.xlane.xlu0 %524 }
 0x1f1   : > { %v531_v7 = vmul.f32 0.03125, %v525_v62 }
 0x1f4   : > { %v642_v2 = vpop.xlane.xlu0 %641 }
 0x1f5   : > { %v648_v20 = vmul.f32 0.03125, %v642_v2 }
 0x1f7   : > { %737 = vmax.xlane.f32.xlu1 %v736_v55 }
 0x1fc   : > { %v645_v42 = vpop.xlane.xlu1 %644 }
 0x1fd   : > { %v649_v46 = vmul.f32 0.03125, %v645_v42 }
 0x208   : > { %745 = vrot.lane.b32.xlu1 %v1718_v63, %s1546_s7 }
 0x210   : > { %v519_v3 = vpop.xlane.xlu0 %518 }
 0x211   : > { %v529_v31 = vmul.f32 0.03125, %v519_v3 }
 0x214   : > { %v636_v45 = vpop.xlane.xlu0 %635 }
 0x215   : > { %v646_v35 = vmul.f32 0.03125, %v636_v45 }
 0x218   : > { %v528_v4 = vpop.xlane.xlu0 %527 }
 0x219   : > { %v532_v40 = vmul.f32 0.03125, %v528_v4 }
 0x21c   : > { %v497_v5 = vpop.xlane.xlu0 %496 }
 0x21d   : > { %v535_v11 = vsub.f32 %v497_v5, %v531_v7  ;;  %v841_v7 = vsel %vm1741_vm5, %v1820_v15, -inf }
 0x21f   : > { %v1242_v8 = vsel %vm1239_vm10, %v414_v58, %v535_v11  ;;  %v847_v11 = vsel %vm232_vm0, %v841_v7, -inf }
 0x220   : > { %v618_v53 = vpop.xlane.xlu0 %617 }
 0x221   : > { %v652_v29 = vsub.f32 %v618_v53, %v648_v20 }
 0x223   : > { %v1883_v32 = vsel %vm1244_vm11, %v1242_v8, %v652_v29 }
 0x224   : > { %v491_v33 = vpop.xlane.xlu0 %490 }
 0x225   : > { %v533_v34 = vsub.f32 %v491_v33, %v529_v31  ;;  %v842_v33 = vsel %vm1760_vm8, %v1814_v12, -inf }
 0x227   : > { %v1240_v36 = vsel %vm1239_vm10, %v412_v39, %v533_v34  ;;  %v850_v34 = vsel %vm232_vm0, %v842_v33, -inf }
 0x228   : > { %v612_v37 = vpop.xlane.xlu0 %611 }
 0x229   : > { %v650_v38 = vsub.f32 %v612_v37, %v646_v35 }
 0x22b   : > { %v1245_v41 = vsel %vm1244_vm11, %v1240_v36, %v650_v38 }
 0x22c   : > { %v500_v43 = vpop.xlane.xlu0 %499 }
 0x22d   : > { %v536_v44 = vsub.f32 %v500_v43, %v532_v40 }
 0x22f   : > { %v1243_v47 = vsel %vm1239_vm10, %v415_v60, %v536_v44 }
 0x230   : > { %v621_v48 = vpop.xlane.xlu0 %620 }
 0x231   : > { %v653_v49 = vsub.f32 %v621_v48, %v649_v46 }
 0x233   : > { %v1889_v50 = vsel %vm1244_vm11, %v1243_v47, %v653_v49 }
 0x234   : > { %v740_v51 = vpop.permute.xlu0 %739 }
 0x235   : > { %v751_v57 = vsel %vm306_vm1, %v740_v51, 0.0 }
 0x236   : > { %752 = vadd.xlane.f32.xlu0 %v751_v57 }
 0x23f   : > { %v522_v39 = vpop.xlane.xlu1 %521 }
 0x240   : > { %v530_v52 = vmul.f32 0.03125, %v522_v39 }
 0x243   : > { %v639_v58 = vpop.xlane.xlu1 %638 }
 0x244   : > { %v647_v55 = vmul.f32 0.03125, %v639_v58 }
 0x247   : > { %v494_v59 = vpop.xlane.xlu1 %493 }
 0x248   : > { %v534_v61 = vsub.f32 %v494_v59, %v530_v52 }
 0x24a   : > { %v1241_v62 = vsel %vm1239_vm10, %v413_v54, %v534_v61  ;;  %v843_v54 = vsel %vm1766_vm9, %v1818_v14, -inf  ;;  %v840_v14 = vsel %vm1735_vm4, %v1816_v13, -inf  ;;  %v960_v61 = vsel %vm1766_vm9, %v1830_v22, -inf }
 0x24b   : > { %v615_v2 = vpop.xlane.xlu1 %614  ;;  %v853_v8 = vsel %vm232_vm0, %v843_v54, -inf  ;;  %v844_v31 = vsel %vm232_vm0, %v840_v14, -inf }
 0x24c   : > { %v651_v3 = vsub.f32 %v615_v2, %v647_v55  ;;  %v970_v55 = vsel %vm232_vm0, %v960_v61, -inf }
 0x24e   : > { %v1246_v60 = vsel %vm1244_vm11, %v1241_v62, %v651_v3 }
 0x24f   : > { %v742_v45 = vpop.permute.xlu1 %741 }
 0x250   : > { %v754_v4 = vsel %vm306_vm1, %v742_v45, 0.0 }
 0x251   : > { %755 = vadd.xlane.f32.xlu1 %v754_v4 }
 0x253   : > { %v744_v5 = vpop.permute.xlu1 %743 }
 0x254   : > { %v757_v20 = vsel %vm306_vm1, %v744_v5, 0.0 }
 0x255   : > { %848 = vmax.xlane.f32.xlu1 %v847_v11  ;;  %758 = vadd.xlane.f32.xlu0 %v757_v20  ;;  %v957_v20 = vsel %vm1735_vm4, %v1826_v18, -inf }
 0x256   : > { %v961_v54 = vsel %vm232_vm0, %v957_v20, -inf }
 0x259   : > { %854 = vmax.xlane.f32.xlu1 %v853_v8 }
 0x265   : > { %v735_v35 = vpop.xlane.xlu0 %734 }
 0x269   : > { %v729_v36 = vpop.xlane.xlu0 %728 }
 0x26a   : > { %858 = vrot.lane.b32.xlu1 %v1751_v21, %s1544_s5 }
 0x26d   : > { %v732_v37 = vpop.xlane.xlu0 %731 }
 0x26e   : > { %860 = vrot.lane.b32.xlu1 %v1709_v56, %s1544_s5 }
 0x272   : > { %862 = vrot.lane.b32.xlu1 %v1718_v63, %s1544_s5 }
 0x284   : > { %v738_v15 = vpop.xlane.xlu1 %737 }
 0x288   : > { %v746_v53 = vpop.permute.xlu1 %745 }
 0x289   : > { %v760_v29 = vsel %vm306_vm1, %v746_v53, 0.0 }
 0x28a   : > { %761 = vadd.xlane.f32.xlu0 %v760_v29 }
 0x28e   : > { %845 = vmax.xlane.f32.xlu0 %v844_v31 }
 0x292   : > { %851 = vmax.xlane.f32.xlu0 %v850_v34 }
 0x2a8   : > { %856 = vrot.lane.b32.xlu0 %v1725_v10, %s1544_s5 }
 0x2c3   : > { %v753_v38 = vpop.xlane.xlu0 %752 }
 0x2c4   : > { %v763_v40 = vmul.f32 0.03125, %v753_v38 }
 0x2c6   : > { %v767_v13 = vsub.f32 %v729_v36, %v763_v40  ;;  %v1077_v36 = vsel %vm1766_vm9, %v1832_v6, -inf }
 0x2c8   : > { %v1922_v42 = vsel %vm1249_vm12, %v1245_v41, %v767_v13  ;;  %v958_v41 = vsel %vm1741_vm5, %v1834_v23, -inf }
 0x2c9   : > { %v964_v59 = vsel %vm232_vm0, %v958_v41, -inf }
 0x2de   : > { %v756_v43 = vpop.xlane.xlu1 %755 }
 0x2df   : > { %v764_v44 = vmul.f32 0.03125, %v756_v43 }
 0x2e1   : > { %v768_v12 = vsub.f32 %v732_v37, %v764_v44  ;;  %v1087_v37 = vsel %vm232_vm0, %v1077_v36, -inf }
 0x2e2   : > { %v849_v46 = vpop.xlane.xlu1 %848  ;;  %v759_v47 = vpop.xlane.xlu0 %758 }
 0x2e3   : > { %v1251_v48 = vsel %vm1249_vm12, %v1246_v60, %v768_v12  ;;  %v765_v49 = vmul.f32 0.03125, %v759_v47 }
 0x2e5   : > { %v769_v51 = vsub.f32 %v735_v35, %v765_v49 }
 0x2e6   : > { %v1925_v57 = vpop.xlane.xlu1 %854 }
 0x2e7   : > { %v1929_v39 = vsel %vm1249_vm12, %v1883_v32, %v769_v51 }
 0x2ea   : > { %v859_v58 = vpop.permute.xlu1 %858 }
 0x2eb   : > { %v871_v52 = vsel %vm306_vm1, %v859_v58, 0.0 }
 0x2ec   : > { %872 = vadd.xlane.f32.xlu1 %v871_v52 }
 0x2ee   : > { %v861_v60 = vpop.permute.xlu1 %860 }
 0x2ef   : > { %v874_v7 = vsel %vm306_vm1, %v861_v60, 0.0 }
 0x2f0   : > { %965 = vmax.xlane.f32.xlu1 %v964_v59  ;;  %v1076_v59 = vsel %vm1760_vm8, %v1824_v1, -inf }
 0x2f1   : > { %v1084_v61 = vsel %vm232_vm0, %v1076_v59, -inf }
 0x2f2   : > { %v863_v5 = vpop.permute.xlu1 %862 }
 0x2f3   : > { %v877_v11 = vsel %vm306_vm1, %v863_v5, 0.0 }
 0x2f4   : > { %971 = vmax.xlane.f32.xlu1 %v970_v55 }
 0x305   : > { %975 = vrot.lane.b32.xlu1 %v1751_v21, %s1543_s4 }
 0x309   : > { %977 = vrot.lane.b32.xlu1 %v1709_v56, %s1543_s4 }
 0x30d   : > { %979 = vrot.lane.b32.xlu1 %v1718_v63, %s1543_s4 }
 0x317   : > { %v762_v23 = vpop.xlane.xlu0 %761 }
 0x318   : > { %v766_v32 = vmul.f32 0.03125, %v762_v23 }
 0x31a   : > { %v770_v62 = vsub.f32 %v738_v15, %v766_v32 }
 0x31b   : > { %v846_v2 = vpop.xlane.xlu0 %845 }
 0x31c   : > { %v1253_v22 = vsel %vm1249_vm12, %v1889_v50, %v770_v62  ;;  %v959_v50 = vsel %vm1760_vm8, %v1822_v17, -inf  ;;  %v1075_v17 = vsel %vm1741_vm5, %v1836_v24, -inf }
 0x31d   : > { %v967_v8 = vsel %vm232_vm0, %v959_v50, -inf  ;;  %v1081_v35 = vsel %vm232_vm0, %v1075_v17, -inf }
 0x31f   : > { %v852_v3 = vpop.xlane.xlu0 %851 }
 0x323   : > { %v857_v45 = vpop.permute.xlu0 %856 }
 0x324   : > { %v868_v4 = vsel %vm306_vm1, %v857_v45, 0.0 }
 0x325   : > { %869 = vadd.xlane.f32.xlu0 %v868_v4 }
 0x329   : > { %875 = vadd.xlane.f32.xlu0 %v874_v7 }
 0x32d   : > { %878 = vadd.xlane.f32.xlu0 %v877_v11 }
 0x331   : > { %962 = vmax.xlane.f32.xlu0 %v961_v54 }
 0x335   : > { %968 = vmax.xlane.f32.xlu0 %v967_v8 }
 0x34b   : > { %973 = vrot.lane.b32.xlu0 %v1725_v10, %s1543_s4 }
 0x379   : > { %v873_v15 = vpop.xlane.xlu1 %872 }
 0x37a   : > { %v881_v53 = vmul.f32 0.03125, %v873_v15 }
 0x37c   : > { %v885_v29 = vsub.f32 %v849_v46, %v881_v53 }
 0x37d   : > { %v966_v14 = vpop.xlane.xlu1 %965 }
 0x37e   : > { %v1256_v18 = vsel %vm1254_vm13, %v1251_v48, %v885_v29 }
 0x381   : > { %v1962_v31 = vpop.xlane.xlu1 %971 }
 0x385   : > { %v976_v33 = vpop.permute.xlu1 %975 }
 0x386   : > { %v988_v34 = vsel %vm306_vm1, %v976_v33, 0.0 }
 0x387   : > { %989 = vadd.xlane.f32.xlu1 %v988_v34 }
 0x389   : > { %v978_v51 = vpop.permute.xlu1 %977 }
 0x38a   : > { %v991_v52 = vsel %vm306_vm1, %v978_v51, 0.0 }
 0x38b   : > { %1082 = vmax.xlane.f32.xlu1 %v1081_v35 }
 0x38f   : > { %1088 = vmax.xlane.f32.xlu1 %v1087_v37 }
 0x3a0   : > { %1092 = vrot.lane.b32.xlu1 %v1751_v21, %s1545_s6 }
 0x3a4   : > { %1094 = vrot.lane.b32.xlu1 %v1709_v56, %s1545_s6 }
 0x3a8   : > { %1096 = vrot.lane.b32.xlu1 %v1718_v63, %s1545_s6 }
 0x3ac   : > { %1207 = vrot.lane.b32.xlu1 %v1725_v10, %s1547_s8 }
 0x3b0   : > { %1209 = vrot.lane.b32.xlu1 %v1751_v21, %s1547_s8 }
 0x3b2   : > { %v870_v6 = vpop.xlane.xlu0 %869 }
 0x3b3   : > { %v880_v24 = vmul.f32 0.03125, %v870_v6 }
 0x3b4   : > { %1211 = vrot.lane.b32.xlu1 %v1709_v56, %s1547_s8 }
 0x3b5   : > { %v884_v38 = vsub.f32 %v846_v2, %v880_v24 }
 0x3b6   : > { %v876_v40 = vpop.xlane.xlu0 %875 }
 0x3b7   : > { %v1255_v13 = vsel %vm1254_vm13, %v1922_v42, %v884_v38  ;;  %v882_v43 = vmul.f32 0.03125, %v876_v40  ;;  %v1191_v40 = vsel %vm1735_vm4, %v1840_v27, -inf  ;;  %v1204_v27 = vsel %vm232_vm0, %v1194_v16, -inf }
 0x3b8   : > { %1213 = vrot.lane.b32.xlu1 %v1718_v63, %s1547_s8  ;;  %v980_v63 = vpop.permute.xlu1 %979 }
 0x3b9   : > { %v886_v44 = vsub.f32 %v852_v3, %v882_v43  ;;  %v994_v41 = vsel %vm306_vm1, %v980_v63, 0.0 }
 0x3ba   : > { %v879_v12 = vpop.xlane.xlu0 %878 }
 0x3bb   : > { %v1257_v46 = vsel %vm1254_vm13, %v1929_v39, %v886_v44  ;;  %v883_v21 = vmul.f32 0.03125, %v879_v12  ;;  %v1074_v39 = vsel %vm1735_vm4, %v1828_v19, -inf  ;;  %v1193_v44 = vsel %vm1760_vm8, %v1838_v25, -inf }
 0x3bc   : > { %v1201_v12 = vsel %vm232_vm0, %v1193_v44, -inf }
 0x3bd   : > { %v887_v47 = vsub.f32 %v1925_v57, %v883_v21  ;;  %v1078_v57 = vsel %vm232_vm0, %v1074_v39, -inf }
 0x3be   : > { %v963_v48 = vpop.xlane.xlu0 %962 }
 0x3bf   : > { %v1258_v56 = vsel %vm1254_vm13, %v1253_v22, %v887_v47 }
 0x3c2   : > { %v969_v49 = vpop.xlane.xlu0 %968 }
 0x3c6   : > { %v974_v58 = vpop.permute.xlu0 %973 }
 0x3c7   : > { %v985_v42 = vsel %vm306_vm1, %v974_v58, 0.0 }
 0x3c8   : > { %986 = vadd.xlane.f32.xlu0 %v985_v42 }
 0x3cc   : > { %992 = vadd.xlane.f32.xlu0 %v991_v52 }
 0x3d0   : > { %995 = vadd.xlane.f32.xlu0 %v994_v41 }
 0x3d4   : > { %1079 = vmax.xlane.f32.xlu0 %v1078_v57 }
 0x3d8   : > { %1085 = vmax.xlane.f32.xlu0 %v1084_v61 }
 0x3ee   : > { %1090 = vrot.lane.b32.xlu0 %v1725_v10, %s1545_s6 }
 0x414   : > { %v990_v55 = vpop.xlane.xlu1 %989 }
 0x415   : > { %v998_v23 = vmul.f32 0.03125, %v990_v55 }
 0x417   : > { %v1002_v32 = vsub.f32 %v966_v14, %v998_v23 }
 0x418   : > { %v2006_v62 = vpop.xlane.xlu1 %1082 }
 0x419   : > { %v2009_v19 = vsel %vm1259_vm14, %v1256_v18, %v1002_v32 }
 0x41c   : > { %v2011_v2 = vpop.xlane.xlu1 %1088 }
 0x420   : > { %v1093_v22 = vpop.permute.xlu1 %1092 }
 0x421   : > { %v1105_v1 = vsel %vm306_vm1, %v1093_v22, 0.0 }
 0x422   : > { %1106 = vadd.xlane.f32.xlu1 %v1105_v1 }
 0x424   : > { %v1095_v3 = vpop.permute.xlu1 %1094 }
 0x425   : > { %v1108_v24 = vsel %vm306_vm1, %v1095_v3, 0.0 }
 0x428   : > { %v1097_v60 = vpop.permute.xlu1 %1096 }
 0x429   : > { %v1111_v38 = vsel %vm306_vm1, %v1097_v60, 0.0 }
 0x42c   : > { %v1208_v45 = vpop.permute.xlu1 %1207 }
 0x42d   : > { %v1219_v0 = vsel %vm306_vm1, %v1208_v45, 0.0 }
 0x430   : > { %v1210_v4 = vpop.permute.xlu1 %1209 }
 0x431   : > { %v1222_v10 = vsel %vm306_vm1, %v1210_v4, 0.0 }
 0x432   : > { %1223 = vadd.xlane.f32.xlu1 %v1222_v10 }
 0x434   : > { %v1212_v7 = vpop.permute.xlu1 %1211 }
 0x438   : > { %v1214_v5 = vpop.permute.xlu1 %1213 }
 0x439   : > { %v1228_v11 = vsel %vm306_vm1, %v1214_v5, 0.0 }
 0x43a   : > { %1229 = vadd.xlane.f32.xlu1 %v1228_v11 }
 0x455   : > { %v987_v20 = vpop.xlane.xlu0 %986 }
 0x456   : > { %v997_v54 = vmul.f32 0.03125, %v987_v20 }
 0x458   : > { %v1001_v50 = vsub.f32 %v963_v48, %v997_v54 }
 0x459   : > { %v993_v8 = vpop.xlane.xlu0 %992 }
 0x45a   : > { %v2017_v15 = vsel %vm1259_vm14, %v1255_v13, %v1001_v50  ;;  %v999_v53 = vmul.f32 0.03125, %v993_v8  ;;  %v1192_v13 = vsel %vm1741_vm5, %v1845_v30, -inf  ;;  %v1225_v30 = vsel %vm306_vm1, %v1212_v7, 0.0 }
 0x45b   : > { %v1198_v43 = vsel %vm232_vm0, %v1192_v13, -inf }
 0x45c   : > { %v1003_v29 = vsub.f32 %v969_v49, %v999_v53 }
 0x45d   : > { %v996_v14 = vpop.xlane.xlu0 %995 }
 0x45e   : > { %v2020_v18 = vsel %vm1259_vm14, %v1257_v46, %v1003_v29  ;;  %v1000_v33 = vmul.f32 0.03125, %v996_v14 }
 0x460   : > { %v1004_v34 = vsub.f32 %v1962_v31, %v1000_v33  ;;  %v1195_v31 = vsel %vm232_vm0, %v1191_v40, -inf  ;;  %vm1269_vm0 = vcmask 56320  }
 0x461   : > { %v1080_v17 = vpop.xlane.xlu0 %1079 }
 0x462   : > { %v1263_v35 = vsel %vm1259_vm14, %v1258_v56, %v1004_v34 }
 0x465   : > { %v2024_v36 = vpop.xlane.xlu0 %1085 }
 0x469   : > { %v1091_v37 = vpop.permute.xlu0 %1090 }
 0x46a   : > { %v1102_v6 = vsel %vm306_vm1, %v1091_v37, 0.0 }
 0x46b   : > { %1103 = vadd.xlane.f32.xlu0 %v1102_v6 }
 0x46f   : > { %1109 = vadd.xlane.f32.xlu0 %v1108_v24 }
 0x473   : > { %1112 = vadd.xlane.f32.xlu0 %v1111_v38 }
 0x477   : > { %1196 = vmax.xlane.f32.xlu0 %v1195_v31 }
 0x47b   : > { %1199 = vmax.xlane.f32.xlu0 %v1198_v43 }
 0x47f   : > { %1202 = vmax.xlane.f32.xlu0 %v1201_v12 }
 0x483   : > { %1205 = vmax.xlane.f32.xlu0 %v1204_v27 }
 0x487   : > { %1220 = vadd.xlane.f32.xlu0 %v1219_v0 }
 0x48b   : > { %1226 = vadd.xlane.f32.xlu0 %v1225_v30 }
 0x4af   : > { %v1107_v46 = vpop.xlane.xlu1 %1106 }
 0x4b0   : > { %v1115_v47 = vmul.f32 0.03125, %v1107_v46 }
 0x4b2   : > { %v1119_v28 = vsub.f32 %v2006_v62, %v1115_v47 }
 0x4b4   : > { %v1266_v58 = vsel %vm1264_vm15, %v2009_v19, %v1119_v28 }
 0x4bf   : > { %v1224_v48 = vpop.xlane.xlu1 %1223 }
 0x4c0   : > { %v1232_v9 = vmul.f32 0.03125, %v1224_v48 }
 0x4c7   : > { %v1230_v63 = vpop.xlane.xlu1 %1229 }
 0x4c8   : > { %v1234_v57 = vmul.f32 0.03125, %v1230_v63 }
 0x4f8   : > { %v1104_v26 = vpop.xlane.xlu0 %1103 }
 0x4f9   : > { %v1114_v59 = vmul.f32 0.03125, %v1104_v26 }
 0x4fb   : > { %v1118_v62 = vsub.f32 %v1080_v17, %v1114_v59 }
 0x4fc   : > { %v1110_v25 = vpop.xlane.xlu0 %1109 }
 0x4fd   : > { %v1116_v22 = vmul.f32 0.03125, %v1110_v25  ;;  %v1265_v60 = vsel %vm1264_vm15, %v2017_v15, %v1118_v62 }
 0x500   : > { %v1113_v21 = vpop.xlane.xlu0 %1112 }
 0x501   : > { %v1117_v42 = vmul.f32 0.03125, %v1113_v21 }
 0x503   : > { %v1121_v39 = vsub.f32 %v2011_v2, %v1117_v42  ;;  %v1120_v2 = vsub.f32 %v2024_v36, %v1116_v22 }
 0x504   : > { %v1197_v56 = vpop.xlane.xlu0 %1196 }
 0x505   : > { %v1268_v23 = vsel %vm1264_vm15, %v1263_v35, %v1121_v39  ;;  %v1267_v5 = vsel %vm1264_vm15, %v2020_v18, %v1120_v2 }
 0x508   : > { %v1200_v49 = vpop.xlane.xlu0 %1199 }
 0x509   : > { %v1236_v51 = vsub.f32 %v1200_v49, %v1232_v9 }
 0x50b   : > { %v1271_v52 = vsel %vm1269_vm0, %v1266_v58, %v1236_v51 }
 0x50c   : > { %1275 = vst.msk [vmem:[%s190_s14 + $0x8] sm:$0xff] %vm306_vm1, %v1271_v52  ;;  %v1203_v41 = vpop.xlane.xlu0 %1202 }
 0x510   : > { %v1206_v61 = vpop.xlane.xlu0 %1205 }
 0x511   : > { %v1238_v55 = vsub.f32 %v1206_v61, %v1234_v57 }
 0x513   : > { %v1273_v32 = vsel %vm1269_vm0, %v1268_v23, %v1238_v55 }
 0x514   : > { %1277 = vst.msk [vmem:[%s190_s14 + $0x18] sm:$0xff] %vm306_vm1, %v1273_v32  ;;  %v1221_v19 = vpop.xlane.xlu0 %1220 }
 0x515   : > { %v1231_v1 = vmul.f32 0.03125, %v1221_v19 }
 0x517   : > { %v1235_v3 = vsub.f32 %v1197_v56, %v1231_v1 }
 0x518   : > { %v1227_v45 = vpop.xlane.xlu0 %1226 }
 0x519   : > { %v1270_v4 = vsel %vm1269_vm0, %v1265_v60, %v1235_v3  ;;  %v1233_v10 = vmul.f32 0.03125, %v1227_v45 }
 0x51a   : > { %1274 = vst.msk [vmem:[%s190_s14] sm:$0xff] %vm306_vm1, %v1270_v4 }
 0x51b   : > { %v1237_v7 = vsub.f32 %v1203_v41, %v1233_v10 }
 0x51d   : > { %v1272_v11 = vsel %vm1269_vm0, %v1267_v5, %v1237_v7 }
 0x51e   : > { %1276 = vst.msk [vmem:[%s190_s14 + $0x10] sm:$0xff] %vm306_vm1, %v1272_v11 }
 0x51f PF: > { %s13_s12 = sadd.s32 1, %s1539_s12  }
 0x520   : > { %p10_p4 = scmp.ge.s32.totalorder %s13_s12, 4  }
 0x522   :  { %12 = sbr.rel (!%p10_p4) target bundleno = 1 (0x1), region = 65 }

// kernel: prob_sparse_self_attention.5
= control target key start
LH: loop header
LB: loop body
LE: loop exit
PB: predicated region body
PF: predicated region fallthrough
CT: control target
= control target key end

     0   :  { %11 = vsyncpa [#allocation3], 0  ;;  %s6082_s0 = inlined_call_operand.vmem [shape: s32[2,8,24], index: 0, kind: input, shape index: {}]   ;;  %s6083_s1 = inlined_call_operand.vmem [shape: bf16[2,32,64], index: 1, kind: input, shape index: {}]   ;;  %s6084_s2 = inlined_call_operand.vmem [shape: bf16[2,32,64], index: 2, kind: input, shape index: {}]   ;;  %s6085_s3 = inlined_call_operand.vmem [shape: f32[2,32,64], index: 3, kind: input, shape index: {}]   ;;  %s6086_s4 = inlined_call_operand.vmem [shape: bf16[64,64], index: 4, kind: input, shape index: {}]   ;;  %s6087_s5 = inlined_call_operand.vmem [shape: f32[1,64], index: 5, kind: input, shape index: {}]   ;;  %s6088_s6 = inlined_call_operand.hbm [shape: f32[2,32,64], index: 6, kind: output, shape index: {}]  }
   0x1   :  { %13 = vsyncpa [#allocation3 + $0x1], 0  ;;  %s4912_s21 = smov 0   ;;  %s4914_s22 = smov 0  }
   0x2   :  { %s4916_s23 = smov 0   ;;  %s4918_s24 = smov 0  }
   0x3 LB: > { %s4933_s25 = sadd.s32 4294967295, %s4855_s24   ;;  %s4000_s26 = sadd.s32 4294967294, %s4855_s24   ;;  %s4855_s24 = sphi %s4918_s24, %s6175_s24   ;;  %s4851_s23 = sphi %s4916_s23, %s6174_s23   ;;  %s4847_s22 = sphi %s4914_s22, %s6173_s22   ;;  %s4843_s21 = sphi %s4912_s21, %s6172_s21  }
   0x4   : > { %s4937_s27 = sadd.s32 1, %s4855_s24   ;;  %s172_s28 = sadd.s32 1, %s4851_s23 }
   0x5   : > { %s169_s29 = ssub.s32 %s4855_s24, %s4937_s27  ;;  %p182_p0 = scmp.ne.s32.totalorder %s4851_s23, %s4847_s22 }
   0x6   : > { %p170_p1 = scmp.eq.s32.totalorder %s169_s29, 0  ;;  %p183_p2 = scmp.eq.s32.totalorder %s4933_s25, 1 }
   0x7   : > { %p188_p3 = scmp.ne.s32.totalorder %s4847_s22, %s4843_s21  ;;  %p189_p4 = scmp.eq.s32.totalorder %s4000_s26, 1 }
   0x8   : > { %s4948_s30 = scalar_select %p170_p1, %s4851_s23, %s172_s28  }
   0x9   : > { %p4950_p5 = por %p183_p2, %p182_p0  ;;  %p4954_p6 = por %p189_p4, %p188_p3 }
   0xa   : > { %p4003_p7 = scmp.ge.s32.totalorder %s4855_s24, 1  ;;  %p244_p8 = scmp.lt.s32.totalorder %s4855_s24, 3 }
   0xc   : > { %p245_p9 = pnand %p4003_p7, %p244_p8 }
   0xe   : > { %248 = sbr.rel (%p245_p9) target bundleno = 7182 (0x1c0e), region = 44 }
  0x15   : > { %p288_p10 = scmp.lt.s32.totalorder %s4933_s25, 1  ;;  %v341_v0 = vlaneseq  ;;  %v6089_v10 = vmov 0.0   ;;  %vm6094_vm4 = vcmask 64512   ;;  %vm6092_vm5 = vcmask 261120   ;;  %s4858_s26 = smov 120  }
  0x16   : > { %vm6091_vm6 = vcmask 523264   ;;  %vm6093_vm11 = vcmask 195584   ;;  %vm621_vm12 = vcmask 1043456   ;;  %s4860_s12 = smov 104   ;;  %s4861_s13 = smov 96  }
  0x17   : > { %s4962_s9 = scalar_select %p288_p10, %s4933_s25, 1  ;;  %v4964_v1 = vshrl.u32 %v341_v0, 7 }
  0x18   : > { %s4862_s15 = smov 88   ;;  %s4864_s16 = smov 72  }
  0x19   : > { %s4005_s10 = sshll.u32 %s4962_s9, 3  ;;  %s4124_s11 = sshll.u32 %s4962_s9, 4  ;;  %v348_v2 = vsub.s32 0, %v4964_v1  ;;  %v4980_v3 = vadd.s32 8, %v4964_v1  ;;  %v4983_v4 = vadd.s32 16, %v4964_v1  ;;  %v4986_v5 = vadd.s32 24, %v4964_v1 }
  0x1a   : > { %s4972_s14 = scalar_lea.vmem %s6082_s0, %s4005_s10  ;;  %s4977_s17 = scalar_lea.vmem %s6083_s1, %s4124_s11 }
  0x1b   : > { %v4989_v6 = vld [vmem:[%s4972_s14] sm:$0xff]  ;;  %s4994_s20 = scalar_lea.vmem %s6084_s2, %s4124_s11  ;;  %v5001_v9 = vld [vmem:[%s4977_s17 + $0x8] sm:$0xff]   ;;  %s4126_s28 = sshll.u32 %s4962_s9, 5 }
  0x1c   : > { %v349_v7 = vrot.slane %v4989_v6, %v348_v2  ;;  %v4998_v8 = vld [vmem:[%s4977_s17] sm:$0xff]   ;;  %v5043_v21 = vld [vmem:[%s4994_s20 + $0x8] sm:$0xff]   ;;  %s306_s11 = scalar_lea.vmem %s6085_s3, %s4126_s28  ;;  %s4859_s9 = smov 112  }
  0x1d   : > { %4262 = vmatprep.subr.bf16.mxu1 %v4998_v8  ;;  %v5027_v16 = vld [vmem:[%s4994_s20] sm:$0xff]   ;;  %v473_v22 = vsel %vm6094_vm4, %v5043_v21, 0  ;;  %v320_v55 = vld [vmem:[%s306_s11 + $0x8] sm:$0xff]  ;;  %v321_v56 = vld [vmem:[%s306_s11 + $0x10] sm:$0xff]  ;;  %s4869_s18 = smov 16   ;;  %s4870_s19 = smov 24  }
  0x1e   : > { %vm350_vm0 = vcmp.eq.s32.totalorder %v4964_v1, %v349_v7  ;;  %vm351_vm1 = vcmp.eq.s32.totalorder %v4980_v3, %v349_v7  ;;  %vm352_vm2 = vcmp.eq.s32.totalorder %v4983_v4, %v349_v7  ;;  %vm353_vm3 = vcmp.eq.s32.totalorder %v4986_v5, %v349_v7  ;;  %4263 = vmatpush3.bf16.msra.mxu1 %v4998_v8  ;;  %v319_v54 = vld [vmem:[%s306_s11] sm:$0xff]  ;;  %v322_v60 = vld [vmem:[%s306_s11 + $0x18] sm:$0xff]  ;;  %s4873_s28 = smov 48   ;;  %s4127_s10 = sshll.u32 %s4933_s25, 9 }
  0x1f   : > { %v5009_v11 = vsel %vm350_vm0, 1.0, %v6089_v10  ;;  %v5012_v12 = vsel %vm351_vm1, 1.0, %v6089_v10  ;;  %v5015_v13 = vsel %vm352_vm2, 1.0, %v6089_v10  ;;  %v5018_v14 = vsel %vm353_vm3, 1.0, %v6089_v10  ;;  %4264 = vmatprep.subr.bf16.mxu1 %v5001_v9 }
  0x20   : > { %v5023_v15 = vpack.c.bf16 %v5012_v12, %v5009_v11  ;;  %v5032_v17 = vpack.c.bf16 %v5018_v14, %v5015_v13  ;;  %v470_v19 = vsel %vm6094_vm4, %v5027_v16, 0  ;;  %v5067_v57 = vpack.c.bf16 %v320_v55, %v319_v54 }
  0x21   : > { %v326_v58 = vsel %vm6091_vm6, %v319_v54, 0.0  ;;  %v327_v59 = vsel %vm6091_vm6, %v320_v55, 0.0  ;;  %v329_v61 = vsel %vm6091_vm6, %v321_v56, 0.0  ;;  %v5072_v63 = vpack.c.bf16 %v322_v60, %v321_v56 }
  0x22   : > { %364 = vxpose.xlu0.c.b16.start [1/2] (short) (narrow) %v5023_v15, 32  ;;  %4265 = vmatpush3.bf16.msra.mxu1 %v5001_v9  ;;  %v328_v62 = vadd.f32 %v327_v59, %v326_v58  ;;  %v331_v0 = vsel %vm6091_vm6, %v322_v60, 0.0 }
  0x23   : > { %4530 = vmatprep.subr.msk.bf16.mxu1 %vm6094_vm4, %v5027_v16  ;;  %4278 = vmatprep.subr.bf16.mxu0 %v5067_v57 }
  0x24   : > { %4279 = vmatpush3.bf16.msra.mxu0 %v5067_v57  ;;  %v330_v2 = vadd.f32 %v329_v61, %v328_v62 }
  0x25   : > { %4280 = vmatprep.subr.bf16.mxu0 %v5072_v63 }
  0x26   : > { %365 = vxpose.xlu0.c.b16.end [2/2] (short) (narrow) %v5032_v17, 32  ;;  %v5080_v7 = vadd.f32 %v331_v0, %v330_v2 }
  0x28   : > { %4281 = vmatpush3.bf16.msra.mxu0 %v5072_v63 }
  0x88   : > { %v372_v18 = vpop.trf.xlu0 }
  0x89   : > { %4266 = vmatprep.mubr.msk.bf16.mxu1 %vm6092_vm5, %v372_v18  ;;  %v766_v18 = vsub.s32 1, %v4964_v1 }
  0x8c   : > { %v373_v20 = vpop.trf.xlu0 }
  0x8d   : > { %4267 = vmatmul.mubr.msk.bf16.vlgmr.msra.gmra.mrb[0].mxu1 %vm6092_vm5, %v373_v20 }
  0x8e   : > { %4271 = vmatpush3.bf16.xpose.msra.mxu1 %v470_v19  ;;  %v767_v19 = vrot.slane %v4989_v6, %v766_v18 }
  0x8f   : > { %4531 = vmatprep.subr.msk.bf16.mxu1 %vm6094_vm4, %v5043_v21 }
  0x90   : > { %vm768_vm7 = vcmp.eq.s32.totalorder %v4964_v1, %v767_v19  ;;  %vm769_vm8 = vcmp.eq.s32.totalorder %v4980_v3, %v767_v19  ;;  %vm770_vm9 = vcmp.eq.s32.totalorder %v4983_v4, %v767_v19  ;;  %vm771_vm10 = vcmp.eq.s32.totalorder %v4986_v5, %v767_v19 }
  0x91   : > { %v5088_v20 = vsel %vm768_vm7, 1.0, %v6089_v10 }
  0x96   : > { %4273 = vmatpush3.bf16.xpose.msra.mxu1 %v473_v22  ;;  %v5091_v22 = vsel %vm769_vm8, 1.0, %v6089_v10 }
 0x160   : > { %v4268_v23 = vpop.f32.mrb[0].mxu1 }
 0x161   : > { %v433_v24 = vpop.f32.mrb[1].mxu1  ;;  %v449_v26 = vmul.f32 0.35355338, %v4268_v23  ;;  %v5097_v23 = vpack.c.bf16 %v5091_v22, %v5088_v20 }
 0x162   : > { %v4269_v25 = vpop.f32.mrb[2].mxu1  ;;  %v447_v28 = vmul.f32 0.35355338, %v433_v24  ;;  %v5100_v24 = vsel %vm770_vm9, 1.0, %v6089_v10 }
 0x163   : > { %v436_v27 = vpop.f32.mrb[3].mxu1  ;;  %v451_v31 = vpack.c.bf16 %v449_v26, %v449_v26  ;;  %v5103_v25 = vsel %vm771_vm10, 1.0, %v6089_v10 }
 0x164   : > { %v448_v29 = vmul.f32 0.35355338, %v436_v27  ;;  %v5108_v26 = vpack.c.bf16 %v5103_v25, %v5100_v24 }
 0x166   : > { %v450_v30 = vpack.c.bf16 %v448_v29, %v447_v28 }
 0x168   : > { %4274 = vmatprep.mubr.msk.bf16.mxu1 %vm6094_vm4, %v450_v30 }
 0x169   : > { %4275 = vmatmul.mubr.msk.bf16.vlgmr.msra.gmra.mrb[4].mxu1 %vm6094_vm4, %v451_v31 }
 0x23c   : > { %v4276_v32 = vpop.f32.mrb[4].mxu1 }
 0x23d   : > { %v509_v33 = vpop.f32.mrb[5].mxu1  ;;  %v529_v34 = vsel %vm6092_vm5, %v4276_v32, -inf }
 0x23e   : > { %530 = vmax.xlane.f32.xlu0 %v529_v34  ;;  %v4277_v35 = vpop.f32.mrb[6].mxu1  ;;  %v523_v36 = vsel %vm6092_vm5, %v509_v33, -inf }
 0x23f   : > { %524 = vmax.xlane.f32.xlu1 %v523_v36  ;;  %v512_v37 = vpop.f32.mrb[7].mxu1 }
 0x240   : > { %v526_v38 = vsel %vm6092_vm5, %v512_v37, -inf }
 0x243   : > { %527 = vmax.xlane.f32.xlu1 %v526_v38 }
 0x254   : > { %800 = vrot.lane.b32.xlu0 %v5001_v9, %s4858_s26 }
 0x258   : > { %863 = vrot.lane.b32.xlu0 %v5027_v16, %s4858_s26 }
 0x25c   : > { %865 = vrot.lane.b32.xlu0 %v5043_v21, %s4858_s26 }
 0x2cb   : > { %v531_v39 = vpop.xlane.xlu0 %530 }
 0x2cc   : > { %v534_v40 = vsub.f32 %v4276_v32, %v531_v39  ;;  %v525_v41 = vpop.xlane.xlu1 %524 }
 0x2cd   : > { %v532_v42 = vsub.f32 %v509_v33, %v525_v41 }
 0x2ce   : > { %v539_v43 = vmul.f32 1.442695, %v534_v40 }
 0x2cf   : > { %v535_v44 = vmul.f32 1.442695, %v532_v42  ;;  %v801_v31 = vpop.permute.xlu0 %800 }
 0x2d0   : > { %4692 = vpow2.f32 %v539_v43  ;;  %v528_v45 = vpop.xlane.xlu1 %527 }
 0x2d1   : > { %v533_v46 = vsub.f32 %v512_v37, %v528_v45  ;;  %4694 = vpow2.f32 %v535_v44 }
 0x2d3   : > { %v537_v47 = vmul.f32 1.442695, %v533_v46  ;;  %v864_v55 = vpop.permute.xlu0 %863 }
 0x2d4   : > { %v874_v56 = vsel %vm6094_vm4, %v864_v55, 0 }
 0x2d5   : > { %4696 = vpow2.f32 %v537_v47 }
 0x2d7   : > { %v866_v58 = vpop.permute.xlu0 %865 }
 0x2d8   : > { %v877_v59 = vsel %vm6094_vm4, %v866_v58, 0 }
 0x2da   : > { %v4693_v48 = vpop.eup %4692 }
 0x2db   : > { %v547_v49 = vsel %vm6092_vm5, %v4693_v48, 0.0  ;;  %v4695_v50 = vpop.eup %4694 }
 0x2dc   : > { %548 = vadd.xlane.f32.xlu1 %v547_v49  ;;  %v541_v51 = vsel %vm6092_vm5, %v4695_v50, 0.0 }
 0x2df   : > { %v4697_v52 = vpop.eup %4696 }
 0x2e0   : > { %542 = vadd.xlane.f32.xlu1 %v541_v51  ;;  %v544_v53 = vsel %vm6092_vm5, %v4697_v52, 0.0 }
 0x2e4   : > { %545 = vadd.xlane.f32.xlu1 %v544_v53 }
 0x2f5   : > { %798 = vrot.lane.b32.xlu1 %v4998_v8, %s4858_s26 }
 0x318   : > { %782 = vxpose.xlu1.c.b16.start [1/2] (short) (narrow) %v5097_v23, 32 }
 0x31c   : > { %783 = vxpose.xlu1.c.b16.end [2/2] (short) (narrow) %v5108_v26, 32 }
 0x369   : > { %v549_v27 = vpop.xlane.xlu1 %548 }
 0x36a   : > { %4698 = vrcp.f32 %v549_v27 }
 0x36d   : > { %v543_v28 = vpop.xlane.xlu1 %542 }
 0x36e   : > { %4700 = vrcp.f32 %v543_v28 }
 0x371   : > { %v546_v29 = vpop.xlane.xlu1 %545 }
 0x372   : > { %4702 = vrcp.f32 %v546_v29 }
 0x374   : > { %v4699_v32 = vpop.eup %4698 }
 0x375   : > { %v799_v30 = vpop.permute.xlu1 %798  ;;  %v555_v35 = vmul.f32 %v4699_v32, %v4693_v48 }
 0x376   : > { %4294 = vmatprep.subr.bf16.mxu1 %v799_v30 }
 0x377   : > { %4295 = vmatpush3.bf16.msra.mxu1 %v799_v30  ;;  %v557_v40 = vpack.c.bf16 %v555_v35, %v555_v35 }
 0x378   : > { %4296 = vmatprep.subr.bf16.mxu1 %v801_v31  ;;  %v4701_v33 = vpop.eup %4700 }
 0x379   : > { %v553_v36 = vmul.f32 %v4701_v33, %v4695_v50 }
 0x37b   : > { %4297 = vmatpush3.bf16.msra.mxu1 %v801_v31 }
 0x37c   : > { %v4703_v34 = vpop.eup %4702 }
 0x37d   : > { %v554_v37 = vmul.f32 %v4703_v34, %v4697_v52 }
 0x37e   : > { %v790_v38 = vpop.trf.xlu1 }
 0x37f   : > { %v556_v39 = vpack.c.bf16 %v554_v37, %v553_v36  ;;  %4298 = vmatprep.mubr.msk.bf16.mxu1 %vm6092_vm5, %v790_v38 }
 0x381   : > { %4282 = vmatprep.mubr.msk.bf16.mxu0 %vm6092_vm5, %v556_v39 }
 0x382   : > { %4283 = vmatmul.mubr.msk.bf16.vlgmr.msra.gmra.mrb[0].mxu0 %vm6092_vm5, %v557_v40  ;;  %v791_v41 = vpop.trf.xlu1 }
 0x383   : > { %4299 = vmatmul.mubr.msk.bf16.vlgmr.msra.gmra.mrb[8].mxu1 %vm6092_vm5, %v791_v41  ;;  %4290 = vmatprep.mubr.msk.bf16.mxu0 %vm6093_vm11, %v5023_v15 }
 0x455   : > { %v4284_v42 = vpop.f32.mrb[0].mxu0 }
 0x456   : > { %v598_v43 = vpop.f32.mrb[1].mxu0  ;;  %v4300_v44 = vpop.f32.mrb[8].mxu1  ;;  %v613_v53 = vpack.c.bf16 %v4284_v42, %v4284_v42 }
 0x457   : > { %v4285_v45 = vpop.f32.mrb[2].mxu0  ;;  %v844_v46 = vpop.f32.mrb[9].mxu1  ;;  %v860_v60 = vmul.f32 0.35355338, %v4300_v44 }
 0x458   : > { %v601_v47 = vpop.f32.mrb[3].mxu0  ;;  %v858_v48 = vmul.f32 0.35355338, %v844_v46  ;;  %v4301_v49 = vpop.f32.mrb[10].mxu1  ;;  %v623_v15 = vsel %vm621_vm12, %v613_v53, 0 }
 0x459   : > { %v612_v50 = vpack.c.bf16 %v601_v47, %v598_v43  ;;  %v847_v51 = vpop.f32.mrb[11].mxu1  ;;  %v862_v61 = vpack.c.bf16 %v860_v60, %v860_v60  ;;  %v1180_v47 = vsub.s32 2, %v4964_v1 }
 0x45a   : > { %v859_v52 = vmul.f32 0.35355338, %v847_v51 }
 0x45b   : > { %4286 = vmatprep.subr.bf16.mxu0 %v612_v50 }
 0x45c   : > { %4287 = vmatpush3.bf16.msra.mxu0 %v612_v50  ;;  %v861_v54 = vpack.c.bf16 %v859_v52, %v858_v48  ;;  %v1181_v48 = vrot.slane %v4989_v6, %v1180_v47 }
 0x45d   : > { %4532 = vmatprep.subr.msk.bf16.mxu0 %vm621_vm12, %v613_v53 }
 0x45e   : > { %vm1182_vm13 = vcmp.eq.s32.totalorder %v4964_v1, %v1181_v48  ;;  %vm1183_vm14 = vcmp.eq.s32.totalorder %v4980_v3, %v1181_v48  ;;  %vm1184_vm15 = vcmp.eq.s32.totalorder %v4983_v4, %v1181_v48  ;;  %vm1185_vm0 = vcmp.eq.s32.totalorder %v4986_v5, %v1181_v48 }
 0x45f   : > { %v5158_v49 = vsel %vm1182_vm13, 1.0, %v6089_v10  ;;  %v5161_v50 = vsel %vm1183_vm14, 1.0, %v6089_v10  ;;  %v5170_v52 = vsel %vm1184_vm15, 1.0, %v6089_v10  ;;  %v5173_v53 = vsel %vm1185_vm0, 1.0, %v6089_v10 }
 0x460   : > { %4289 = vmatpush3.bf16.msra.mxu0 %v623_v15  ;;  %v5167_v51 = vpack.c.bf16 %v5161_v50, %v5158_v49 }
 0x461   : > { %4533 = vmatprep.subr.msk.bf16.mxu0 %vm6094_vm4, %v864_v55 }
 0x463   : > { %4291 = vmatmul.mubr.msk.bf16.vlgmr.msra.gmra.mrb[4].mxu0 %vm6093_vm11, %v5032_v17 }
 0x464   : > { %4306 = vmatprep.mubr.msk.bf16.mxu0 %vm6094_vm4, %v861_v54  ;;  %v5178_v54 = vpack.c.bf16 %v5173_v53, %v5170_v52 }
 0x469   : > { %4303 = vmatpush3.bf16.xpose.msra.mxu0 %v874_v56 }
 0x46a   : > { %4534 = vmatprep.subr.msk.bf16.mxu0 %vm6094_vm4, %v866_v58 }
 0x471   : > { %4305 = vmatpush3.bf16.xpose.msra.mxu0 %v877_v59 }
 0x478   : > { %4307 = vmatmul.mubr.msk.bf16.vlgmr.msra.gmra.mrb[8].mxu0 %vm6094_vm4, %v862_v61 }
 0x536   : > { %v5127_v62 = vpop.f32.mrb[4].mxu0 }
 0x537   : > { %v5129_v0 = vpop.f32.mrb[5].mxu0 }
 0x538   : > { %v5131_v17 = vpop.f32.mrb[6].mxu0 }
 0x539   : > { %6097 = vst [vmem:[#allocation5_spill] sm:$0xff] %v5131_v17  ;;  %v5133_v2 = vpop.f32.mrb[7].mxu0 }
 0x54b   : > { %v4308_v18 = vpop.f32.mrb[8].mxu0 }
 0x54c   : > { %v913_v19 = vpop.f32.mrb[9].mxu0  ;;  %v933_v31 = vsel %vm6092_vm5, %v4308_v18, -inf }
 0x54d   : > { %v4309_v27 = vpop.f32.mrb[10].mxu0  ;;  %v927_v28 = vsel %vm6092_vm5, %v913_v19, -inf }
 0x54e   : > { %928 = vmax.xlane.f32.xlu0 %v927_v28  ;;  %v916_v29 = vpop.f32.mrb[11].mxu0 }
 0x54f   : > { %v930_v30 = vsel %vm6092_vm5, %v916_v29, -inf }
 0x550   : > { %931 = vmax.xlane.f32.xlu1 %v930_v30 }
 0x552   : > { %934 = vmax.xlane.f32.xlu0 %v933_v31 }
 0x5db   : > { %v929_v32 = vpop.xlane.xlu0 %928 }
 0x5dc   : > { %v936_v34 = vsub.f32 %v913_v19, %v929_v32 }
 0x5dd   : > { %v932_v33 = vpop.xlane.xlu1 %931 }
 0x5de   : > { %v937_v35 = vsub.f32 %v916_v29, %v932_v33  ;;  %v939_v39 = vmul.f32 1.442695, %v936_v34 }
 0x5df   : > { %v935_v36 = vpop.xlane.xlu0 %934 }
 0x5e0   : > { %v941_v37 = vmul.f32 1.442695, %v937_v35  ;;  %v938_v38 = vsub.f32 %v4308_v18, %v935_v36 }
 0x5e2   : > { %4704 = vpow2.f32 %v941_v37  ;;  %v943_v40 = vmul.f32 1.442695, %v938_v38 }
 0x5e4   : > { %4706 = vpow2.f32 %v943_v40 }
 0x5e5   : > { %4708 = vpow2.f32 %v939_v39 }
 0x5ec   : > { %v4705_v41 = vpop.eup %4704 }
 0x5ed   : > { %v948_v42 = vsel %vm6092_vm5, %v4705_v41, 0.0 }
 0x5ee   : > { %v4707_v43 = vpop.eup %4706  ;;  %949 = vadd.xlane.f32.xlu1 %v948_v42 }
 0x5ef   : > { %v951_v44 = vsel %vm6092_vm5, %v4707_v43, 0.0  ;;  %v4709_v45 = vpop.eup %4708 }
 0x5f0   : > { %952 = vadd.xlane.f32.xlu0 %v951_v44  ;;  %v945_v46 = vsel %vm6092_vm5, %v4709_v45, 0.0 }
 0x5f4   : > { %946 = vadd.xlane.f32.xlu0 %v945_v46 }
 0x5ff   : > { %964 = vrot.lane.b32.xlu1 %v5067_v57, %s4858_s26 }
 0x603   : > { %1212 = vrot.lane.b32.xlu1 %v4998_v8, %s4859_s9 }
 0x607   : > { %1214 = vrot.lane.b32.xlu1 %v5001_v9, %s4859_s9 }
 0x60a   : > { %966 = vrot.lane.b32.xlu0 %v5072_v63, %s4858_s26 }
 0x60b   : > { %1277 = vrot.lane.b32.xlu1 %v5027_v16, %s4859_s9 }
 0x60f   : > { %1279 = vrot.lane.b32.xlu1 %v5043_v21, %s4859_s9 }
 0x628   : > { %1196 = vxpose.xlu0.c.b16.start [1/2] (short) (narrow) %v5167_v51, 32 }
 0x62c   : > { %1197 = vxpose.xlu0.c.b16.end [2/2] (short) (narrow) %v5178_v54, 32 }
 0x67b   : > { %v950_v55 = vpop.xlane.xlu1 %949 }
 0x67d   : > { %v953_v15 = vpop.xlane.xlu0 %952 }
 0x67e   : > { %4710 = vrcp.f32 %v953_v15 }
 0x67f   : > { %v965_v56 = vpop.permute.xlu1 %964  ;;  %4712 = vrcp.f32 %v950_v55 }
 0x680   : > { %4310 = vmatprep.subr.bf16.mxu1 %v965_v56 }
 0x681   : > { %v947_v58 = vpop.xlane.xlu0 %946  ;;  %4311 = vmatpush3.bf16.msra.mxu1 %v965_v56 }
 0x682   : > { %4714 = vrcp.f32 %v947_v58 }
 0x683   : > { %v1213_v59 = vpop.permute.xlu1 %1212 }
 0x684   : > { %4326 = vmatprep.subr.bf16.mxu0 %v1213_v59 }
 0x685   : > { %v967_v60 = vpop.permute.xlu0 %966  ;;  %4327 = vmatpush3.bf16.msra.mxu0 %v1213_v59 }
 0x686   : > { %4312 = vmatprep.subr.bf16.mxu1 %v967_v60 }
 0x687   : > { %4313 = vmatpush3.bf16.msra.mxu1 %v967_v60  ;;  %v1215_v61 = vpop.permute.xlu1 %1214 }
 0x688   : > { %4328 = vmatprep.subr.bf16.mxu0 %v1215_v61  ;;  %v4711_v18 = vpop.eup %4710 }
 0x689   : > { %4329 = vmatpush3.bf16.msra.mxu0 %v1215_v61  ;;  %v4713_v19 = vpop.eup %4712  ;;  %v959_v28 = vmul.f32 %v4711_v18, %v4707_v43 }
 0x68a   : > { %v958_v30 = vmul.f32 %v4713_v19, %v4705_v41 }
 0x68b   : > { %v961_v33 = vpack.c.bf16 %v959_v28, %v959_v28  ;;  %v1278_v48 = vpop.permute.xlu1 %1277 }
 0x68c   : > { %v4715_v27 = vpop.eup %4714  ;;  %v1288_v55 = vsel %vm6094_vm4, %v1278_v48, 0 }
 0x68d   : > { %v957_v29 = vmul.f32 %v4715_v27, %v4709_v45 }
 0x68e   : > { %v1204_v31 = vpop.trf.xlu0 }
 0x68f   : > { %v960_v32 = vpack.c.bf16 %v958_v30, %v957_v29  ;;  %4330 = vmatprep.mubr.msk.bf16.mxu0 %vm6092_vm5, %v1204_v31  ;;  %v1280_v15 = vpop.permute.xlu1 %1279 }
 0x690   : > { %v1291_v56 = vsel %vm6094_vm4, %v1280_v15, 0 }
 0x691   : > { %4314 = vmatprep.mubr.msk.bf16.mxu1 %vm6092_vm5, %v960_v32 }
 0x692   : > { %4315 = vmatmul.mubr.msk.bf16.vlgmr.msra.gmra.mrb[12].mxu1 %vm6092_vm5, %v961_v33  ;;  %v1205_v34 = vpop.trf.xlu0 }
 0x693   : > { %4331 = vmatmul.mubr.msk.bf16.vlgmr.msra.gmra.mrb[12].mxu0 %vm6092_vm5, %v1205_v34  ;;  %4322 = vmatprep.mubr.msk.bf16.mxu1 %vm6093_vm11, %v5097_v23 }
 0x765   : > { %v4316_v35 = vpop.f32.mrb[12].mxu1 }
 0x766   : > { %v1010_v36 = vpop.f32.mrb[13].mxu1  ;;  %v4332_v37 = vpop.f32.mrb[12].mxu0  ;;  %v1025_v46 = vpack.c.bf16 %v4316_v35, %v4316_v35 }
 0x767   : > { %v4317_v38 = vpop.f32.mrb[14].mxu1  ;;  %v1258_v39 = vpop.f32.mrb[13].mxu0  ;;  %v1274_v58 = vmul.f32 0.35355338, %v4332_v37 }
 0x768   : > { %v1013_v40 = vpop.f32.mrb[15].mxu1  ;;  %v1272_v41 = vmul.f32 0.35355338, %v1258_v39  ;;  %v4333_v42 = vpop.f32.mrb[14].mxu0  ;;  %v1033_v23 = vsel %vm621_vm12, %v1025_v46, 0 }
 0x769   : > { %v1024_v43 = vpack.c.bf16 %v1013_v40, %v1010_v36  ;;  %v1261_v44 = vpop.f32.mrb[15].mxu0  ;;  %v1276_v59 = vpack.c.bf16 %v1274_v58, %v1274_v58 }
 0x76a   : > { %v1273_v45 = vmul.f32 0.35355338, %v1261_v44 }
 0x76b   : > { %4318 = vmatprep.subr.bf16.mxu1 %v1024_v43 }
 0x76c   : > { %4319 = vmatpush3.bf16.msra.mxu1 %v1024_v43  ;;  %v1275_v47 = vpack.c.bf16 %v1273_v45, %v1272_v41 }
 0x76d   : > { %4535 = vmatprep.subr.msk.bf16.mxu1 %vm621_vm12, %v1025_v46 }
 0x770   : > { %4321 = vmatpush3.bf16.msra.mxu1 %v1033_v23 }
 0x771   : > { %4536 = vmatprep.subr.msk.bf16.mxu1 %vm6094_vm4, %v1278_v48  ;;  %v1591_v48 = vsub.s32 3, %v4964_v1 }
 0x773   : > { %4323 = vmatmul.mubr.msk.bf16.vlgmr.msra.gmra.mrb[16].mxu1 %vm6093_vm11, %v5108_v26  ;;  %v1592_v23 = vrot.slane %v4989_v6, %v1591_v48 }
 0x774   : > { %4338 = vmatprep.mubr.msk.bf16.mxu1 %vm6094_vm4, %v1275_v47 }
 0x775   : > { %vm1593_vm1 = vcmp.eq.s32.totalorder %v4964_v1, %v1592_v23  ;;  %vm1594_vm2 = vcmp.eq.s32.totalorder %v4980_v3, %v1592_v23  ;;  %vm1595_vm3 = vcmp.eq.s32.totalorder %v4983_v4, %v1592_v23  ;;  %vm1596_vm7 = vcmp.eq.s32.totalorder %v4986_v5, %v1592_v23 }
 0x776   : > { %v5240_v58 = vsel %vm1595_vm3, 1.0, %v6089_v10 }
 0x779   : > { %4335 = vmatpush3.bf16.xpose.msra.mxu1 %v1288_v55  ;;  %v5228_v55 = vsel %vm1593_vm1, 1.0, %v6089_v10 }
 0x77a   : > { %4537 = vmatprep.subr.msk.bf16.mxu1 %vm6094_vm4, %v1280_v15  ;;  %v5231_v15 = vsel %vm1594_vm2, 1.0, %v6089_v10 }
 0x781   : > { %4337 = vmatpush3.bf16.xpose.msra.mxu1 %v1291_v56  ;;  %v5237_v56 = vpack.c.bf16 %v5231_v15, %v5228_v55 }
 0x788   : > { %4339 = vmatmul.mubr.msk.bf16.vlgmr.msra.gmra.mrb[20].mxu1 %vm6094_vm4, %v1276_v59  ;;  %v5243_v59 = vsel %vm1596_vm7, 1.0, %v6089_v10 }
 0x846   : > { %v5197_v60 = vpop.f32.mrb[16].mxu1 }
 0x847   : > { %6098 = vst [vmem:[#allocation6_spill] sm:$0xff] %v5197_v60  ;;  %v5199_v61 = vpop.f32.mrb[17].mxu1 }
 0x848   : > { %6099 = vst [vmem:[#allocation7_spill] sm:$0xff] %v5199_v61  ;;  %v5201_v26 = vpop.f32.mrb[18].mxu1 }
 0x849   : > { %6100 = vst [vmem:[#allocation8_spill] sm:$0xff] %v5201_v26  ;;  %v5203_v18 = vpop.f32.mrb[19].mxu1 }
 0x84a   : > { %6101 = vst [vmem:[#allocation9_spill] sm:$0xff] %v5203_v18 }
 0x85b   : > { %v4340_v19 = vpop.f32.mrb[20].mxu1 }
 0x85c   : > { %v1327_v27 = vpop.f32.mrb[21].mxu1  ;;  %v1347_v32 = vsel %vm6092_vm5, %v4340_v19, -inf }
 0x85d   : > { %v4341_v28 = vpop.f32.mrb[22].mxu1  ;;  %v1341_v29 = vsel %vm6092_vm5, %v1327_v27, -inf }
 0x85e   : > { %1342 = vmax.xlane.f32.xlu1 %v1341_v29  ;;  %v1330_v30 = vpop.f32.mrb[23].mxu1 }
 0x85f   : > { %v1344_v31 = vsel %vm6092_vm5, %v1330_v30, -inf }
 0x860   : > { %1345 = vmax.xlane.f32.xlu0 %v1344_v31 }
 0x862   : > { %1348 = vmax.xlane.f32.xlu1 %v1347_v32 }
 0x8eb   : > { %v1343_v33 = vpop.xlane.xlu1 %1342 }
 0x8ec   : > { %v1350_v35 = vsub.f32 %v1327_v27, %v1343_v33 }
 0x8ed   : > { %v1346_v34 = vpop.xlane.xlu0 %1345 }
 0x8ee   : > { %v1351_v36 = vsub.f32 %v1330_v30, %v1346_v34  ;;  %v1353_v40 = vmul.f32 1.442695, %v1350_v35 }
 0x8ef   : > { %v1349_v37 = vpop.xlane.xlu1 %1348 }
 0x8f0   : > { %v1355_v38 = vmul.f32 1.442695, %v1351_v36  ;;  %v1352_v39 = vsub.f32 %v4340_v19, %v1349_v37  ;;  %v5248_v19 = vpack.c.bf16 %v5243_v59, %v5240_v58 }
 0x8f2   : > { %4716 = vpow2.f32 %v1355_v38  ;;  %v1357_v41 = vmul.f32 1.442695, %v1352_v39 }
 0x8f4   : > { %4718 = vpow2.f32 %v1357_v41 }
 0x8f5   : > { %4720 = vpow2.f32 %v1353_v40 }
 0x8fc   : > { %v4717_v42 = vpop.eup %4716 }
 0x8fd   : > { %v1362_v43 = vsel %vm6092_vm5, %v4717_v42, 0.0 }
 0x8fe   : > { %v4719_v44 = vpop.eup %4718  ;;  %1363 = vadd.xlane.f32.xlu1 %v1362_v43 }
 0x8ff   : > { %v1365_v45 = vsel %vm6092_vm5, %v4719_v44, 0.0  ;;  %v4721_v46 = vpop.eup %4720 }
 0x900   : > { %1366 = vadd.xlane.f32.xlu0 %v1365_v45  ;;  %v1359_v47 = vsel %vm6092_vm5, %v4721_v46, 0.0 }
 0x904   : > { %1360 = vadd.xlane.f32.xlu0 %v1359_v47 }
 0x90f   : > { %1376 = vrot.lane.b32.xlu1 %v5067_v57, %s4859_s9 }
 0x913   : > { %1623 = vrot.lane.b32.xlu1 %v4998_v8, %s4860_s12 }
 0x917   : > { %1625 = vrot.lane.b32.xlu1 %v5001_v9, %s4860_s12 }
 0x91a   : > { %1378 = vrot.lane.b32.xlu0 %v5072_v63, %s4859_s9 }
 0x91b   : > { %1688 = vrot.lane.b32.xlu1 %v5027_v16, %s4860_s12 }
 0x91f   : > { %1690 = vrot.lane.b32.xlu1 %v5043_v21, %s4860_s12 }
 0x938   : > { %1607 = vxpose.xlu0.c.b16.start [1/2] (short) (narrow) %v5237_v56, 32 }
 0x93c   : > { %1608 = vxpose.xlu0.c.b16.end [2/2] (short) (narrow) %v5248_v19, 32 }
 0x98b   : > { %v1364_v27 = vpop.xlane.xlu1 %1363 }
 0x98d   : > { %v1367_v28 = vpop.xlane.xlu0 %1366 }
 0x98e   : > { %4722 = vrcp.f32 %v1367_v28 }
 0x98f   : > { %v1377_v29 = vpop.permute.xlu1 %1376  ;;  %4724 = vrcp.f32 %v1364_v27 }
 0x990   : > { %4342 = vmatprep.subr.bf16.mxu0 %v1377_v29 }
 0x991   : > { %v1361_v30 = vpop.xlane.xlu0 %1360  ;;  %4343 = vmatpush3.bf16.msra.mxu0 %v1377_v29 }
 0x992   : > { %4726 = vrcp.f32 %v1361_v30 }
 0x993   : > { %v1624_v31 = vpop.permute.xlu1 %1623 }
 0x994   : > { %4358 = vmatprep.subr.bf16.mxu1 %v1624_v31 }
 0x995   : > { %v1379_v32 = vpop.permute.xlu0 %1378  ;;  %4359 = vmatpush3.bf16.msra.mxu1 %v1624_v31 }
 0x996   : > { %4344 = vmatprep.subr.bf16.mxu0 %v1379_v32 }
 0x997   : > { %4345 = vmatpush3.bf16.msra.mxu0 %v1379_v32  ;;  %v1626_v33 = vpop.permute.xlu1 %1625 }
 0x998   : > { %4360 = vmatprep.subr.bf16.mxu1 %v1626_v33  ;;  %v4723_v34 = vpop.eup %4722 }
 0x999   : > { %4361 = vmatpush3.bf16.msra.mxu1 %v1626_v33  ;;  %v4725_v35 = vpop.eup %4724  ;;  %v1373_v37 = vmul.f32 %v4723_v34, %v4719_v44 }
 0x99a   : > { %v1372_v39 = vmul.f32 %v4725_v35, %v4717_v42 }
 0x99b   : > { %v1375_v43 = vpack.c.bf16 %v1373_v37, %v1373_v37  ;;  %v1689_v34 = vpop.permute.xlu1 %1688 }
 0x99c   : > { %v4727_v36 = vpop.eup %4726  ;;  %v1699_v35 = vsel %vm6094_vm4, %v1689_v34, 0 }
 0x99d   : > { %v1371_v38 = vmul.f32 %v4727_v36, %v4721_v46 }
 0x99e   : > { %v1615_v40 = vpop.trf.xlu0 }
 0x99f   : > { %v1374_v41 = vpack.c.bf16 %v1372_v39, %v1371_v38  ;;  %4362 = vmatprep.mubr.msk.bf16.mxu1 %vm6092_vm5, %v1615_v40  ;;  %v1691_v36 = vpop.permute.xlu1 %1690 }
 0x9a0   : > { %v1702_v37 = vsel %vm6094_vm4, %v1691_v36, 0 }
 0x9a1   : > { %4346 = vmatprep.mubr.msk.bf16.mxu0 %vm6092_vm5, %v1374_v41 }
 0x9a2   : > { %4347 = vmatmul.mubr.msk.bf16.vlgmr.msra.gmra.mrb[16].mxu0 %vm6092_vm5, %v1375_v43  ;;  %v1616_v45 = vpop.trf.xlu0 }
 0x9a3   : > { %4363 = vmatmul.mubr.msk.bf16.vlgmr.msra.gmra.mrb[24].mxu1 %vm6092_vm5, %v1616_v45  ;;  %4354 = vmatprep.mubr.msk.bf16.mxu0 %vm6093_vm11, %v5167_v51 }
 0xa75   : > { %v4348_v47 = vpop.f32.mrb[16].mxu0 }
 0xa76   : > { %v1422_v48 = vpop.f32.mrb[17].mxu0  ;;  %v4364_v44 = vpop.f32.mrb[24].mxu1  ;;  %v1437_v32 = vpack.c.bf16 %v4348_v47, %v4348_v47 }
 0xa77   : > { %v4349_v46 = vpop.f32.mrb[18].mxu0  ;;  %v1669_v42 = vpop.f32.mrb[25].mxu1  ;;  %v1685_v38 = vmul.f32 0.35355338, %v4364_v44 }
 0xa78   : > { %v1425_v23 = vpop.f32.mrb[19].mxu0  ;;  %v1683_v27 = vmul.f32 0.35355338, %v1669_v42  ;;  %v4365_v28 = vpop.f32.mrb[26].mxu1  ;;  %v1445_v51 = vsel %vm621_vm12, %v1437_v32, 0 }
 0xa79   : > { %v1436_v29 = vpack.c.bf16 %v1425_v23, %v1422_v48  ;;  %v1672_v30 = vpop.f32.mrb[27].mxu1  ;;  %v1687_v39 = vpack.c.bf16 %v1685_v38, %v1685_v38 }
 0xa7a   : > { %v1684_v31 = vmul.f32 0.35355338, %v1672_v30 }
 0xa7b   : > { %4350 = vmatprep.subr.bf16.mxu0 %v1436_v29 }
 0xa7c   : > { %4351 = vmatpush3.bf16.msra.mxu0 %v1436_v29  ;;  %v1686_v33 = vpack.c.bf16 %v1684_v31, %v1683_v27 }
 0xa7d   : > { %4538 = vmatprep.subr.msk.bf16.mxu0 %vm621_vm12, %v1437_v32 }
 0xa80   : > { %4353 = vmatpush3.bf16.msra.mxu0 %v1445_v51 }
 0xa81   : > { %4539 = vmatprep.subr.msk.bf16.mxu0 %vm6094_vm4, %v1689_v34 }
 0xa83   : > { %4355 = vmatmul.mubr.msk.bf16.vlgmr.msra.gmra.mrb[20].mxu0 %vm6093_vm11, %v5178_v54 }
 0xa84   : > { %4370 = vmatprep.mubr.msk.bf16.mxu0 %vm6094_vm4, %v1686_v33 }
 0xa89   : > { %4367 = vmatpush3.bf16.xpose.msra.mxu0 %v1699_v35 }
 0xa8a   : > { %4540 = vmatprep.subr.msk.bf16.mxu0 %vm6094_vm4, %v1691_v36 }
 0xa91   : > { %4369 = vmatpush3.bf16.xpose.msra.mxu0 %v1702_v37 }
 0xa98   : > { %4371 = vmatmul.mubr.msk.bf16.vlgmr.msra.gmra.mrb[24].mxu0 %vm6094_vm4, %v1687_v39 }
 0xb56   : > { %v5267_v40 = vpop.f32.mrb[20].mxu0 }
 0xb57   : > { %6102 = vst [vmem:[#allocation10_spill] sm:$0xff] %v5267_v40  ;;  %v5269_v41 = vpop.f32.mrb[21].mxu0 }
 0xb58   : > { %6103 = vst [vmem:[#allocation11_spill] sm:$0xff] %v5269_v41  ;;  %v5271_v54 = vpop.f32.mrb[22].mxu0 }
 0xb59   : > { %6104 = vst [vmem:[#allocation12_spill] sm:$0xff] %v5271_v54  ;;  %v5273_v43 = vpop.f32.mrb[23].mxu0 }
 0xb5a   : > { %6105 = vst [vmem:[#allocation13_spill] sm:$0xff] %v5273_v43 }
 0xb6b   : > { %v4372_v45 = vpop.f32.mrb[24].mxu0 }
 0xb6c   : > { %v1738_v47 = vpop.f32.mrb[25].mxu0  ;;  %v1758_v23 = vsel %vm6092_vm5, %v4372_v45, -inf }
 0xb6d   : > { %v4373_v48 = vpop.f32.mrb[26].mxu0  ;;  %v1752_v46 = vsel %vm6092_vm5, %v1738_v47, -inf }
 0xb6e   : > { %1753 = vmax.xlane.f32.xlu1 %v1752_v46  ;;  %v1741_v42 = vpop.f32.mrb[27].mxu0 }
 0xb6f   : > { %v1755_v44 = vsel %vm6092_vm5, %v1741_v42, -inf }
 0xb70   : > { %1756 = vmax.xlane.f32.xlu0 %v1755_v44 }
 0xb72   : > { %1759 = vmax.xlane.f32.xlu1 %v1758_v23 }
 0xbfb   : > { %v1754_v27 = vpop.xlane.xlu1 %1753 }
 0xbfc   : > { %v1761_v29 = vsub.f32 %v1738_v47, %v1754_v27 }
 0xbfd   : > { %v1757_v28 = vpop.xlane.xlu0 %1756 }
 0xbfe   : > { %v1762_v30 = vsub.f32 %v1741_v42, %v1757_v28  ;;  %v1764_v34 = vmul.f32 1.442695, %v1761_v29 }
 0xbff   : > { %v1760_v31 = vpop.xlane.xlu1 %1759 }
 0xc00   : > { %v1766_v32 = vmul.f32 1.442695, %v1762_v30  ;;  %v1763_v33 = vsub.f32 %v4372_v45, %v1760_v31  ;;  %v2002_v45 = vsub.s32 4, %v4964_v1 }
 0xc02   : > { %4728 = vpow2.f32 %v1766_v32  ;;  %v1768_v51 = vmul.f32 1.442695, %v1763_v33  ;;  %v2003_v48 = vrot.slane %v4989_v6, %v2002_v45 }
 0xc04   : > { %4730 = vpow2.f32 %v1768_v51  ;;  %vm2004_vm8 = vcmp.eq.s32.totalorder %v4964_v1, %v2003_v48  ;;  %vm2005_vm9 = vcmp.eq.s32.totalorder %v4980_v3, %v2003_v48  ;;  %vm2006_vm10 = vcmp.eq.s32.totalorder %v4983_v4, %v2003_v48 }
 0xc05   : > { %4732 = vpow2.f32 %v1764_v34  ;;  %vm2007_vm13 = vcmp.eq.s32.totalorder %v4986_v5, %v2003_v48  ;;  %v5310_v6 = vsel %vm2006_vm10, 1.0, %v6089_v10 }
 0xc0c   : > { %v4729_v35 = vpop.eup %4728 }
 0xc0d   : > { %v1773_v36 = vsel %vm6092_vm5, %v4729_v35, 0.0 }
 0xc0e   : > { %v4731_v37 = vpop.eup %4730  ;;  %1774 = vadd.xlane.f32.xlu1 %v1773_v36 }
 0xc0f   : > { %v1776_v38 = vsel %vm6092_vm5, %v4731_v37, 0.0  ;;  %v4733_v39 = vpop.eup %4732 }
 0xc10   : > { %1777 = vadd.xlane.f32.xlu0 %v1776_v38  ;;  %v1770_v47 = vsel %vm6092_vm5, %v4733_v39, 0.0 }
 0xc14   : > { %1771 = vadd.xlane.f32.xlu0 %v1770_v47 }
 0xc1f   : > { %1787 = vrot.lane.b32.xlu1 %v5067_v57, %s4860_s12 }
 0xc23   : > { %2034 = vrot.lane.b32.xlu1 %v4998_v8, %s4861_s13  ;;  %v5298_v8 = vsel %vm2004_vm8, 1.0, %v6089_v10 }
 0xc27   : > { %2036 = vrot.lane.b32.xlu1 %v5001_v9, %s4861_s13  ;;  %v5301_v9 = vsel %vm2005_vm9, 1.0, %v6089_v10 }
 0xc2a   : > { %1789 = vrot.lane.b32.xlu0 %v5072_v63, %s4860_s12 }
 0xc2b   : > { %2099 = vrot.lane.b32.xlu1 %v5027_v16, %s4861_s13  ;;  %v5307_v16 = vpack.c.bf16 %v5301_v9, %v5298_v8 }
 0xc2f   : > { %2101 = vrot.lane.b32.xlu1 %v5043_v21, %s4861_s13  ;;  %v5313_v21 = vsel %vm2007_vm13, 1.0, %v6089_v10 }
 0xc30   : > { %v5318_v46 = vpack.c.bf16 %v5313_v21, %v5310_v6 }
 0xc48   : > { %2018 = vxpose.xlu0.c.b16.start [1/2] (short) (narrow) %v5307_v16, 32 }
 0xc4c   : > { %2019 = vxpose.xlu0.c.b16.end [2/2] (short) (narrow) %v5318_v46, 32 }
 0xc9b   : > { %v1775_v42 = vpop.xlane.xlu1 %1774 }
 0xc9d   : > { %v1778_v44 = vpop.xlane.xlu0 %1777 }
 0xc9e   : > { %4734 = vrcp.f32 %v1778_v44 }
 0xc9f   : > { %v1788_v23 = vpop.permute.xlu1 %1787  ;;  %4736 = vrcp.f32 %v1775_v42 }
 0xca0   : > { %4374 = vmatprep.subr.bf16.mxu1 %v1788_v23 }
 0xca1   : > { %v1772_v27 = vpop.xlane.xlu0 %1771  ;;  %4375 = vmatpush3.bf16.msra.mxu1 %v1788_v23 }
 0xca2   : > { %4738 = vrcp.f32 %v1772_v27 }
 0xca3   : > { %v2035_v28 = vpop.permute.xlu1 %2034 }
 0xca4   : > { %4390 = vmatprep.subr.bf16.mxu0 %v2035_v28 }
 0xca5   : > { %v1790_v29 = vpop.permute.xlu0 %1789  ;;  %4391 = vmatpush3.bf16.msra.mxu0 %v2035_v28 }
 0xca6   : > { %4376 = vmatprep.subr.bf16.mxu1 %v1790_v29 }
 0xca7   : > { %4377 = vmatpush3.bf16.msra.mxu1 %v1790_v29  ;;  %v2037_v30 = vpop.permute.xlu1 %2036 }
 0xca8   : > { %4392 = vmatprep.subr.bf16.mxu0 %v2037_v30  ;;  %v4735_v31 = vpop.eup %4734 }
 0xca9   : > { %4393 = vmatpush3.bf16.msra.mxu0 %v2037_v30  ;;  %v4737_v32 = vpop.eup %4736  ;;  %v1784_v34 = vmul.f32 %v4735_v31, %v4731_v37 }
 0xcaa   : > { %v1783_v36 = vmul.f32 %v4737_v32, %v4729_v35 }
 0xcab   : > { %v1786_v45 = vpack.c.bf16 %v1784_v34, %v1784_v34  ;;  %v2100_v34 = vpop.permute.xlu1 %2099 }
 0xcac   : > { %v4739_v33 = vpop.eup %4738 }
 0xcad   : > { %v1782_v51 = vmul.f32 %v4739_v33, %v4733_v39 }
 0xcae   : > { %v2026_v38 = vpop.trf.xlu0 }
 0xcaf   : > { %v1785_v47 = vpack.c.bf16 %v1783_v36, %v1782_v51  ;;  %4394 = vmatprep.mubr.msk.bf16.mxu0 %vm6092_vm5, %v2026_v38  ;;  %v2110_v51 = vsel %vm6094_vm4, %v2100_v34, 0  ;;  %v2102_v36 = vpop.permute.xlu1 %2101 }
 0xcb0   : > { %v2113_v38 = vsel %vm6094_vm4, %v2102_v36, 0 }
 0xcb1   : > { %4378 = vmatprep.mubr.msk.bf16.mxu1 %vm6092_vm5, %v1785_v47 }
 0xcb2   : > { %4379 = vmatmul.mubr.msk.bf16.vlgmr.msra.gmra.mrb[28].mxu1 %vm6092_vm5, %v1786_v45  ;;  %v2027_v48 = vpop.trf.xlu0 }
 0xcb3   : > { %4395 = vmatmul.mubr.msk.bf16.vlgmr.msra.gmra.mrb[28].mxu0 %vm6092_vm5, %v2027_v48  ;;  %4386 = vmatprep.mubr.msk.bf16.mxu1 %vm6093_vm11, %v5237_v56 }
 0xd85   : > { %v4380_v42 = vpop.f32.mrb[28].mxu1 }
 0xd86   : > { %v1833_v44 = vpop.f32.mrb[29].mxu1  ;;  %v4396_v37 = vpop.f32.mrb[28].mxu0  ;;  %v1848_v32 = vpack.c.bf16 %v4380_v42, %v4380_v42 }
 0xd87   : > { %v4381_v39 = vpop.f32.mrb[30].mxu1  ;;  %v2080_v35 = vpop.f32.mrb[29].mxu0  ;;  %v2096_v47 = vmul.f32 0.35355338, %v4396_v37 }
 0xd88   : > { %v1836_v23 = vpop.f32.mrb[31].mxu1  ;;  %v2094_v27 = vmul.f32 0.35355338, %v2080_v35  ;;  %v4397_v28 = vpop.f32.mrb[30].mxu0  ;;  %v1856_v56 = vsel %vm621_vm12, %v1848_v32, 0 }
 0xd89   : > { %v1847_v29 = vpack.c.bf16 %v1836_v23, %v1833_v44  ;;  %v2083_v30 = vpop.f32.mrb[31].mxu0  ;;  %v2098_v45 = vpack.c.bf16 %v2096_v47, %v2096_v47 }
 0xd8a   : > { %v2095_v31 = vmul.f32 0.35355338, %v2083_v30 }
 0xd8b   : > { %4382 = vmatprep.subr.bf16.mxu1 %v1847_v29 }
 0xd8c   : > { %4383 = vmatpush3.bf16.msra.mxu1 %v1847_v29  ;;  %v2097_v33 = vpack.c.bf16 %v2095_v31, %v2094_v27 }
 0xd8d   : > { %4541 = vmatprep.subr.msk.bf16.mxu1 %vm621_vm12, %v1848_v32 }
 0xd90   : > { %4385 = vmatpush3.bf16.msra.mxu1 %v1856_v56 }
 0xd91   : > { %4542 = vmatprep.subr.msk.bf16.mxu1 %vm6094_vm4, %v2100_v34 }
 0xd93   : > { %4387 = vmatmul.mubr.msk.bf16.vlgmr.msra.gmra.mrb[32].mxu1 %vm6093_vm11, %v5248_v19 }
 0xd94   : > { %4402 = vmatprep.mubr.msk.bf16.mxu1 %vm6094_vm4, %v2097_v33 }
 0xd99   : > { %4399 = vmatpush3.bf16.xpose.msra.mxu1 %v2110_v51 }
 0xd9a   : > { %4543 = vmatprep.subr.msk.bf16.mxu1 %vm6094_vm4, %v2102_v36 }
 0xda1   : > { %4401 = vmatpush3.bf16.xpose.msra.mxu1 %v2113_v38 }
 0xda8   : > { %4403 = vmatmul.mubr.msk.bf16.vlgmr.msra.gmra.mrb[36].mxu1 %vm6094_vm4, %v2098_v45 }
 0xe66   : > { %v5337_v48 = vpop.f32.mrb[32].mxu1 }
 0xe67   : > { %6106 = vst [vmem:[#allocation14_spill] sm:$0xff] %v5337_v48  ;;  %v5339_v42 = vpop.f32.mrb[33].mxu1 }
 0xe68   : > { %6107 = vst [vmem:[#allocation15_spill] sm:$0xff] %v5339_v42  ;;  %v5341_v19 = vpop.f32.mrb[34].mxu1 }
 0xe69   : > { %6108 = vst [vmem:[#allocation16_spill] sm:$0xff] %v5341_v19  ;;  %v5343_v44 = vpop.f32.mrb[35].mxu1 }
 0xe6a   : > { %6109 = vst [vmem:[#allocation17_spill] sm:$0xff] %v5343_v44 }
 0xe7b   : > { %v4404_v39 = vpop.f32.mrb[36].mxu1 }
 0xe7c   : > { %v2149_v35 = vpop.f32.mrb[37].mxu1  ;;  %v2169_v29 = vsel %vm6092_vm5, %v4404_v39, -inf }
 0xe7d   : > { %v4405_v23 = vpop.f32.mrb[38].mxu1  ;;  %v2163_v27 = vsel %vm6092_vm5, %v2149_v35, -inf }
 0xe7e   : > { %2164 = vmax.xlane.f32.xlu1 %v2163_v27  ;;  %v2152_v28 = vpop.f32.mrb[39].mxu1 }
 0xe7f   : > { %v2166_v37 = vsel %vm6092_vm5, %v2152_v28, -inf }
 0xe80   : > { %2167 = vmax.xlane.f32.xlu0 %v2166_v37  ;;  %v5359_v37 = vld [vmem:[%s4977_s17 + $0x8] sm:$0xff]  }
 0xe82   : > { %2170 = vmax.xlane.f32.xlu1 %v2169_v29  ;;  %v5366_v29 = vld [vmem:[%s4994_s20] sm:$0xff]  }
 0xf0b   : > { %v2165_v30 = vpop.xlane.xlu1 %2164 }
 0xf0c   : > { %v2172_v32 = vsub.f32 %v2149_v35, %v2165_v30  ;;  %v5371_v30 = vld [vmem:[%s4994_s20 + $0x8] sm:$0xff]   ;;  %s4871_s20 = smov 32  }
 0xf0d   : > { %v2168_v31 = vpop.xlane.xlu0 %2167 }
 0xf0e   : > { %v2173_v33 = vsub.f32 %v2152_v28, %v2168_v31  ;;  %v2175_v36 = vmul.f32 1.442695, %v2172_v32  ;;  %v5354_v28 = vld [vmem:[%s4977_s17] sm:$0xff]   ;;  %v2413_v31 = vsub.s32 5, %v4964_v1  ;;  %s4868_s17 = smov 8  }
 0xf0f   : > { %v2171_v34 = vpop.xlane.xlu1 %2170  ;;  %v5377_v32 = vld [vmem:[%s4972_s14] sm:$0xff]  ;;  %s4863_s14 = smov 80  }
 0xf10   : > { %v2177_v56 = vmul.f32 1.442695, %v2173_v33  ;;  %v2174_v51 = vsub.f32 %v4404_v39, %v2171_v34  ;;  %v2414_v33 = vrot.slane %v5377_v32, %v2413_v31 }
 0xf12   : > { %4740 = vpow2.f32 %v2177_v56  ;;  %v2179_v38 = vmul.f32 1.442695, %v2174_v51  ;;  %vm2415_vm14 = vcmp.eq.s32.totalorder %v4964_v1, %v2414_v33  ;;  %vm2416_vm15 = vcmp.eq.s32.totalorder %v4980_v3, %v2414_v33 }
 0xf13   : > { %v5383_v34 = vsel %vm2415_vm14, 1.0, %v6089_v10  ;;  %v5386_v56 = vsel %vm2416_vm15, 1.0, %v6089_v10  ;;  %vm2417_vm0 = vcmp.eq.s32.totalorder %v4983_v4, %v2414_v33  ;;  %vm2418_vm1 = vcmp.eq.s32.totalorder %v4986_v5, %v2414_v33 }
 0xf14   : > { %4742 = vpow2.f32 %v2179_v38  ;;  %v5392_v51 = vpack.c.bf16 %v5386_v56, %v5383_v34  ;;  %v5398_v38 = vsel %vm2418_vm1, 1.0, %v6089_v10 }
 0xf15   : > { %4744 = vpow2.f32 %v2175_v36  ;;  %v5395_v36 = vsel %vm2417_vm0, 1.0, %v6089_v10 }
 0xf1c   : > { %v4741_v47 = vpop.eup %4740 }
 0xf1d   : > { %v2184_v45 = vsel %vm6092_vm5, %v4741_v47, 0.0 }
 0xf1e   : > { %v4743_v23 = vpop.eup %4742  ;;  %2185 = vadd.xlane.f32.xlu1 %v2184_v45  ;;  %v5403_v45 = vpack.c.bf16 %v5398_v38, %v5395_v36 }
 0xf1f   : > { %v2187_v35 = vsel %vm6092_vm5, %v4743_v23, 0.0  ;;  %v4745_v27 = vpop.eup %4744 }
 0xf20   : > { %2188 = vadd.xlane.f32.xlu0 %v2187_v35  ;;  %v2181_v39 = vsel %vm6092_vm5, %v4745_v27, 0.0 }
 0xf24   : > { %2182 = vadd.xlane.f32.xlu0 %v2181_v39 }
 0xf2f   : > { %2198 = vrot.lane.b32.xlu1 %v5067_v57, %s4861_s13 }
 0xf33   : > { %2445 = vrot.lane.b32.xlu1 %v5354_v28, %s4862_s15 }
 0xf37   : > { %2447 = vrot.lane.b32.xlu1 %v5359_v37, %s4862_s15 }
 0xf3a   : > { %2200 = vrot.lane.b32.xlu0 %v5072_v63, %s4861_s13 }
 0xf3b   : > { %2510 = vrot.lane.b32.xlu1 %v5366_v29, %s4862_s15 }
 0xf3f   : > { %2512 = vrot.lane.b32.xlu1 %v5371_v30, %s4862_s15 }
 0xf58   : > { %2429 = vxpose.xlu0.c.b16.start [1/2] (short) (narrow) %v5392_v51, 32 }
 0xf5c   : > { %2430 = vxpose.xlu0.c.b16.end [2/2] (short) (narrow) %v5403_v45, 32 }
 0xfab   : > { %v2186_v35 = vpop.xlane.xlu1 %2185 }
 0xfad   : > { %v2189_v39 = vpop.xlane.xlu0 %2188 }
 0xfae   : > { %4746 = vrcp.f32 %v2189_v39 }
 0xfaf   : > { %v2199_v31 = vpop.permute.xlu1 %2198  ;;  %4748 = vrcp.f32 %v2186_v35 }
 0xfb0   : > { %4406 = vmatprep.subr.bf16.mxu0 %v2199_v31 }
 0xfb1   : > { %v2183_v33 = vpop.xlane.xlu0 %2182  ;;  %4407 = vmatpush3.bf16.msra.mxu0 %v2199_v31 }
 0xfb2   : > { %4750 = vrcp.f32 %v2183_v33 }
 0xfb3   : > { %v2446_v19 = vpop.permute.xlu1 %2445 }
 0xfb4   : > { %4422 = vmatprep.subr.bf16.mxu1 %v2446_v19 }
 0xfb5   : > { %v2201_v10 = vpop.permute.xlu0 %2200  ;;  %4423 = vmatpush3.bf16.msra.mxu1 %v2446_v19 }
 0xfb6   : > { %4408 = vmatprep.subr.bf16.mxu0 %v2201_v10 }
 0xfb7   : > { %4409 = vmatpush3.bf16.msra.mxu0 %v2201_v10  ;;  %v2448_v48 = vpop.permute.xlu1 %2447 }
 0xfb8   : > { %4424 = vmatprep.subr.bf16.mxu1 %v2448_v48  ;;  %v4747_v44 = vpop.eup %4746 }
 0xfb9   : > { %4425 = vmatpush3.bf16.msra.mxu1 %v2448_v48  ;;  %v4749_v42 = vpop.eup %4748  ;;  %v2195_v60 = vmul.f32 %v4747_v44, %v4743_v23 }
 0xfba   : > { %v2194_v18 = vmul.f32 %v4749_v42, %v4741_v47 }
 0xfbb   : > { %v2197_v31 = vpack.c.bf16 %v2195_v60, %v2195_v60 }
 0xfbc   : > { %v4751_v26 = vpop.eup %4750 }
 0xfbd   : > { %v2193_v39 = vmul.f32 %v4751_v26, %v4745_v27 }
 0xfbe   : > { %v2437_v35 = vpop.trf.xlu0 }
 0xfbf   : > { %v2196_v61 = vpack.c.bf16 %v2194_v18, %v2193_v39  ;;  %4426 = vmatprep.mubr.msk.bf16.mxu1 %vm6092_vm5, %v2437_v35  ;;  %v2511_v35 = vpop.permute.xlu1 %2510 }
 0xfc1   : > { %4410 = vmatprep.mubr.msk.bf16.mxu0 %vm6092_vm5, %v2196_v61 }
 0xfc2   : > { %4411 = vmatmul.mubr.msk.bf16.vlgmr.msra.gmra.mrb[32].mxu0 %vm6092_vm5, %v2197_v31  ;;  %v2438_v19 = vpop.trf.xlu0  ;;  %v2521_v31 = vsel %vm6094_vm4, %v2511_v35, 0 }
 0xfc3   : > { %4427 = vmatmul.mubr.msk.bf16.vlgmr.msra.gmra.mrb[40].mxu1 %vm6092_vm5, %v2438_v19  ;;  %4418 = vmatprep.mubr.msk.bf16.mxu0 %vm6093_vm11, %v5307_v16  ;;  %v2513_v19 = vpop.permute.xlu1 %2512 }
0x1095   : > { %v4412_v10 = vpop.f32.mrb[32].mxu0 }
0x1096   : > { %v2244_v48 = vpop.f32.mrb[33].mxu0  ;;  %v4428_v44 = vpop.f32.mrb[40].mxu1  ;;  %v2259_v61 = vpack.c.bf16 %v4412_v10, %v4412_v10  ;;  %v2524_v10 = vsel %vm6094_vm4, %v2513_v19, 0 }
0x1097   : > { %v4413_v26 = vpop.f32.mrb[34].mxu0  ;;  %v2491_v42 = vpop.f32.mrb[41].mxu1 }
0x1098   : > { %v2247_v47 = vpop.f32.mrb[35].mxu0  ;;  %v2505_v18 = vmul.f32 0.35355338, %v2491_v42  ;;  %v4429_v23 = vpop.f32.mrb[42].mxu1  ;;  %v2267_v16 = vsel %vm621_vm12, %v2259_v61, 0 }
0x1099   : > { %v2258_v27 = vpack.c.bf16 %v2247_v47, %v2244_v48  ;;  %v2494_v60 = vpop.f32.mrb[43].mxu1  ;;  %v2507_v48 = vmul.f32 0.35355338, %v4428_v44 }
0x109a   : > { %v2506_v33 = vmul.f32 0.35355338, %v2494_v60 }
0x109b   : > { %4414 = vmatprep.subr.bf16.mxu0 %v2258_v27  ;;  %v2509_v26 = vpack.c.bf16 %v2507_v48, %v2507_v48 }
0x109c   : > { %4415 = vmatpush3.bf16.msra.mxu0 %v2258_v27  ;;  %v2508_v39 = vpack.c.bf16 %v2506_v33, %v2505_v18 }
0x109d   : > { %4544 = vmatprep.subr.msk.bf16.mxu0 %vm621_vm12, %v2259_v61 }
0x10a0   : > { %4417 = vmatpush3.bf16.msra.mxu0 %v2267_v16 }
0x10a1   : > { %4545 = vmatprep.subr.msk.bf16.mxu0 %vm6094_vm4, %v2511_v35 }
0x10a3   : > { %4419 = vmatmul.mubr.msk.bf16.vlgmr.msra.gmra.mrb[36].mxu0 %vm6093_vm11, %v5318_v46 }
0x10a4   : > { %4434 = vmatprep.mubr.msk.bf16.mxu0 %vm6094_vm4, %v2508_v39 }
0x10a9   : > { %4431 = vmatpush3.bf16.xpose.msra.mxu0 %v2521_v31 }
0x10aa   : > { %4546 = vmatprep.subr.msk.bf16.mxu0 %vm6094_vm4, %v2513_v19 }
0x10b1   : > { %4433 = vmatpush3.bf16.xpose.msra.mxu0 %v2524_v10 }
0x10b8   : > { %4435 = vmatmul.mubr.msk.bf16.vlgmr.msra.gmra.mrb[40].mxu0 %vm6094_vm4, %v2509_v26 }
0x1176   : > { %v5422_v42 = vpop.f32.mrb[36].mxu0 }
0x1177   : > { %6110 = vst [vmem:[#allocation18_spill] sm:$0xff] %v5422_v42  ;;  %v5424_v47 = vpop.f32.mrb[37].mxu0 }
0x1178   : > { %6111 = vst [vmem:[#allocation19_spill] sm:$0xff] %v5424_v47  ;;  %v5426_v46 = vpop.f32.mrb[38].mxu0 }
0x1179   : > { %6112 = vst [vmem:[#allocation20_spill] sm:$0xff] %v5426_v46  ;;  %v5428_v18 = vpop.f32.mrb[39].mxu0 }
0x117a   : > { %6113 = vst [vmem:[#allocation21_spill] sm:$0xff] %v5428_v18 }
0x118b   : > { %v4436_v23 = vpop.f32.mrb[40].mxu0 }
0x118c   : > { %v2560_v27 = vpop.f32.mrb[41].mxu0  ;;  %v2580_v39 = vsel %vm6092_vm5, %v4436_v23, -inf }
0x118d   : > { %v4437_v60 = vpop.f32.mrb[42].mxu0  ;;  %v2574_v33 = vsel %vm6092_vm5, %v2560_v27, -inf }
0x118e   : > { %2575 = vmax.xlane.f32.xlu1 %v2574_v33  ;;  %v2563_v61 = vpop.f32.mrb[43].mxu0 }
0x118f   : > { %v2577_v44 = vsel %vm6092_vm5, %v2563_v61, -inf }
0x1190   : > { %2578 = vmax.xlane.f32.xlu0 %v2577_v44 }
0x1192   : > { %2581 = vmax.xlane.f32.xlu1 %v2580_v39 }
0x121b   : > { %v2576_v35 = vpop.xlane.xlu1 %2575 }
0x121c   : > { %v2583_v31 = vsub.f32 %v2560_v27, %v2576_v35 }
0x121d   : > { %v2579_v16 = vpop.xlane.xlu0 %2578 }
0x121e   : > { %v2584_v19 = vsub.f32 %v2563_v61, %v2579_v16  ;;  %v2586_v18 = vmul.f32 1.442695, %v2583_v31 }
0x121f   : > { %v2582_v10 = vpop.xlane.xlu1 %2581 }
0x1220   : > { %v2588_v48 = vmul.f32 1.442695, %v2584_v19  ;;  %v2585_v26 = vsub.f32 %v4436_v23, %v2582_v10  ;;  %v6114_v23 = vmov 0.0  }
0x1222   : > { %4752 = vpow2.f32 %v2588_v48  ;;  %v2590_v60 = vmul.f32 1.442695, %v2585_v26 }
0x1224   : > { %4754 = vpow2.f32 %v2590_v60 }
0x1225   : > { %4756 = vpow2.f32 %v2586_v18 }
0x122c   : > { %v4753_v33 = vpop.eup %4752 }
0x122d   : > { %v2595_v47 = vsel %vm6092_vm5, %v4753_v33, 0.0 }
0x122e   : > { %v4755_v46 = vpop.eup %4754  ;;  %2596 = vadd.xlane.f32.xlu1 %v2595_v47  ;;  %v2824_v47 = vsub.s32 6, %v4964_v1 }
0x122f   : > { %v2598_v44 = vsel %vm6092_vm5, %v4755_v46, 0.0  ;;  %v4757_v39 = vpop.eup %4756 }
0x1230   : > { %2599 = vadd.xlane.f32.xlu0 %v2598_v44  ;;  %v2592_v27 = vsel %vm6092_vm5, %v4757_v39, 0.0  ;;  %v2825_v18 = vrot.slane %v5377_v32, %v2824_v47 }
0x1232   : > { %vm2826_vm2 = vcmp.eq.s32.totalorder %v4964_v1, %v2825_v18  ;;  %vm2827_vm3 = vcmp.eq.s32.totalorder %v4980_v3, %v2825_v18  ;;  %vm2828_vm7 = vcmp.eq.s32.totalorder %v4983_v4, %v2825_v18  ;;  %vm2829_vm8 = vcmp.eq.s32.totalorder %v4986_v5, %v2825_v18 }
0x1233   : > { %v5453_v61 = vsel %vm2826_vm2, 1.0, %v6114_v23  ;;  %v5456_v35 = vsel %vm2827_vm3, 1.0, %v6114_v23  ;;  %v5465_v31 = vsel %vm2828_vm7, 1.0, %v6114_v23  ;;  %v5468_v19 = vsel %vm2829_vm8, 1.0, %v6114_v23 }
0x1234   : > { %2593 = vadd.xlane.f32.xlu0 %v2592_v27  ;;  %v5462_v16 = vpack.c.bf16 %v5456_v35, %v5453_v61  ;;  %v5473_v10 = vpack.c.bf16 %v5468_v19, %v5465_v31 }
0x123f   : > { %2609 = vrot.lane.b32.xlu1 %v5067_v57, %s4862_s15 }
0x1243   : > { %2856 = vrot.lane.b32.xlu1 %v5354_v28, %s4863_s14 }
0x1247   : > { %2858 = vrot.lane.b32.xlu1 %v5359_v37, %s4863_s14 }
0x124a   : > { %2611 = vrot.lane.b32.xlu0 %v5072_v63, %s4862_s15 }
0x124b   : > { %2921 = vrot.lane.b32.xlu1 %v5366_v29, %s4863_s14 }
0x124f   : > { %2923 = vrot.lane.b32.xlu1 %v5371_v30, %s4863_s14 }
0x1268   : > { %2840 = vxpose.xlu0.c.b16.start [1/2] (short) (narrow) %v5462_v16, 32 }
0x126c   : > { %2841 = vxpose.xlu0.c.b16.end [2/2] (short) (narrow) %v5473_v10, 32 }
0x12bb   : > { %v2597_v48 = vpop.xlane.xlu1 %2596 }
0x12bd   : > { %v2600_v26 = vpop.xlane.xlu0 %2599 }
0x12be   : > { %4758 = vrcp.f32 %v2600_v26 }
0x12bf   : > { %v2610_v60 = vpop.permute.xlu1 %2609  ;;  %4760 = vrcp.f32 %v2597_v48 }
0x12c0   : > { %4438 = vmatprep.subr.bf16.mxu1 %v2610_v60 }
0x12c1   : > { %v2594_v44 = vpop.xlane.xlu0 %2593  ;;  %4439 = vmatpush3.bf16.msra.mxu1 %v2610_v60 }
0x12c2   : > { %4762 = vrcp.f32 %v2594_v44 }
0x12c3   : > { %v2857_v27 = vpop.permute.xlu1 %2856 }
0x12c4   : > { %4454 = vmatprep.subr.bf16.mxu0 %v2857_v27 }
0x12c5   : > { %v2612_v47 = vpop.permute.xlu0 %2611  ;;  %4455 = vmatpush3.bf16.msra.mxu0 %v2857_v27 }
0x12c6   : > { %4440 = vmatprep.subr.bf16.mxu1 %v2612_v47 }
0x12c7   : > { %4441 = vmatpush3.bf16.msra.mxu1 %v2612_v47  ;;  %v2859_v18 = vpop.permute.xlu1 %2858 }
0x12c8   : > { %4456 = vmatprep.subr.bf16.mxu0 %v2859_v18  ;;  %v4759_v42 = vpop.eup %4758 }
0x12c9   : > { %4457 = vmatpush3.bf16.msra.mxu0 %v2859_v18  ;;  %v4761_v43 = vpop.eup %4760  ;;  %v2606_v54 = vmul.f32 %v4759_v42, %v4755_v46 }
0x12ca   : > { %v2605_v40 = vmul.f32 %v4761_v43, %v4753_v33 }
0x12cb   : > { %v2608_v60 = vpack.c.bf16 %v2606_v54, %v2606_v54 }
0x12cc   : > { %v4763_v41 = vpop.eup %4762 }
0x12cd   : > { %v2604_v26 = vmul.f32 %v4763_v41, %v4757_v39 }
0x12ce   : > { %v2848_v48 = vpop.trf.xlu0 }
0x12cf   : > { %v2607_v17 = vpack.c.bf16 %v2605_v40, %v2604_v26  ;;  %4458 = vmatprep.mubr.msk.bf16.mxu0 %vm6092_vm5, %v2848_v48  ;;  %v2922_v48 = vpop.permute.xlu1 %2921 }
0x12d1   : > { %4442 = vmatprep.mubr.msk.bf16.mxu1 %vm6092_vm5, %v2607_v17 }
0x12d2   : > { %4443 = vmatmul.mubr.msk.bf16.vlgmr.msra.gmra.mrb[44].mxu1 %vm6092_vm5, %v2608_v60  ;;  %v2849_v44 = vpop.trf.xlu0  ;;  %v2932_v60 = vsel %vm6094_vm4, %v2922_v48, 0 }
0x12d3   : > { %4459 = vmatmul.mubr.msk.bf16.vlgmr.msra.gmra.mrb[44].mxu0 %vm6092_vm5, %v2849_v44  ;;  %4450 = vmatprep.mubr.msk.bf16.mxu1 %vm6093_vm11, %v5392_v51  ;;  %v2924_v44 = vpop.permute.xlu1 %2923 }
0x13a5   : > { %v4444_v27 = vpop.f32.mrb[44].mxu1 }
0x13a6   : > { %v2655_v47 = vpop.f32.mrb[45].mxu1  ;;  %v4460_v42 = vpop.f32.mrb[44].mxu0  ;;  %v2670_v17 = vpack.c.bf16 %v4444_v27, %v4444_v27  ;;  %v2935_v27 = vsel %vm6094_vm4, %v2924_v44, 0 }
0x13a7   : > { %v4445_v41 = vpop.f32.mrb[46].mxu1  ;;  %v2902_v43 = vpop.f32.mrb[45].mxu0 }
0x13a8   : > { %v2658_v46 = vpop.f32.mrb[47].mxu1  ;;  %v2916_v40 = vmul.f32 0.35355338, %v2902_v43  ;;  %v4461_v33 = vpop.f32.mrb[46].mxu0  ;;  %v2678_v51 = vsel %vm621_vm12, %v2670_v17, 0 }
0x13a9   : > { %v2669_v39 = vpack.c.bf16 %v2658_v46, %v2655_v47  ;;  %v2905_v54 = vpop.f32.mrb[47].mxu0  ;;  %v2918_v47 = vmul.f32 0.35355338, %v4460_v42 }
0x13aa   : > { %v2917_v18 = vmul.f32 0.35355338, %v2905_v54 }
0x13ab   : > { %4446 = vmatprep.subr.bf16.mxu1 %v2669_v39  ;;  %v2920_v41 = vpack.c.bf16 %v2918_v47, %v2918_v47 }
0x13ac   : > { %4447 = vmatpush3.bf16.msra.mxu1 %v2669_v39  ;;  %v2919_v26 = vpack.c.bf16 %v2917_v18, %v2916_v40 }
0x13ad   : > { %4547 = vmatprep.subr.msk.bf16.mxu1 %vm621_vm12, %v2670_v17 }
0x13b0   : > { %4449 = vmatpush3.bf16.msra.mxu1 %v2678_v51 }
0x13b1   : > { %4548 = vmatprep.subr.msk.bf16.mxu1 %vm6094_vm4, %v2922_v48 }
0x13b3   : > { %4451 = vmatmul.mubr.msk.bf16.vlgmr.msra.gmra.mrb[48].mxu1 %vm6093_vm11, %v5403_v45 }
0x13b4   : > { %4466 = vmatprep.mubr.msk.bf16.mxu1 %vm6094_vm4, %v2919_v26 }
0x13b9   : > { %4463 = vmatpush3.bf16.xpose.msra.mxu1 %v2932_v60 }
0x13ba   : > { %4549 = vmatprep.subr.msk.bf16.mxu1 %vm6094_vm4, %v2924_v44 }
0x13c1   : > { %4465 = vmatpush3.bf16.xpose.msra.mxu1 %v2935_v27 }
0x13c8   : > { %4467 = vmatmul.mubr.msk.bf16.vlgmr.msra.gmra.mrb[52].mxu1 %vm6094_vm4, %v2920_v41 }
0x1486   : > { %v5492_v43 = vpop.f32.mrb[48].mxu1 }
0x1487   : > { %6115 = vst [vmem:[#allocation22_spill] sm:$0xff] %v5492_v43  ;;  %v5494_v46 = vpop.f32.mrb[49].mxu1 }
0x1488   : > { %v5496_v45 = vpop.f32.mrb[50].mxu1 }
0x1489   : > { %6116 = vst [vmem:[#allocation23_spill] sm:$0xff] %v5496_v45  ;;  %v5498_v40 = vpop.f32.mrb[51].mxu1 }
0x148a   : > { %6117 = vst [vmem:[#allocation24_spill] sm:$0xff] %v5498_v40 }
0x149b   : > { %v4468_v33 = vpop.f32.mrb[52].mxu1 }
0x149c   : > { %v2971_v39 = vpop.f32.mrb[53].mxu1  ;;  %v2991_v26 = vsel %vm6092_vm5, %v4468_v33, -inf }
0x149d   : > { %v4469_v54 = vpop.f32.mrb[54].mxu1  ;;  %v2985_v18 = vsel %vm6092_vm5, %v2971_v39, -inf }
0x149e   : > { %2986 = vmax.xlane.f32.xlu1 %v2985_v18  ;;  %v2974_v17 = vpop.f32.mrb[55].mxu1 }
0x149f   : > { %v2988_v42 = vsel %vm6092_vm5, %v2974_v17, -inf }
0x14a0   : > { %2989 = vmax.xlane.f32.xlu0 %v2988_v42 }
0x14a2   : > { %2992 = vmax.xlane.f32.xlu1 %v2991_v26 }
0x152b   : > { %v2987_v48 = vpop.xlane.xlu1 %2986 }
0x152c   : > { %v2994_v60 = vsub.f32 %v2971_v39, %v2987_v48 }
0x152d   : > { %v2990_v51 = vpop.xlane.xlu0 %2989 }
0x152e   : > { %v2995_v44 = vsub.f32 %v2974_v17, %v2990_v51  ;;  %v2997_v45 = vmul.f32 1.442695, %v2994_v60 }
0x152f   : > { %v2993_v27 = vpop.xlane.xlu1 %2992 }
0x1530   : > { %v2999_v47 = vmul.f32 1.442695, %v2995_v44  ;;  %v2996_v41 = vsub.f32 %v4468_v33, %v2993_v27 }
0x1532   : > { %4764 = vpow2.f32 %v2999_v47  ;;  %v3001_v54 = vmul.f32 1.442695, %v2996_v41 }
0x1534   : > { %4766 = vpow2.f32 %v3001_v54 }
0x1535   : > { %4768 = vpow2.f32 %v2997_v45 }
0x153c   : > { %v4765_v18 = vpop.eup %4764 }
0x153d   : > { %v3006_v43 = vsel %vm6092_vm5, %v4765_v18, 0.0 }
0x153e   : > { %v4767_v40 = vpop.eup %4766  ;;  %3007 = vadd.xlane.f32.xlu1 %v3006_v43  ;;  %v3235_v43 = vsub.s32 7, %v4964_v1 }
0x153f   : > { %v3009_v42 = vsel %vm6092_vm5, %v4767_v40, 0.0  ;;  %v4769_v26 = vpop.eup %4768 }
0x1540   : > { %3010 = vadd.xlane.f32.xlu0 %v3009_v42  ;;  %v3003_v39 = vsel %vm6092_vm5, %v4769_v26, 0.0  ;;  %v3236_v45 = vrot.slane %v5377_v32, %v3235_v43 }
0x1542   : > { %vm3237_vm9 = vcmp.eq.s32.totalorder %v4964_v1, %v3236_v45  ;;  %vm3238_vm10 = vcmp.eq.s32.totalorder %v4980_v3, %v3236_v45  ;;  %vm3239_vm13 = vcmp.eq.s32.totalorder %v4983_v4, %v3236_v45  ;;  %vm3240_vm14 = vcmp.eq.s32.totalorder %v4986_v5, %v3236_v45 }
0x1543   : > { %v5538_v32 = vsel %vm3240_vm14, 1.0, %v6114_v23 }
0x1544   : > { %3004 = vadd.xlane.f32.xlu0 %v3003_v39 }
0x154f   : > { %3020 = vrot.lane.b32.xlu1 %v5067_v57, %s4863_s14 }
0x1553   : > { %3267 = vrot.lane.b32.xlu1 %v5354_v28, %s4864_s16  ;;  %v5523_v28 = vsel %vm3237_vm9, 1.0, %v6114_v23 }
0x1557   : > { %3269 = vrot.lane.b32.xlu1 %v5359_v37, %s4864_s16  ;;  %v5526_v37 = vsel %vm3238_vm10, 1.0, %v6114_v23 }
0x155a   : > { %3022 = vrot.lane.b32.xlu0 %v5072_v63, %s4863_s14 }
0x155b   : > { %3332 = vrot.lane.b32.xlu1 %v5366_v29, %s4864_s16  ;;  %v5532_v29 = vpack.c.bf16 %v5526_v37, %v5523_v28 }
0x155f   : > { %3334 = vrot.lane.b32.xlu1 %v5371_v30, %s4864_s16  ;;  %v5535_v30 = vsel %vm3239_vm13, 1.0, %v6114_v23 }
0x1560   : > { %v5543_v3 = vpack.c.bf16 %v5538_v32, %v5535_v30 }
0x1578   : > { %3251 = vxpose.xlu0.c.b16.start [1/2] (short) (narrow) %v5532_v29, 32 }
0x157c   : > { %3252 = vxpose.xlu0.c.b16.end [2/2] (short) (narrow) %v5543_v3, 32 }
0x15cb   : > { %v3008_v4 = vpop.xlane.xlu1 %3007 }
0x15cd   : > { %v3011_v5 = vpop.xlane.xlu0 %3010 }
0x15ce   : > { %4770 = vrcp.f32 %v3011_v5 }
0x15cf   : > { %v3021_v33 = vpop.permute.xlu1 %3020  ;;  %4772 = vrcp.f32 %v3008_v4 }
0x15d0   : > { %4470 = vmatprep.subr.bf16.mxu0 %v3021_v33 }
0x15d1   : > { %v3005_v17 = vpop.xlane.xlu0 %3004  ;;  %4471 = vmatpush3.bf16.msra.mxu0 %v3021_v33 }
0x15d2   : > { %4774 = vrcp.f32 %v3005_v17 }
0x15d3   : > { %v3268_v48 = vpop.permute.xlu1 %3267 }
0x15d4   : > { %4486 = vmatprep.subr.bf16.mxu1 %v3268_v48 }
0x15d5   : > { %v3023_v23 = vpop.permute.xlu0 %3022  ;;  %4487 = vmatpush3.bf16.msra.mxu1 %v3268_v48 }
0x15d6   : > { %4472 = vmatprep.subr.bf16.mxu0 %v3023_v23 }
0x15d7   : > { %4473 = vmatpush3.bf16.msra.mxu0 %v3023_v23  ;;  %v3270_v51 = vpop.permute.xlu1 %3269 }
0x15d8   : > { %4488 = vmatprep.subr.bf16.mxu1 %v3270_v51  ;;  %v4771_v60 = vpop.eup %4770 }
0x15d9   : > { %4489 = vmatpush3.bf16.msra.mxu1 %v3270_v51  ;;  %v4773_v44 = vpop.eup %4772  ;;  %v3017_v47 = vmul.f32 %v4771_v60, %v4767_v40 }
0x15da   : > { %v3016_v54 = vmul.f32 %v4773_v44, %v4765_v18 }
0x15db   : > { %v3019_v43 = vpack.c.bf16 %v3017_v47, %v3017_v47  ;;  %v3333_v47 = vpop.permute.xlu1 %3332 }
0x15dc   : > { %v4775_v27 = vpop.eup %4774 }
0x15dd   : > { %v3015_v41 = vmul.f32 %v4775_v27, %v4769_v26 }
0x15de   : > { %v3259_v42 = vpop.trf.xlu0 }
0x15df   : > { %v3018_v39 = vpack.c.bf16 %v3016_v54, %v3015_v41  ;;  %4490 = vmatprep.mubr.msk.bf16.mxu1 %vm6092_vm5, %v3259_v42  ;;  %v3343_v41 = vsel %vm6094_vm4, %v3333_v47, 0  ;;  %v3335_v54 = vpop.permute.xlu1 %3334 }
0x15e0   : > { %v3346_v42 = vsel %vm6094_vm4, %v3335_v54, 0 }
0x15e1   : > { %4474 = vmatprep.mubr.msk.bf16.mxu0 %vm6092_vm5, %v3018_v39 }
0x15e2   : > { %4475 = vmatmul.mubr.msk.bf16.vlgmr.msra.gmra.mrb[48].mxu0 %vm6092_vm5, %v3019_v43  ;;  %v3260_v45 = vpop.trf.xlu0 }
0x15e3   : > { %4491 = vmatmul.mubr.msk.bf16.vlgmr.msra.gmra.mrb[56].mxu1 %vm6092_vm5, %v3260_v45  ;;  %4482 = vmatprep.mubr.msk.bf16.mxu0 %vm6093_vm11, %v5462_v16 }
0x16b5   : > { %v4476_v4 = vpop.f32.mrb[48].mxu0 }
0x16b6   : > { %v3066_v5 = vpop.f32.mrb[49].mxu0  ;;  %v4492_v40 = vpop.f32.mrb[56].mxu1  ;;  %v3081_v44 = vpack.c.bf16 %v4476_v4, %v4476_v4 }
0x16b7   : > { %v4477_v26 = vpop.f32.mrb[50].mxu0  ;;  %v3313_v18 = vpop.f32.mrb[57].mxu1  ;;  %v3329_v39 = vmul.f32 0.35355338, %v4492_v40 }
0x16b8   : > { %v3069_v33 = vpop.f32.mrb[51].mxu0  ;;  %v3327_v17 = vmul.f32 0.35355338, %v3313_v18  ;;  %v4493_v48 = vpop.f32.mrb[58].mxu1  ;;  %v3089_v16 = vsel %vm621_vm12, %v3081_v44, 0 }
0x16b9   : > { %v3080_v23 = vpack.c.bf16 %v3069_v33, %v3066_v5  ;;  %v3316_v51 = vpop.f32.mrb[59].mxu1  ;;  %v3331_v43 = vpack.c.bf16 %v3329_v39, %v3329_v39 }
0x16ba   : > { %v3328_v60 = vmul.f32 0.35355338, %v3316_v51 }
0x16bb   : > { %4478 = vmatprep.subr.bf16.mxu0 %v3080_v23 }
0x16bc   : > { %4479 = vmatpush3.bf16.msra.mxu0 %v3080_v23  ;;  %v3330_v27 = vpack.c.bf16 %v3328_v60, %v3327_v17 }
0x16bd   : > { %4550 = vmatprep.subr.msk.bf16.mxu0 %vm621_vm12, %v3081_v44 }
0x16c0   : > { %4481 = vmatpush3.bf16.msra.mxu0 %v3089_v16 }
0x16c1   : > { %4551 = vmatprep.subr.msk.bf16.mxu0 %vm6094_vm4, %v3333_v47 }
0x16c3   : > { %4483 = vmatmul.mubr.msk.bf16.vlgmr.msra.gmra.mrb[52].mxu0 %vm6093_vm11, %v5473_v10 }
0x16c4   : > { %4498 = vmatprep.mubr.msk.bf16.mxu0 %vm6094_vm4, %v3330_v27 }
0x16c9   : > { %4495 = vmatpush3.bf16.xpose.msra.mxu0 %v3343_v41 }
0x16ca   : > { %4552 = vmatprep.subr.msk.bf16.mxu0 %vm6094_vm4, %v3335_v54 }
0x16d1   : > { %4497 = vmatpush3.bf16.xpose.msra.mxu0 %v3346_v42 }
0x16d8   : > { %4499 = vmatmul.mubr.msk.bf16.vlgmr.msra.gmra.mrb[56].mxu0 %vm6094_vm4, %v3331_v43 }
0x1796   : > { %v5562_v45 = vpop.f32.mrb[52].mxu0 }
0x1797   : > { %v5564_v4 = vpop.f32.mrb[53].mxu0 }
0x1798   : > { %v5566_v10 = vpop.f32.mrb[54].mxu0 }
0x1799   : > { %v5568_v5 = vpop.f32.mrb[55].mxu0 }
0x17ab   : > { %v4500_v26 = vpop.f32.mrb[56].mxu0 }
0x17ac   : > { %v3382_v18 = vpop.f32.mrb[57].mxu0  ;;  %v3402_v23 = vsel %vm6092_vm5, %v4500_v26, -inf }
0x17ad   : > { %v4501_v33 = vpop.f32.mrb[58].mxu0  ;;  %v3396_v17 = vsel %vm6092_vm5, %v3382_v18, -inf }
0x17ae   : > { %3397 = vmax.xlane.f32.xlu1 %v3396_v17  ;;  %v3385_v48 = vpop.f32.mrb[59].mxu0 }
0x17af   : > { %v3399_v40 = vsel %vm6092_vm5, %v3385_v48, -inf }
0x17b0   : > { %3400 = vmax.xlane.f32.xlu0 %v3399_v40  ;;  %v684_v40 = vsel %vm6093_vm11, %v5015_v13, 0.0  ;;  %v1506_v13 = vsel %vm6093_vm11, %v5170_v52, 0.0  ;;  %v2322_v52 = vsel %vm6093_vm11, %v5298_v8, 0.0  ;;  %v2325_v8 = vsel %vm6093_vm11, %v5301_v9, 0.0 }
0x17b1   : > { %v3150_v9 = vsel %vm6093_vm11, %v5465_v31, 0.0  ;;  %v3153_v31 = vsel %vm6093_vm11, %v5468_v19, 0.0 }
0x17b2   : > { %3403 = vmax.xlane.f32.xlu1 %v3402_v23  ;;  %v681_v23 = vsel %vm6093_vm11, %v5012_v12, 0.0  ;;  %v1097_v12 = vsel %vm6093_vm11, %v5103_v25, 0.0  ;;  %v1917_v25 = vsel %vm6093_vm11, %v5240_v58, 0.0  ;;  %v1920_v58 = vsel %vm6093_vm11, %v5243_v59, 0.0 }
0x17b3   : > { %v3144_v59 = vsel %vm6093_vm11, %v5453_v61, 0.0  ;;  %v3147_v61 = vsel %vm6093_vm11, %v5456_v35, 0.0 }
0x183b   : > { %v3398_v51 = vpop.xlane.xlu1 %3397 }
0x183c   : > { %v3405_v44 = vsub.f32 %v3382_v18, %v3398_v51  ;;  %v1088_v51 = vsel %vm6093_vm11, %v5088_v20, 0.0  ;;  %v4865_v20 = vmov 0  }
0x183d   : > { %v3401_v60 = vpop.xlane.xlu0 %3400  ;;  %4613 = vset.pattern.permute.xlu1 %v4865_v20  ;;  %4612 = vset.pattern.permute.xlu0 %v4865_v20 }
0x183e   : > { %v3406_v27 = vsub.f32 %v3385_v48, %v3401_v60  ;;  %v3408_v54 = vmul.f32 1.442695, %v3405_v44  ;;  %v678_v48 = vsel %vm6093_vm11, %v5009_v11, 0.0  ;;  %v1091_v11 = vsel %vm6093_vm11, %v5091_v22, 0.0 }
0x183f   : > { %v3404_v47 = vpop.xlane.xlu1 %3403  ;;  %v1503_v22 = vsel %vm6093_vm11, %v5161_v50, 0.0  ;;  %v2328_v50 = vsel %vm6093_vm11, %v5310_v6, 0.0  ;;  %v2331_v6 = vsel %vm6093_vm11, %v5313_v21, 0.0  ;;  %v3555_v21 = vsel %vm6093_vm11, %v5523_v28, 0.0 }
0x1840   : > { %v3410_v16 = vmul.f32 1.442695, %v3406_v27  ;;  %v3407_v41 = vsub.f32 %v4500_v26, %v3404_v47  ;;  %v3564_v28 = vsel %vm6093_vm11, %v5538_v32, 0.0 }
0x1842   : > { %4776 = vpow2.f32 %v3410_v16  ;;  %v3412_v42 = vmul.f32 1.442695, %v3407_v41 }
0x1844   : > { %4778 = vpow2.f32 %v3412_v42 }
0x1845   : > { %4780 = vpow2.f32 %v3408_v54 }
0x184c   : > { %v5573_v39 = vpop.eup %4776 }
0x184d   : > { %v3417_v43 = vsel %vm6092_vm5, %v5573_v39, 0.0 }
0x184e   : > { %v5577_v33 = vpop.eup %4778  ;;  %3418 = vadd.xlane.f32.xlu1 %v3417_v43  ;;  %v4866_v43 = vmov 839922192  }
0x184f   : > { %v3420_v18 = vsel %vm6092_vm5, %v5577_v33, 0.0  ;;  %v5581_v17 = vpop.eup %4780 }
0x1850   : > { %3421 = vadd.xlane.f32.xlu0 %v3420_v18  ;;  %v3414_v26 = vsel %vm6092_vm5, %v5581_v17, 0.0  ;;  %v697_v18 = vunpack.c.l.s4 %v4866_v43 }
0x1854   : > { %3415 = vadd.xlane.f32.xlu0 %v3414_v26  ;;  %v4867_v26 = vmov 1985246804  }
0x185f   : > { %3431 = vrot.lane.b32.xlu1 %v5067_v57, %s4864_s16  ;;  %v687_v57 = vsel %vm6093_vm11, %v5018_v14, 0.0  ;;  %v1500_v14 = vsel %vm6093_vm11, %v5158_v49, 0.0  ;;  %v1509_v49 = vsel %vm6093_vm11, %v5173_v53, 0.0  ;;  %v2733_v53 = vsel %vm6093_vm11, %v5383_v34, 0.0 }
0x1860   : > { %v2736_v34 = vsel %vm6093_vm11, %v5386_v56, 0.0  ;;  %v3561_v56 = vsel %vm6093_vm11, %v5535_v30, 0.0 }
0x186a   : > { %3433 = vrot.lane.b32.xlu0 %v5072_v63, %s4864_s16  ;;  %v1094_v63 = vsel %vm6093_vm11, %v5100_v24, 0.0  ;;  %v1911_v24 = vsel %vm6093_vm11, %v5228_v55, 0.0  ;;  %v1914_v55 = vsel %vm6093_vm11, %v5231_v15, 0.0  ;;  %v2739_v15 = vsel %vm6093_vm11, %v5395_v36, 0.0 }
0x186b   : > { %v2742_v36 = vsel %vm6093_vm11, %v5398_v38, 0.0  ;;  %v3558_v38 = vsel %vm6093_vm11, %v5526_v37, 0.0 }
0x1883   : > { %679 = vadd.xlane.f32.xlu1 %v678_v48  ;;  %v704_v48 = vunpack.c.l.s4 %v4867_v26 }
0x1887   : > { %685 = vadd.xlane.f32.xlu1 %v684_v40 }
0x1889   : > { %682 = vadd.xlane.f32.xlu0 %v681_v23  ;;  %v698_v23 = vunpack.c.0.s8 %v697_v18 }
0x188b   : > { %1089 = vadd.xlane.f32.xlu1 %v1088_v51 }
0x188d   : > { %688 = vadd.xlane.f32.xlu0 %v687_v57 }
0x188f   : > { %1095 = vadd.xlane.f32.xlu1 %v1094_v63 }
0x1891   : > { %1092 = vadd.xlane.f32.xlu0 %v1091_v11 }
0x1893   : > { %1098 = vadd.xlane.f32.xlu1 %v1097_v12 }
0x1895   : > { %1507 = vadd.xlane.f32.xlu0 %v1506_v13 }
0x1897   : > { %1501 = vadd.xlane.f32.xlu1 %v1500_v14 }
0x1899   : > { %1912 = vadd.xlane.f32.xlu0 %v1911_v24 }
0x189b   : > { %1504 = vadd.xlane.f32.xlu1 %v1503_v22 }
0x189d   : > { %1918 = vadd.xlane.f32.xlu0 %v1917_v25 }
0x189f   : > { %1510 = vadd.xlane.f32.xlu1 %v1509_v49 }
0x18a1   : > { %2323 = vadd.xlane.f32.xlu0 %v2322_v52 }
0x18a3   : > { %1915 = vadd.xlane.f32.xlu1 %v1914_v55 }
0x18a5   : > { %2329 = vadd.xlane.f32.xlu0 %v2328_v50 }
0x18a7   : > { %1921 = vadd.xlane.f32.xlu1 %v1920_v58 }
0x18a9   : > { %2734 = vadd.xlane.f32.xlu0 %v2733_v53 }
0x18ab   : > { %2326 = vadd.xlane.f32.xlu1 %v2325_v8 }
0x18ad   : > { %2740 = vadd.xlane.f32.xlu0 %v2739_v15 }
0x18af   : > { %2332 = vadd.xlane.f32.xlu1 %v2331_v6 }
0x18b1   : > { %3145 = vadd.xlane.f32.xlu0 %v3144_v59 }
0x18b3   : > { %2737 = vadd.xlane.f32.xlu1 %v2736_v34 }
0x18b5   : > { %3151 = vadd.xlane.f32.xlu0 %v3150_v9 }
0x18b7   : > { %2743 = vadd.xlane.f32.xlu1 %v2742_v36 }
0x18b9   : > { %3556 = vadd.xlane.f32.xlu0 %v3555_v21 }
0x18bb   : > { %3148 = vadd.xlane.f32.xlu1 %v3147_v61 }
0x18bd   : > { %3562 = vadd.xlane.f32.xlu0 %v3561_v56 }
0x18bf   : > { %3154 = vadd.xlane.f32.xlu1 %v3153_v31 }
0x18c3   : > { %3559 = vadd.xlane.f32.xlu1 %v3558_v38 }
0x18c7   : > { %3565 = vadd.xlane.f32.xlu1 %v3564_v28 }
0x18db   : > { %v3419_v60 = vpop.xlane.xlu1 %3418 }
0x18dd   : > { %v3422_v35 = vpop.xlane.xlu0 %3421 }
0x18de   : > { %4782 = vrcp.f32 %v3422_v35 }
0x18df   : > { %v3432_v44 = vpop.permute.xlu1 %3431  ;;  %4784 = vrcp.f32 %v3419_v60 }
0x18e0   : > { %4502 = vmatprep.subr.bf16.mxu1 %v3432_v44 }
0x18e1   : > { %v3416_v30 = vpop.xlane.xlu0 %3415  ;;  %4503 = vmatpush3.bf16.msra.mxu1 %v3432_v44 }
0x18e2   : > { %4786 = vrcp.f32 %v3416_v30 }
0x18e5   : > { %v3434_v19 = vpop.permute.xlu0 %3433 }
0x18e6   : > { %4504 = vmatprep.subr.bf16.mxu1 %v3434_v19 }
0x18e7   : > { %4505 = vmatpush3.bf16.msra.mxu1 %v3434_v19 }
0x18e8   : > { %v4783_v27 = vpop.eup %4782 }
0x18e9   : > { %v4785_v47 = vpop.eup %4784  ;;  %v3428_v16 = vmul.f32 %v4783_v27, %v5577_v33  ;;  %v705_v33 = vunpack.c.0.s8 %v704_v48 }
0x18ea   : > { %v3427_v41 = vmul.f32 %v4785_v47, %v5573_v39  ;;  %v5663_v39 = vsub.s32 %v698_v23, %v4964_v1 }
0x18eb   : > { %v3430_v42 = vpack.c.bf16 %v3428_v16, %v3428_v16  ;;  %v5666_v57 = vsub.s32 %v705_v33, %v4964_v1 }
0x18ec   : > { %v4787_v37 = vpop.eup %4786 }
0x18ed   : > { %v3426_v32 = vmul.f32 %v4787_v37, %v5581_v17 }
0x18ef   : > { %v3429_v54 = vpack.c.bf16 %v3427_v41, %v3426_v32 }
0x18f1   : > { %4506 = vmatprep.mubr.msk.bf16.mxu1 %vm6092_vm5, %v3429_v54 }
0x18f2   : > { %4507 = vmatmul.mubr.msk.bf16.vlgmr.msra.gmra.mrb[60].mxu1 %vm6092_vm5, %v3430_v42 }
0x18f3   : > { %4514 = vmatprep.mubr.msk.bf16.mxu1 %vm6093_vm11, %v5532_v29 }
0x1910   : > { %v680_v40 = vpop.xlane.xlu1 %679 }
0x1914   : > { %v686_v51 = vpop.xlane.xlu1 %685 }
0x1916   : > { %v683_v17 = vpop.xlane.xlu0 %682 }
0x1917   : > { %v690_v63 = vpack.c.bf16 %v683_v17, %v680_v40 }
0x1918   : > { %v1090_v11 = vpop.xlane.xlu1 %1089 }
0x1919   : > { %vm692_vm15 = vcmp.gt.bf16.partialorder %v690_v63, 0 }
0x191a   : > { %v694_v29 = vsel %vm692_vm15, 65537, %v4865_v20  ;;  %v689_v12 = vpop.xlane.xlu0 %688 }
0x191b   : > { %v702_v13 = vrot.slane %v694_v29, %v5663_v39  ;;  %v709_v14 = vrot.slane %v694_v29, %v5666_v57  ;;  %v691_v24 = vpack.c.bf16 %v689_v12, %v686_v51 }
0x191c   : > { %v1096_v22 = vpop.xlane.xlu1 %1095 }
0x191d   : > { %vm724_vm0 = vcmp.ne.s16.totalorder %v702_v13, 0  ;;  %vm725_vm1 = vcmp.ne.s16.totalorder %v709_v14, 0  ;;  %vm693_vm2 = vcmp.gt.bf16.partialorder %v691_v24, 0 }
0x191e   : > { %v728_v25 = vsel %vm724_vm0, 65537, %v4865_v20  ;;  %v729_v1 = vsel %vm725_vm1, 65537, %v4865_v20  ;;  %v695_v49 = vsel %vm693_vm2, 65537, %v4865_v20  ;;  %v1093_v52 = vpop.xlane.xlu0 %1092 }
0x191f   : > { %v733_v55 = vunpack.c.l.b16 %v729_v1  ;;  %v716_v50 = vrot.slane %v695_v49, %v5663_v39  ;;  %v723_v58 = vrot.slane %v695_v49, %v5666_v57  ;;  %v732_v53 = vunpack.c.l.b16 %v728_v25 }
0x1920   : > { %v1099_v8 = vpop.xlane.xlu1 %1098  ;;  %v1100_v15 = vpack.c.bf16 %v1093_v52, %v1090_v11 }
0x1921   : > { %vm726_vm3 = vcmp.ne.s16.totalorder %v716_v50, 0  ;;  %vm727_vm7 = vcmp.ne.s16.totalorder %v723_v58, 0  ;;  %v1101_v6 = vpack.c.bf16 %v1099_v8, %v1096_v22  ;;  %vm737_vm8 = vcmp.ne.s32.totalorder %v733_v55, 0 }
0x1922   : > { %v730_v59 = vsel %vm726_vm3, 65537, %v4865_v20  ;;  %v731_v34 = vsel %vm727_vm7, 65537, %v4865_v20  ;;  %vm1102_vm9 = vcmp.gt.bf16.partialorder %v1100_v15, 0  ;;  %v741_v9 = vsel %vm737_vm8, 1, %v4865_v20  ;;  %v1508_v36 = vpop.xlane.xlu0 %1507 }
0x1923   : > { %v734_v21 = vunpack.c.l.b16 %v730_v59  ;;  %v735_v61 = vunpack.c.l.b16 %v731_v34  ;;  %vm1103_vm10 = vcmp.gt.bf16.partialorder %v1101_v6, 0  ;;  %v1104_v56 = vsel %vm1102_vm9, 65537, %v4865_v20  ;;  %748 = vperm.xlu0 %4612, %v741_v9  }
0x1924   : > { %v1105_v31 = vsel %vm1103_vm10, 65537, %v4865_v20  ;;  %v1112_v38 = vrot.slane %v1104_v56, %v5663_v39  ;;  %v1119_v28 = vrot.slane %v1104_v56, %v5666_v57  ;;  %vm736_vm13 = vcmp.ne.s32.totalorder %v732_v53, 0  ;;  %v1502_v60 = vpop.xlane.xlu1 %1501 }
0x1925   : > { %v1126_v35 = vrot.slane %v1105_v31, %v5663_v39  ;;  %v1133_v44 = vrot.slane %v1105_v31, %v5666_v57  ;;  %v740_v30 = vsel %vm736_vm13, 1, %v4865_v20  ;;  %vm738_vm14 = vcmp.ne.s32.totalorder %v734_v21, 0 }
0x1926   : > { %vm1134_vm15 = vcmp.ne.s16.totalorder %v1112_v38, 0  ;;  %vm1135_vm0 = vcmp.ne.s16.totalorder %v1119_v28, 0  ;;  %745 = vperm.xlu1 %4613, %v740_v30   ;;  %v742_v19 = vsel %vm738_vm14, 1, %v4865_v20  ;;  %vm739_vm1 = vcmp.ne.s32.totalorder %v735_v61, 0  ;;  %v1913_v27 = vpop.xlane.xlu0 %1912 }
0x1927   : > { %vm1136_vm2 = vcmp.ne.s16.totalorder %v1126_v35, 0  ;;  %vm1137_vm3 = vcmp.ne.s16.totalorder %v1133_v44, 0  ;;  %v1138_v47 = vsel %vm1134_vm15, 65537, %v4865_v20  ;;  %v1139_v37 = vsel %vm1135_vm0, 65537, %v4865_v20 }
0x1928   : > { %v1140_v16 = vsel %vm1136_vm2, 65537, %v4865_v20  ;;  %v1141_v32 = vsel %vm1137_vm3, 65537, %v4865_v20  ;;  %v1142_v41 = vunpack.c.l.b16 %v1138_v47  ;;  %v1143_v54 = vunpack.c.l.b16 %v1139_v37  ;;  %v1505_v42 = vpop.xlane.xlu1 %1504 }
0x1929   : > { %v1145_v43 = vunpack.c.l.b16 %v1141_v32  ;;  %v1512_v18 = vpack.c.bf16 %v1505_v42, %v1502_v60  ;;  %v1144_v26 = vunpack.c.l.b16 %v1140_v16  ;;  %v743_v48 = vsel %vm739_vm1, 1, %v4865_v20 }
0x192a   : > { %751 = vperm.xlu1 %4613, %v742_v19   ;;  %vm1146_vm7 = vcmp.ne.s32.totalorder %v1142_v41, 0  ;;  %v1919_v40 = vpop.xlane.xlu0 %1918  ;;  %vm1147_vm9 = vcmp.ne.s32.totalorder %v1143_v54, 0  ;;  %v333_v42 = vrot.slane %v5080_v7, 4 }
0x192b   : > { %vm1514_vm8 = vcmp.gt.bf16.partialorder %v1512_v18, 0  ;;  %v1150_v23 = vsel %vm1146_vm7, 1, %v4865_v20  ;;  %vm1149_vm10 = vcmp.ne.s32.totalorder %v1145_v43, 0  ;;  %v1151_v12 = vsel %vm1147_vm9, 1, %v4865_v20 }
0x192c   : > { %v1516_v33 = vsel %vm1514_vm8, 65537, %v4865_v20  ;;  %v1511_v51 = vpop.xlane.xlu1 %1510  ;;  %1155 = vperm.xlu0 %4612, %v1150_v23   ;;  %v1153_v29 = vsel %vm1149_vm10, 1, %v4865_v20  ;;  %vm1148_vm0 = vcmp.ne.s32.totalorder %v1144_v26, 0 }
0x192d   : > { %v1524_v17 = vrot.slane %v1516_v33, %v5663_v39  ;;  %v1531_v63 = vrot.slane %v1516_v33, %v5666_v57  ;;  %v1513_v11 = vpack.c.bf16 %v1511_v51, %v1508_v36  ;;  %v1152_v58 = vsel %vm1148_vm0, 1, %v4865_v20 }
0x192e   : > { %754 = vperm.xlu1 %4613, %v743_v48   ;;  %v2324_v13 = vpop.xlane.xlu0 %2323 }
0x192f   : > { %vm1546_vm13 = vcmp.ne.s16.totalorder %v1524_v17, 0  ;;  %vm1547_vm14 = vcmp.ne.s16.totalorder %v1531_v63, 0  ;;  %vm1515_vm15 = vcmp.gt.bf16.partialorder %v1513_v11, 0 }
0x1930   : > { %v1550_v14 = vsel %vm1546_vm13, 65537, %v4865_v20  ;;  %v1551_v24 = vsel %vm1547_vm14, 65537, %v4865_v20  ;;  %v1517_v22 = vsel %vm1515_vm15, 65537, %v4865_v20  ;;  %v1916_v25 = vpop.xlane.xlu1 %1915  ;;  %1164 = vperm.xlu0 %4612, %v1153_v29  }
0x1931   : > { %v1554_v1 = vunpack.c.l.b16 %v1550_v14  ;;  %v1555_v49 = vunpack.c.l.b16 %v1551_v24  ;;  %v1538_v52 = vrot.slane %v1517_v22, %v5663_v39  ;;  %v1545_v55 = vrot.slane %v1517_v22, %v5666_v57 }
0x1932   : > { %1158 = vperm.xlu1 %4613, %v1151_v12   ;;  %v1923_v50 = vpack.c.bf16 %v1916_v25, %v1913_v27  ;;  %v2330_v53 = vpop.xlane.xlu0 %2329 }
0x1933   : > { %vm1548_vm1 = vcmp.ne.s16.totalorder %v1538_v52, 0  ;;  %vm1549_vm2 = vcmp.ne.s16.totalorder %v1545_v55, 0  ;;  %vm1559_vm3 = vcmp.ne.s32.totalorder %v1555_v49, 0  ;;  %vm5704_vm7 = vcmp.ne.s32.totalorder %v1554_v1, 0 }
0x1934   : > { %v1552_v15 = vsel %vm1548_vm1, 65537, %v4865_v20  ;;  %v1553_v6 = vsel %vm1549_vm2, 65537, %v4865_v20  ;;  %vm1925_vm8 = vcmp.gt.bf16.partialorder %v1923_v50, 0  ;;  %v1922_v59 = vpop.xlane.xlu1 %1921  ;;  %v1563_v34 = vsel %vm1559_vm3, 1, %v4865_v20 }
0x1935   : > { %v1556_v9 = vunpack.c.l.b16 %v1552_v15  ;;  %v1557_v36 = vunpack.c.l.b16 %v1553_v6  ;;  %v1927_v21 = vsel %vm1925_vm8, 65537, %v4865_v20  ;;  %v1924_v61 = vpack.c.bf16 %v1922_v59, %v1919_v40  ;;  %1570 = vperm.xlu0 %4612, %v1563_v34  }
0x1936   : > { %v1935_v56 = vrot.slane %v1927_v21, %v5663_v39  ;;  %v1942_v31 = vrot.slane %v1927_v21, %v5666_v57  ;;  %1161 = vperm.xlu1 %4613, %v1152_v58   ;;  %v5714_v38 = vpop.xlane.xlu0 %2734  ;;  %v1562_v28 = vsel %vm5704_vm7, 1, %v4865_v20 }
0x1937   : > { %vm1926_vm9 = vcmp.gt.bf16.partialorder %v1924_v61, 0  ;;  %vm1561_vm10 = vcmp.ne.s32.totalorder %v1557_v36, 0  ;;  %vm5719_vm13 = vcmp.ne.s32.totalorder %v1556_v9, 0 }
0x1938   : > { %vm1957_vm14 = vcmp.ne.s16.totalorder %v1935_v56, 0  ;;  %vm1958_vm15 = vcmp.ne.s16.totalorder %v1942_v31, 0  ;;  %v1928_v35 = vsel %vm1926_vm9, 65537, %v4865_v20  ;;  %v2327_v44 = vpop.xlane.xlu1 %2326  ;;  %v1565_v30 = vsel %vm1561_vm10, 1, %v4865_v20 }
0x1939   : > { %v1961_v19 = vsel %vm1957_vm14, 65537, %v4865_v20  ;;  %v1962_v27 = vsel %vm1958_vm15, 65537, %v4865_v20  ;;  %v1949_v47 = vrot.slane %v1928_v35, %v5663_v39  ;;  %v1956_v37 = vrot.slane %v1928_v35, %v5666_v57  ;;  %1576 = vperm.xlu0 %4612, %v1565_v30  }
0x193a   : > { %v1965_v16 = vunpack.c.l.b16 %v1961_v19  ;;  %v1966_v32 = vunpack.c.l.b16 %v1962_v27  ;;  %1567 = vperm.xlu1 %4613, %v1562_v28   ;;  %v2334_v41 = vpack.c.bf16 %v2327_v44, %v2324_v13  ;;  %v2741_v54 = vpop.xlane.xlu0 %2740  ;;  %v1564_v43 = vsel %vm5719_vm13, 1, %v4865_v20 }
0x193b   : > { %vm1959_vm0 = vcmp.ne.s16.totalorder %v1949_v47, 0  ;;  %vm1960_vm1 = vcmp.ne.s16.totalorder %v1956_v37, 0 }
0x193c   : > { %v1963_v18 = vsel %vm1959_vm0, 65537, %v4865_v20  ;;  %v1964_v26 = vsel %vm1960_vm1, 65537, %v4865_v20  ;;  %vm2336_vm2 = vcmp.gt.bf16.partialorder %v2334_v41, 0  ;;  %v2333_v48 = vpop.xlane.xlu1 %2332  ;;  %vm1970_vm3 = vcmp.ne.s32.totalorder %v1966_v32, 0 }
0x193d   : > { %v1967_v40 = vunpack.c.l.b16 %v1963_v18  ;;  %v1968_v23 = vunpack.c.l.b16 %v1964_v26  ;;  %v2338_v33 = vsel %vm2336_vm2, 65537, %v4865_v20  ;;  %v2335_v51 = vpack.c.bf16 %v2333_v48, %v2330_v53 }
0x193e   : > { %v2346_v17 = vrot.slane %v2338_v33, %v5663_v39  ;;  %v2353_v63 = vrot.slane %v2338_v33, %v5666_v57  ;;  %1573 = vperm.xlu1 %4613, %v1564_v43   ;;  %v1974_v11 = vsel %vm1970_vm3, 1, %v4865_v20  ;;  %vm1969_vm7 = vcmp.ne.s32.totalorder %v1965_v16, 0  ;;  %v3146_v22 = vpop.xlane.xlu0 %3145 }
0x193f   : > { %vm2337_vm8 = vcmp.gt.bf16.partialorder %v2335_v51, 0  ;;  %1981 = vperm.xlu0 %4612, %v1974_v11   ;;  %v1973_v29 = vsel %vm1969_vm7, 1, %v4865_v20  ;;  %vm1972_vm9 = vcmp.ne.s32.totalorder %v1968_v23, 0  ;;  %vm5740_vm10 = vcmp.ne.s32.totalorder %v1967_v40, 0 }
0x1940   : > { %vm2368_vm13 = vcmp.ne.s16.totalorder %v2346_v17, 0  ;;  %vm2369_vm14 = vcmp.ne.s16.totalorder %v2353_v63, 0  ;;  %v2339_v13 = vsel %vm2337_vm8, 65537, %v4865_v20  ;;  %v2738_v14 = vpop.xlane.xlu1 %2737  ;;  %v1976_v24 = vsel %vm1972_vm9, 1, %v4865_v20 }
0x1941   : > { %v2372_v25 = vsel %vm2368_vm13, 65537, %v4865_v20  ;;  %v2373_v1 = vsel %vm2369_vm14, 65537, %v4865_v20  ;;  %v2360_v49 = vrot.slane %v2339_v13, %v5663_v39  ;;  %v2367_v52 = vrot.slane %v2339_v13, %v5666_v57 }
0x1942   : > { %v2376_v55 = vunpack.c.l.b16 %v2372_v25  ;;  %v2377_v50 = vunpack.c.l.b16 %v2373_v1  ;;  %1978 = vperm.xlu1 %4613, %v1973_v29   ;;  %v2745_v58 = vpack.c.bf16 %v2738_v14, %v5714_v38  ;;  %v5752_v53 = vadd.f32 %v333_v42, %v5080_v7  ;;  %v3152_v31 = vpop.xlane.xlu0 %3151 }
0x1943   : > { %vm2370_vm15 = vcmp.ne.s16.totalorder %v2360_v49, 0  ;;  %vm2371_vm0 = vcmp.ne.s16.totalorder %v2367_v52, 0  ;;  %1987 = vperm.xlu0 %4612, %v1976_v24   ;;  %v1975_v8 = vsel %vm5740_vm10, 1, %v4865_v20 }
0x1944   : > { %v2374_v15 = vsel %vm2370_vm15, 65537, %v4865_v20  ;;  %v2375_v6 = vsel %vm2371_vm0, 65537, %v4865_v20  ;;  %vm2747_vm1 = vcmp.gt.bf16.partialorder %v2745_v58, 0  ;;  %v2744_v59 = vpop.xlane.xlu1 %2743  ;;  %vm2381_vm2 = vcmp.ne.s32.totalorder %v2377_v50, 0 }
0x1945   : > { %v2378_v34 = vunpack.c.l.b16 %v2374_v15  ;;  %v2379_v9 = vunpack.c.l.b16 %v2375_v6  ;;  %v2749_v36 = vsel %vm2747_vm1, 65537, %v4865_v20  ;;  %v2746_v7 = vpack.c.bf16 %v2744_v59, %v2741_v54 }
0x1946   : > { %v2757_v21 = vrot.slane %v2749_v36, %v5663_v39  ;;  %v2764_v61 = vrot.slane %v2749_v36, %v5666_v57  ;;  %1984 = vperm.xlu1 %4613, %v1975_v8   ;;  %v2385_v56 = vsel %vm2381_vm2, 1, %v4865_v20  ;;  %vm2380_vm3 = vcmp.ne.s32.totalorder %v2376_v55, 0  ;;  %v3557_v26 = vpop.xlane.xlu0 %3556 }
0x1947   : > { %vm2748_vm7 = vcmp.gt.bf16.partialorder %v2746_v7, 0  ;;  %2392 = vperm.xlu0 %4612, %v2385_v56   ;;  %v2384_v38 = vsel %vm2380_vm3, 1, %v4865_v20  ;;  %vm2383_vm8 = vcmp.ne.s32.totalorder %v2379_v9, 0  ;;  %vm5764_vm9 = vcmp.ne.s32.totalorder %v2378_v34, 0 }
0x1948   : > { %vm2779_vm10 = vcmp.ne.s16.totalorder %v2757_v21, 0  ;;  %vm2780_vm13 = vcmp.ne.s16.totalorder %v2764_v61, 0  ;;  %v2750_v60 = vsel %vm2748_vm7, 65537, %v4865_v20  ;;  %v3149_v35 = vpop.xlane.xlu1 %3148  ;;  %v2387_v44 = vsel %vm2383_vm8, 1, %v4865_v20 }
0x1949   : > { %v2783_v30 = vsel %vm2779_vm10, 65537, %v4865_v20  ;;  %v2784_v19 = vsel %vm2780_vm13, 65537, %v4865_v20  ;;  %v2771_v27 = vrot.slane %v2750_v60, %v5663_v39  ;;  %v2778_v47 = vrot.slane %v2750_v60, %v5666_v57 }
0x194a   : > { %v2787_v37 = vunpack.c.l.b16 %v2783_v30  ;;  %v2788_v16 = vunpack.c.l.b16 %v2784_v19  ;;  %2389 = vperm.xlu1 %4613, %v2384_v38   ;;  %v3156_v32 = vpack.c.bf16 %v3149_v35, %v3146_v22  ;;  %v335_v41 = vrot.slane %v5752_v53, 2  ;;  %v3563_v50 = vpop.xlane.xlu0 %3562 }
0x194b   : > { %vm2781_vm14 = vcmp.ne.s16.totalorder %v2771_v27, 0  ;;  %vm2782_vm15 = vcmp.ne.s16.totalorder %v2778_v47, 0  ;;  %2398 = vperm.xlu0 %4612, %v2387_v44   ;;  %v2386_v54 = vsel %vm5764_vm9, 1, %v4865_v20 }
0x194c   : > { %v2785_v42 = vsel %vm2781_vm14, 65537, %v4865_v20  ;;  %v2786_v43 = vsel %vm2782_vm15, 65537, %v4865_v20  ;;  %vm3158_vm0 = vcmp.gt.bf16.partialorder %v3156_v32, 0  ;;  %v3155_v18 = vpop.xlane.xlu1 %3154  ;;  %vm2792_vm1 = vcmp.ne.s32.totalorder %v2788_v16, 0 }
0x194d   : > { %v2789_v48 = vunpack.c.l.b16 %v2785_v42  ;;  %v2790_v40 = vunpack.c.l.b16 %v2786_v43  ;;  %v3160_v23 = vsel %vm3158_vm0, 65537, %v4865_v20  ;;  %v3157_v33 = vpack.c.bf16 %v3155_v18, %v3152_v31 }
0x194e   : > { %v3168_v51 = vrot.slane %v3160_v23, %v5663_v39  ;;  %v3175_v17 = vrot.slane %v3160_v23, %v5666_v57  ;;  %2395 = vperm.xlu1 %4613, %v2386_v54   ;;  %v2796_v63 = vsel %vm2792_vm1, 1, %v4865_v20  ;;  %vm2791_vm2 = vcmp.ne.s32.totalorder %v2787_v37, 0 }
0x194f   : > { %vm3159_vm3 = vcmp.gt.bf16.partialorder %v3157_v33, 0  ;;  %2803 = vperm.xlu0 %4612, %v2796_v63   ;;  %v2795_v11 = vsel %vm2791_vm2, 1, %v4865_v20  ;;  %vm2794_vm7 = vcmp.ne.s32.totalorder %v2790_v40, 0  ;;  %vm5785_vm8 = vcmp.ne.s32.totalorder %v2789_v48, 0 }
0x1950   : > { %vm3190_vm9 = vcmp.ne.s16.totalorder %v3168_v51, 0  ;;  %vm3191_vm10 = vcmp.ne.s16.totalorder %v3175_v17, 0  ;;  %v3161_v12 = vsel %vm3159_vm3, 65537, %v4865_v20  ;;  %v3560_v13 = vpop.xlane.xlu1 %3559  ;;  %v2798_v14 = vsel %vm2794_vm7, 1, %v4865_v20 }
0x1951   : > { %v3194_v24 = vsel %vm3190_vm9, 65537, %v4865_v20  ;;  %v3195_v22 = vsel %vm3191_vm10, 65537, %v4865_v20  ;;  %v3182_v25 = vrot.slane %v3161_v12, %v5663_v39  ;;  %v3189_v1 = vrot.slane %v3161_v12, %v5666_v57 }
0x1952   : > { %v3198_v49 = vunpack.c.l.b16 %v3194_v24  ;;  %v3199_v52 = vunpack.c.l.b16 %v3195_v22  ;;  %2800 = vperm.xlu1 %4613, %v2795_v11   ;;  %v3567_v55 = vpack.c.bf16 %v3560_v13, %v3557_v26  ;;  %v336_v58 = vadd.f32 %v335_v41, %v5752_v53  ;;  %v6130_v11 = vld [vmem:[#allocation5_spill] sm:$0xff] }
0x1953   : > { %vm3192_vm13 = vcmp.ne.s16.totalorder %v3182_v25, 0  ;;  %vm3193_vm14 = vcmp.ne.s16.totalorder %v3189_v1, 0  ;;  %2809 = vperm.xlu0 %4612, %v2798_v14   ;;  %v2797_v8 = vsel %vm5785_vm8, 1, %v4865_v20 }
0x1954   : > { %v3196_v15 = vsel %vm3192_vm13, 65537, %v4865_v20  ;;  %v3197_v6 = vsel %vm3193_vm14, 65537, %v4865_v20  ;;  %vm3569_vm15 = vcmp.gt.bf16.partialorder %v3567_v55, 0  ;;  %v3566_v59 = vpop.xlane.xlu1 %3565  ;;  %vm3203_vm0 = vcmp.ne.s32.totalorder %v3199_v52, 0 }
0x1955   : > { %v3200_v34 = vunpack.c.l.b16 %v3196_v15  ;;  %v3201_v9 = vunpack.c.l.b16 %v3197_v6  ;;  %v3571_v36 = vsel %vm3569_vm15, 65537, %v4865_v20  ;;  %v3568_v7 = vpack.c.bf16 %v3566_v59, %v3563_v50 }
0x1956   : > { %v3579_v53 = vrot.slane %v3571_v36, %v5663_v39  ;;  %v3586_v21 = vrot.slane %v3571_v36, %v5666_v57  ;;  %2806 = vperm.xlu1 %4613, %v2797_v8   ;;  %v3207_v61 = vsel %vm3203_vm0, 1, %v4865_v20  ;;  %vm3202_vm1 = vcmp.ne.s32.totalorder %v3198_v49, 0 }
0x1957   : > { %vm3570_vm2 = vcmp.gt.bf16.partialorder %v3568_v7, 0  ;;  %3214 = vperm.xlu0 %4612, %v3207_v61   ;;  %v3206_v56 = vsel %vm3202_vm1, 1, %v4865_v20  ;;  %vm3205_vm3 = vcmp.ne.s32.totalorder %v3201_v9, 0  ;;  %vm5806_vm7 = vcmp.ne.s32.totalorder %v3200_v34, 0 }
0x1958   : > { %vm3601_vm8 = vcmp.ne.s16.totalorder %v3579_v53, 0  ;;  %vm3602_vm9 = vcmp.ne.s16.totalorder %v3586_v21, 0  ;;  %v3572_v38 = vsel %vm3570_vm2, 65537, %v4865_v20  ;;  %v3209_v28 = vsel %vm3205_vm3, 1, %v4865_v20 }
0x1959   : > { %v3605_v60 = vsel %vm3601_vm8, 65537, %v4865_v20  ;;  %v3606_v35 = vsel %vm3602_vm9, 65537, %v4865_v20  ;;  %v3593_v44 = vrot.slane %v3572_v38, %v5663_v39  ;;  %v3600_v30 = vrot.slane %v3572_v38, %v5666_v57 }
0x195a   : > { %v3609_v19 = vunpack.c.l.b16 %v3605_v60  ;;  %v3610_v27 = vunpack.c.l.b16 %v3606_v35  ;;  %3211 = vperm.xlu1 %4613, %v3206_v56   ;;  %v337_v47 = vrot.slane %v336_v58, 1  ;;  %v3208_v37 = vsel %vm5806_vm7, 1, %v4865_v20 }
0x195b   : > { %vm3603_vm10 = vcmp.ne.s16.totalorder %v3593_v44, 0  ;;  %vm3604_vm13 = vcmp.ne.s16.totalorder %v3600_v30, 0  ;;  %3220 = vperm.xlu0 %4612, %v3209_v28  }
0x195c   : > { %v3607_v16 = vsel %vm3603_vm10, 65537, %v4865_v20  ;;  %v3608_v32 = vsel %vm3604_vm13, 65537, %v4865_v20  ;;  %vm3614_vm14 = vcmp.ne.s32.totalorder %v3610_v27, 0  ;;  %vm3613_vm15 = vcmp.ne.s32.totalorder %v3609_v19, 0  ;;  %v6131_v19 = vld [vmem:[#allocation10_spill] sm:$0xff] }
0x195d   : > { %v3611_v39 = vunpack.c.l.b16 %v3607_v16  ;;  %v3612_v41 = vunpack.c.l.b16 %v3608_v32  ;;  %v3618_v57 = vsel %vm3614_vm14, 1, %v4865_v20  ;;  %v338_v54 = vadd.f32 %v337_v47, %v336_v58  ;;  %v6132_v47 = vld [vmem:[#allocation12_spill] sm:$0xff]  ;;  %v6133_v16 = vld [vmem:[#allocation11_spill] sm:$0xff] }
0x195e   : > { %3217 = vperm.xlu1 %4613, %v3208_v37   ;;  %v3617_v42 = vsel %vm3613_vm15, 1, %v4865_v20 }
0x195f   : > { %3625 = vperm.xlu0 %4612, %v3618_v57   ;;  %vm3616_vm0 = vcmp.ne.s32.totalorder %v3612_v41, 0  ;;  %vm3615_vm1 = vcmp.ne.s32.totalorder %v3611_v39, 0  ;;  %v340_v18 = vmul.f32 0.03125, %v338_v54  ;;  %v6134_v39 = vld [vmem:[#allocation13_spill] sm:$0xff] }
0x1960   : > { %v3620_v43 = vsel %vm3616_vm0, 1, %v4865_v20  ;;  %v3619_v26 = vsel %vm3615_vm1, 1, %v4865_v20 }
0x1962   : > { %3622 = vperm.xlu1 %4613, %v3617_v42  }
0x1963   : > { %3631 = vperm.xlu0 %4612, %v3620_v43   ;;  %v6135_v43 = vld [vmem:[#allocation7_spill] sm:$0xff] }
0x1966   : > { %3628 = vperm.xlu1 %4613, %v3619_v26   ;;  %v6136_v26 = vld [vmem:[#allocation9_spill] sm:$0xff] }
0x1967   : > { %1582 = vrot.lane.b32.xlu0 %v340_v18, %s4859_s9 }
0x196a   : > { %1171 = vrot.lane.b32.xlu1 %v340_v18, %s4858_s26  ;;  %s4872_s26 = smov 40  }
0x196b   : > { %2404 = vrot.lane.b32.xlu0 %v340_v18, %s4861_s13 }
0x196e   : > { %1993 = vrot.lane.b32.xlu1 %v340_v18, %s4860_s12  ;;  %s6036_s12 = scalar_lea.hbm %s6088_s6, %s4127_s10 }
0x196f   : > { %3226 = vrot.lane.b32.xlu0 %v340_v18, %s4863_s14 }
0x1972   : > { %2815 = vrot.lane.b32.xlu1 %v340_v18, %s4862_s15  ;;  %s4875_s15 = smov [#allocation2]  }
0x1973   : > { %s4797_s14 = sshll.u32 %s4875_s15, 4  ;;  %s4798_s14 = int_to_ptr.vmem [resolvable:$false] %s4797_s14 }
0x1976   : > { %3637 = vrot.lane.b32.xlu1 %v340_v18, %s4864_s16  ;;  %s4874_s16 = smov 56  }
0x19a2   : > { %v749_v48 = vpop.permute.xlu0 %748 }
0x19a3   : > { %vm757_vm2 = vcmp.eq.s32.totalorder %v749_v48, 1 }
0x19a4   : > { %v5833_v40 = vsel %vm757_vm2, %v5133_v2, %v340_v18 }
0x19a5   : > { %v746_v20 = vpop.permute.xlu1 %745 }
0x19a6   : > { %vm756_vm3 = vcmp.eq.s32.totalorder %v746_v20, 1  ;;  %v6137_v20 = vld [vmem:[#allocation6_spill] sm:$0xff] }
0x19a7   : > { %v5836_v23 = vsel %vm756_vm3, %v5129_v0, %v340_v18 }
0x19a9   : > { %v752_v33 = vpop.permute.xlu1 %751 }
0x19aa   : > { %vm758_vm7 = vcmp.eq.s32.totalorder %v752_v33, 1 }
0x19ab   : > { %v5839_v51 = vsel %vm758_vm7, %v5127_v62, %v340_v18  ;;  %v5841_v17 = vpop.permute.xlu0 %1155 }
0x19ad   : > { %v755_v63 = vpop.permute.xlu1 %754 }
0x19ae   : > { %vm759_vm8 = vcmp.eq.s32.totalorder %v755_v63, 1  ;;  %v6138_v63 = vld [vmem:[#allocation8_spill] sm:$0xff] }
0x19af   : > { %v5844_v29 = vsel %vm759_vm8, %v6130_v11, %v340_v18  ;;  %v5846_v12 = vpop.permute.xlu0 %1164 }
0x19b0   : > { %vm1169_vm9 = vcmp.eq.s32.totalorder %v5846_v12, 1 }
0x19b1   : > { %v5848_v2 = vpop.permute.xlu1 %1158 }
0x19b2   : > { %vm1167_vm0 = vcmp.eq.s32.totalorder %v5848_v2, 1 }
0x19b4   : > { %v1571_v13 = vpop.permute.xlu0 %1570 }
0x19b5   : > { %v5850_v14 = vpop.permute.xlu1 %1161  ;;  %vm1579_vm10 = vcmp.eq.s32.totalorder %v1571_v13, 1 }
0x19b6   : > { %vm1168_vm1 = vcmp.eq.s32.totalorder %v5850_v14, 1 }
0x19b8   : > { %v1577_v0 = vpop.permute.xlu0 %1576 }
0x19b9   : > { %v1568_v24 = vpop.permute.xlu1 %1567  ;;  %vm1581_vm14 = vcmp.eq.s32.totalorder %v1577_v0, 1 }
0x19ba   : > { %vm1578_vm13 = vcmp.eq.s32.totalorder %v1568_v24, 1 }
0x19bd   : > { %v1574_v22 = vpop.permute.xlu1 %1573 }
0x19be   : > { %v5852_v25 = vpop.permute.xlu0 %1981  ;;  %vm1580_vm15 = vcmp.eq.s32.totalorder %v1574_v22, 1  ;;  %v6139_v22 = vld [vmem:[#allocation18_spill] sm:$0xff] }
0x19c1   : > { %v5854_v62 = vpop.permute.xlu1 %1978 }
0x19c2   : > { %v5856_v1 = vpop.permute.xlu0 %1987 }
0x19c5   : > { %v5858_v49 = vpop.permute.xlu1 %1984  ;;  %v4508_v52 = vpop.f32.mrb[60].mxu1 }
0x19c6   : > { %v5860_v55 = vpop.permute.xlu0 %2392  ;;  %v3477_v50 = vpop.f32.mrb[61].mxu1  ;;  %v3492_v34 = vpack.c.bf16 %v4508_v52, %v4508_v52 }
0x19c7   : > { %v4509_v58 = vpop.f32.mrb[62].mxu1  ;;  %vm2401_vm6 = vcmp.eq.s32.totalorder %v5860_v55, 1 }
0x19c8   : > { %v3480_v8 = vpop.f32.mrb[63].mxu1  ;;  %v3500_v7 = vsel %vm621_vm12, %v3492_v34, 0  ;;  %v6141_v58 = vld [vmem:[#allocation19_spill] sm:$0xff] }
0x19c9   : > { %v5862_v15 = vpop.permute.xlu1 %2389  ;;  %v3491_v6 = vpack.c.bf16 %v3480_v8, %v3477_v50  ;;  %v6140_v50 = vld [vmem:[#allocation20_spill] sm:$0xff]  ;;  %v6142_v8 = vld [vmem:[#allocation21_spill] sm:$0xff] }
0x19ca   : > { %v2399_v59 = vpop.permute.xlu0 %2398  ;;  %vm2400_vm5 = vcmp.eq.s32.totalorder %v5862_v15, 1 }
0x19cb   : > { %4510 = vmatprep.subr.bf16.mxu1 %v3491_v6 }
0x19cc   : > { %4511 = vmatpush3.bf16.msra.mxu1 %v3491_v6 }
0x19cd   : > { %v2396_v9 = vpop.permute.xlu1 %2395  ;;  %4553 = vmatprep.subr.msk.bf16.mxu1 %vm621_vm12, %v3492_v34  ;;  %vm1166_vm12 = vcmp.eq.s32.totalorder %v5841_v17, 1  ;;  %v6143_v34 = vld [vmem:[#allocation15_spill] sm:$0xff] }
0x19ce   : > { %v5865_v36 = vpop.permute.xlu0 %2803  ;;  %vm2402_vm4 = vcmp.eq.s32.totalorder %v2396_v9, 1  ;;  %v6145_v9 = vld [vmem:[#allocation17_spill] sm:$0xff] }
0x19cf   : > { %vm2812_vm7 = vcmp.eq.s32.totalorder %v5865_v36, 1  ;;  %v4689_v36 = vld [vmem:[%s6086_s4 + $0x8] sm:$0xff]  }
0x19d0   : > { %4513 = vmatpush3.bf16.msra.mxu1 %v3500_v7  ;;  %v6147_v7 = vld [vmem:[#allocation14_spill] sm:$0xff] }
0x19d1   : > { %v5868_v53 = vpop.permute.xlu1 %2800 }
0x19d2   : > { %v5870_v21 = vpop.permute.xlu0 %2809  ;;  %vm2811_vm8 = vcmp.eq.s32.totalorder %v5868_v53, 1  ;;  %v4690_v53 = vld [vmem:[%s6086_s4 + $0x10] sm:$0xff]  }
0x19d3   : > { %4515 = vmatmul.mubr.msk.bf16.vlgmr.msra.gmra.mrb[64].mxu1 %vm6093_vm11, %v5543_v3  ;;  %vm2403_vm11 = vcmp.eq.s32.totalorder %v2399_v59, 1  ;;  %vm2814_vm2 = vcmp.eq.s32.totalorder %v5870_v21, 1  ;;  %v4691_v21 = vld [vmem:[%s6086_s4 + $0x18] sm:$0xff]  }
0x19d5   : > { %v5874_v61 = vpop.permute.xlu1 %2806 }
0x19d6   : > { %v5876_v56 = vpop.permute.xlu0 %3214 }
0x19d9   : > { %v5878_v31 = vpop.permute.xlu1 %3211 }
0x19da   : > { %v5880_v38 = vpop.permute.xlu0 %3220 }
0x19db   : > { %vm3225_vm3 = vcmp.eq.s32.totalorder %v5880_v38, 1  ;;  %v6151_v38 = vld [vmem:[#allocation24_spill] sm:$0xff] }
0x19dd   : > { %v5882_v28 = vpop.permute.xlu1 %3217 }
0x19de   : > { %v5884_v60 = vpop.permute.xlu0 %3625 }
0x19e1   : > { %v5886_v35 = vpop.permute.xlu1 %3622 }
0x19e2   : > { %v5888_v44 = vpop.permute.xlu0 %3631 }
0x19e5   : > { %v5896_v3 = vpop.permute.xlu1 %3628 }
0x19e6   : > { %v1583_v30 = vpop.permute.xlu0 %1582 }
0x19e7   : > { %v1587_v27 = vsel %vm1580_vm15, %v6131_v19, %v1583_v30  ;;  %v1588_v37 = vsel %vm1581_vm14, %v6132_v47, %v1583_v30  ;;  %v1585_v32 = vsel %vm1578_vm13, %v6133_v16, %v1583_v30  ;;  %v1586_v41 = vsel %vm1579_vm10, %v6134_v39, %v1583_v30  ;;  %v6149_v19 = vld [vmem:[#allocation16_spill] sm:$0xff] }
0x19e8   : > { %v4629_v57 = vpack.i.bf16 %v1588_v37, %v1587_v27  ;;  %v4624_v54 = vpack.i.bf16 %v1586_v41, %v1585_v32  ;;  %vm3223_vm10 = vcmp.eq.s32.totalorder %v5876_v56, 1  ;;  %vm6150_vm13 = vcmp.eq.s32.totalorder %v5856_v1, 1 }
0x19e9   : > { %v1172_v42 = vpop.permute.xlu1 %1171  ;;  %vm3635_vm14 = vcmp.eq.s32.totalorder %v5896_v3, 1  ;;  %vm3633_vm15 = vcmp.eq.s32.totalorder %v5886_v35, 1 }
0x19ea   : > { %v1174_v18 = vsel %vm1166_vm12, %v6135_v43, %v1172_v42  ;;  %v1175_v48 = vsel %vm1167_vm0, %v6136_v26, %v1172_v42  ;;  %v1176_v33 = vsel %vm1168_vm1, %v6137_v20, %v1172_v42  ;;  %v1177_v11 = vsel %vm1169_vm9, %v6138_v63, %v1172_v42  ;;  %v2405_v13 = vpop.permute.xlu0 %2404 }
0x19eb   : > { %v4614_v0 = vpack.i.bf16 %v1175_v48, %v1174_v18  ;;  %v4619_v24 = vpack.i.bf16 %v1177_v11, %v1176_v33  ;;  %v2409_v52 = vsel %vm2402_vm4, %v6139_v22, %v2405_v13  ;;  %v2410_v17 = vsel %vm2403_vm11, %v6140_v50, %v2405_v13 }
0x19ec   : > { %vm3224_vm12 = vcmp.eq.s32.totalorder %v5882_v28, 1  ;;  %v4649_v2 = vpack.i.bf16 %v2410_v17, %v2409_v52  ;;  %v2407_v14 = vsel %vm2400_vm5, %v6141_v58, %v2405_v13  ;;  %v2408_v12 = vsel %vm2401_vm6, %v6142_v8, %v2405_v13  ;;  %v6152_v28 = vld [vmem:[#allocation22_spill] sm:$0xff] }
0x19ed   : > { %vm2813_vm9 = vcmp.eq.s32.totalorder %v5874_v61, 1  ;;  %vm3222_vm4 = vcmp.eq.s32.totalorder %v5878_v31, 1  ;;  %v4644_v6 = vpack.i.bf16 %v2408_v12, %v2407_v14  ;;  %v1994_v59 = vpop.permute.xlu1 %1993  ;;  %4615 = vrot.lane.b32.xlu0 %v4614_v0, %s4868_s17  ;;  %4620 = vrot.lane.b32.xlu1 %v4619_v24, %s4868_s17  ;;  %vm6144_vm5 = vcmp.eq.s32.totalorder %v5854_v62, 1  ;;  %v6153_v31 = vld [vmem:[#allocation23_spill] sm:$0xff] }
0x19ee   : > { %v1996_v15 = vsel %vm6144_vm5, %v6143_v34, %v1994_v59  ;;  %vm6146_vm6 = vcmp.eq.s32.totalorder %v5852_v25, 1  ;;  %vm6148_vm11 = vcmp.eq.s32.totalorder %v5858_v49, 1  ;;  %v1999_v27 = vsel %vm6150_vm13, %v6149_v19, %v1994_v59  ;;  %v3227_v47 = vpop.permute.xlu0 %3226 }
0x19ef   : > { %v1997_v55 = vsel %vm6146_vm6, %v6145_v9, %v1994_v59  ;;  %v1998_v30 = vsel %vm6148_vm11, %v6147_v7, %v1994_v59  ;;  %v3231_v62 = vsel %vm3224_vm12, %v5562_v45, %v3227_v47  ;;  %v3232_v25 = vsel %vm3225_vm3, %v5566_v10, %v3227_v47 }
0x19f0   : > { %v4634_v37 = vpack.i.bf16 %v1997_v55, %v1996_v15  ;;  %v4639_v16 = vpack.i.bf16 %v1999_v27, %v1998_v30  ;;  %v4669_v32 = vpack.i.bf16 %v3232_v25, %v3231_v62  ;;  %v3229_v49 = vsel %vm3222_vm4, %v5564_v4, %v3227_v47 }
0x19f1   : > { %v3230_v1 = vsel %vm3223_vm10, %v5568_v5, %v3227_v47  ;;  %v2816_v41 = vpop.permute.xlu1 %2815  ;;  %4630 = vrot.lane.b32.xlu1 %v4629_v57, %s4869_s18  ;;  %4625 = vrot.lane.b32.xlu0 %v4624_v54, %s4869_s18  ;;  %vm3636_vm0 = vcmp.eq.s32.totalorder %v5888_v44, 1  ;;  %vm3634_vm1 = vcmp.eq.s32.totalorder %v5884_v60, 1  ;;  %vm3773_vm3 = vcmask 326656   ;;  %s285_s18 = sand.u32 1, %s4847_s22  }
0x19f2   : > { %v4664_v39 = vpack.i.bf16 %v3230_v1, %v3229_v49  ;;  %v2818_v45 = vsel %vm2811_vm8, %v5494_v46, %v2816_v41  ;;  %v2819_v10 = vsel %vm2812_vm7, %v6151_v38, %v2816_v41  ;;  %v2820_v4 = vsel %vm2813_vm9, %v6152_v28, %v2816_v41  ;;  %v4688_v46 = vld [vmem:[%s6086_s4] sm:$0xff]   ;;  %s6040_s25 = scalar_lea.sflag [#allocation3], %s285_s18 }
0x19f3   : > { %v2821_v5 = vsel %vm2814_vm2, %v6153_v31, %v2816_v41  ;;  %v4654_v56 = vpack.i.bf16 %v2819_v10, %v2818_v45  ;;  %4518 = vmatprep.subr.bf16.mxu0 %v4688_v46  ;;  %vm3760_vm2 = vcmask 130048   ;;  %vm6154_vm7 = vcmask 64512  }
0x19f4   : > { %v4659_v42 = vpack.i.bf16 %v2821_v5, %v2820_v4  ;;  %4519 = vmatpush3.bf16.msra.mxu0 %v4688_v46  ;;  %vm6155_vm8 = vmmov %vm6154_vm7  ;;  %vm3778_vm12 = vcmask 392192   ;;  %vm3783_vm9 = vcmask 457728   ;;  %vm6158_vm5 = vcmask 195584  }
0x19f5   : > { %4640 = vrot.lane.b32.xlu1 %v4639_v16, %s4870_s19  ;;  %4635 = vrot.lane.b32.xlu0 %v4634_v37, %s4870_s19  ;;  %v3638_v61 = vpop.permute.xlu1 %3637  ;;  %vm6156_vm10 = vmmov %vm6154_vm7  ;;  %s4004_s19 = sshll.u32 %s285_s18, 5 }
0x19f6   : > { %4520 = vmatprep.subr.bf16.mxu0 %v4689_v36  ;;  %vm6157_vm4 = vmmov %vm6154_vm7 }
0x19f7   : > { %vm6159_vm6 = vmmov %vm6158_vm5 }
0x19f8   : > { %4521 = vmatpush3.bf16.msra.mxu0 %v4689_v36  ;;  %vm6160_vm11 = vmmov %vm6158_vm5 }
0x19f9   : > { %4650 = vrot.lane.b32.xlu1 %v4649_v2, %s4871_s20  ;;  %4645 = vrot.lane.b32.xlu0 %v4644_v6, %s4871_s20  ;;  %vm6161_vm13 = vmmov %vm6158_vm5 }
0x19fa   : > { %4522 = vmatprep.subr.bf16.mxu0 %v4690_v53 }
0x19fc   : > { %4523 = vmatpush3.bf16.msra.mxu0 %v4690_v53 }
0x19fd   : > { %4660 = vrot.lane.b32.xlu1 %v4659_v42, %s4872_s26  ;;  %4655 = vrot.lane.b32.xlu0 %v4654_v56, %s4872_s26 }
0x19fe   : > { %4524 = vmatprep.subr.bf16.mxu0 %v4691_v21 }
0x1a00   : > { %4525 = vmatpush3.bf16.msra.mxu0 %v4691_v21 }
0x1a01   : > { %4670 = vrot.lane.b32.xlu1 %v4669_v32, %s4873_s28  ;;  %4665 = vrot.lane.b32.xlu0 %v4664_v39, %s4873_s28  ;;  %s287_s28 = scalar_lea.vmem [#allocation2], %s4004_s19 }
0x1a02   : > { %s3902_s29 = sshll.u32 %s287_s28, 4  ;;  %s6030_s29 = int_to_ptr.vmem [resolvable:$true] %s3902_s29 }
0x1a03   : > { %s4793_s13 = scalar_lea.vmem %s6030_s29, 512  ;;  %p4800_p0 = scmp.lt.s32.totalorder %s6030_s29, %s4798_s14 }
0x1a04   : > { %p4794_p11 = scmp.ne.s32.totalorder %s6030_s29, %s4793_s13 }
0x1a06   : > { %p4795_p12 = pnand %p4794_p11, %p4950_p5 }
0x1a08   : > { %p4796_p13 = pneg %p4795_p12 }
0x1a5f   : > { %v4621_v3 = vpop.permute.xlu1 %4620  ;;  %v4616_v13 = vpop.permute.xlu0 %4615 }
0x1a60   : > { %v4623_v50 = vunpack.i.h.bf16 %v4621_v3  ;;  %v4622_v17 = vunpack.i.l.bf16 %v4621_v3  ;;  %v4618_v2 = vunpack.i.h.bf16 %v4616_v13  ;;  %v4617_v60 = vunpack.i.l.bf16 %v4616_v13 }
0x1a62   : > { %v3759_v34 = vsel %vm6154_vm7, %v5844_v29, %v4623_v50  ;;  %v3758_v15 = vsel %vm6155_vm8, %v5839_v51, %v4622_v17  ;;  %v3757_v9 = vsel %vm6156_vm10, %v5833_v40, %v4618_v2  ;;  %v3756_v55 = vsel %vm6157_vm4, %v5836_v23, %v4617_v60  ;;  %v4112_v50 = vld [vmem:[%s6087_s5] ss:$0 sm:$0xff] }
0x1a63   : > { %v4631_v0 = vpop.permute.xlu1 %4630  ;;  %v4626_v35 = vpop.permute.xlu0 %4625 }
0x1a64   : > { %v4633_v14 = vunpack.i.h.bf16 %v4631_v0  ;;  %v4632_v8 = vunpack.i.l.bf16 %v4631_v0  ;;  %v4628_v6 = vunpack.i.h.bf16 %v4626_v35  ;;  %v4627_v59 = vunpack.i.l.bf16 %v4626_v35 }
0x1a66   : > { %v3764_v19 = vsel %vm3760_vm2, %v3759_v34, %v4633_v14  ;;  %v3763_v27 = vsel %vm3760_vm2, %v3758_v15, %v4632_v8  ;;  %v3761_v29 = vsel %vm3760_vm2, %v3756_v55, %v4627_v59  ;;  %v3762_v51 = vsel %vm3760_vm2, %v3757_v9, %v4628_v6 }
0x1a67   : > { %v4641_v24 = vpop.permute.xlu1 %4640  ;;  %v4636_v22 = vpop.permute.xlu0 %4635  ;;  %vm6166_vm2 = vcmask 523264  }
0x1a68   : > { %v4643_v7 = vunpack.i.h.bf16 %v4641_v24  ;;  %v4642_v30 = vunpack.i.l.bf16 %v4641_v24  ;;  %v4638_v47 = vunpack.i.h.bf16 %v4636_v22  ;;  %v4637_v37 = vunpack.i.l.bf16 %v4636_v22  ;;  %vm6168_vm7 = vmmov %vm6166_vm2 }
0x1a69   : > { %vm6169_vm8 = vmmov %vm6166_vm2 }
0x1a6a   : > { %v3767_v39 = vsel %vm6158_vm5, %v3763_v27, %v4642_v30  ;;  %v3768_v41 = vsel %vm6159_vm6, %v3764_v19, %v4643_v7  ;;  %v3765_v10 = vsel %vm6160_vm11, %v3761_v29, %v4637_v37  ;;  %v3766_v28 = vsel %vm6161_vm13, %v3762_v51, %v4638_v47 }
0x1a6b   : > { %v4651_v52 = vpop.permute.xlu1 %4650  ;;  %v4646_v44 = vpop.permute.xlu0 %4645 }
0x1a6c   : > { %v4653_v16 = vunpack.i.h.bf16 %v4651_v52  ;;  %v4652_v62 = vunpack.i.l.bf16 %v4651_v52  ;;  %v4648_v32 = vunpack.i.h.bf16 %v4646_v44  ;;  %v4647_v40 = vunpack.i.l.bf16 %v4646_v44 }
0x1a6f   : > { %v4661_v58 = vpop.permute.xlu1 %4660  ;;  %v4656_v12 = vpop.permute.xlu0 %4655 }
0x1a70   : > { %v4663_v49 = vunpack.i.h.bf16 %v4661_v58  ;;  %v4662_v1 = vunpack.i.l.bf16 %v4661_v58  ;;  %v4658_v45 = vunpack.i.h.bf16 %v4656_v12  ;;  %v4657_v38 = vunpack.i.l.bf16 %v4656_v12 }
0x1a73   : > { %v4671_v25 = vpop.permute.xlu1 %4670  ;;  %v4666_v23 = vpop.permute.xlu0 %4665 }
0x1a74   : > { %v4673_v4 = vunpack.i.h.bf16 %v4671_v25  ;;  %v4672_v31 = vunpack.i.l.bf16 %v4671_v25  ;;  %v4668_v42 = vunpack.i.h.bf16 %v4666_v23  ;;  %v4667_v46 = vunpack.i.l.bf16 %v4666_v23 }
0x1aa6   : > { %v4516_v57 = vpop.f32.mrb[64].mxu1 }
0x1aa7   : > { %v3642_v54 = vsel %vm3635_vm14, %v4516_v57, %v3638_v61  ;;  %v3536_v43 = vpop.f32.mrb[65].mxu1  ;;  %vm6162_vm14 = vcmask 261120  }
0x1aa8   : > { %v3640_v18 = vsel %vm3633_vm15, %v3536_v43, %v3638_v61  ;;  %v4517_v26 = vpop.f32.mrb[66].mxu1  ;;  %v3772_v5 = vsel %vm6162_vm14, %v3768_v41, %v4653_v16  ;;  %vm6163_vm15 = vmmov %vm6162_vm14 }
0x1aa9   : > { %v3643_v48 = vsel %vm3636_vm0, %v4517_v26, %v3638_v61  ;;  %v3539_v20 = vpop.f32.mrb[67].mxu1  ;;  %v3771_v56 = vsel %vm6163_vm15, %v3767_v39, %v4652_v62  ;;  %vm6164_vm0 = vmmov %vm6162_vm14 }
0x1aaa   : > { %v4679_v33 = vpack.i.bf16 %v3643_v48, %v3642_v54  ;;  %v3641_v63 = vsel %vm3634_vm1, %v3539_v20, %v3638_v61  ;;  %v3769_v36 = vsel %vm6164_vm0, %v3765_v10, %v4647_v40  ;;  %vm6165_vm1 = vmmov %vm6164_vm0  ;;  %v3776_v21 = vsel %vm3773_vm3, %v3771_v56, %v4662_v1 }
0x1aab   : > { %v4674_v11 = vpack.i.bf16 %v3641_v63, %v3640_v18  ;;  %v3770_v53 = vsel %vm6165_vm1, %v3766_v28, %v4648_v32  ;;  %v3777_v61 = vsel %vm3773_vm3, %v3772_v5, %v4663_v49  ;;  %v3774_v54 = vsel %vm3773_vm3, %v3769_v36, %v4657_v38 }
0x1aac   : > { %4680 = vrot.lane.b32.xlu1 %v4679_v33, %s4874_s16  ;;  %v3775_v43 = vsel %vm3773_vm3, %v3770_v53, %v4658_v45  ;;  %v3782_v20 = vsel %vm3778_vm12, %v3777_v61, %v4673_v4  ;;  %v3781_v33 = vsel %vm3778_vm12, %v3776_v21, %v4672_v31  ;;  %v3779_v3 = vsel %vm3778_vm12, %v3774_v54, %v4667_v46  ;;  %vm6167_vm3 = vmmov %vm6166_vm2 }
0x1aad   : > { %4675 = vrot.lane.b32.xlu0 %v4674_v11, %s4874_s16  ;;  %v3780_v13 = vsel %vm3778_vm12, %v3775_v43, %v4668_v42  ;;  %vm6170_vm12 = vmmov %vm6166_vm2  ;;  %s4799_s16 = scalar_lea.vmem %s4798_s14, 1024 }
0x1aae   : > { %p4801_p1 = scmp.lt.s32.totalorder %s4799_s16, %s4793_s13 }
0x1ab0   : > { %p4802_p2 = por %p4801_p1, %p4800_p0 }
0x1ab2   : > { %p4803_p3 = pnand %p4802_p2, %p4796_p13 }
0x1b1e   : > { %v4681_v57 = vpop.permute.xlu1 %4680 }
0x1b1f   : > { %v4683_v18 = vunpack.i.h.bf16 %v4681_v57  ;;  %v4682_v26 = vunpack.i.l.bf16 %v4681_v57  ;;  %v4676_v48 = vpop.permute.xlu0 %4675 }
0x1b20   : > { %v4678_v63 = vunpack.i.h.bf16 %v4676_v48  ;;  %v4677_v11 = vunpack.i.l.bf16 %v4676_v48 }
0x1b21   : > { %v3786_v0 = vsel %vm3783_vm9, %v3781_v33, %v4682_v26  ;;  %v3787_v35 = vsel %vm3783_vm9, %v3782_v20, %v4683_v18 }
0x1b22   : > { %v3789_v24 = vpack.c.bf16 %v3787_v35, %v3786_v0  ;;  %v3784_v22 = vsel %vm3783_vm9, %v3779_v3, %v4677_v11  ;;  %v3785_v52 = vsel %vm3783_vm9, %v3780_v13, %v4678_v63  ;;  %vm6171_vm9 = vmmov %vm6166_vm2 }
0x1b23   : > { %v3788_v44 = vpack.c.bf16 %v3785_v52, %v3784_v22 }
0x1b25   : > { %4526 = vmatprep.mubr.msk.bf16.mxu0 %vm6166_vm2, %v3788_v44 }
0x1b26   : > { %4527 = vmatmul.mubr.msk.bf16.vlgmr.msra.gmra.mrb[60].mxu0 %vm6167_vm3, %v3789_v24 }
0x1bf9   : > { %v4528_v17 = vpop.f32.mrb[60].mxu0 }
0x1bfa   : > { %v3878_v2 = vadd.f32 %v4528_v17, %v4112_v50  ;;  %v3869_v60 = vpop.f32.mrb[61].mxu0 }
0x1bfb   : > { %v3870_v58 = vadd.f32 %v4112_v50, %v3869_v60  ;;  %v4529_v14 = vpop.f32.mrb[62].mxu0 }
0x1bfc   : > { %3886 = vst.msk [vmem:[%s287_s28 + $0x10] sm:$0xff] %vm6168_vm7, %v3878_v2  ;;  %v3881_v8 = vadd.f32 %v4529_v14, %v4112_v50  ;;  %v3872_v12 = vpop.f32.mrb[63].mxu0 }
0x1bfd   : > { %3884 = vst.msk [vmem:[%s287_s28] sm:$0xff] %vm6169_vm8, %v3870_v58  ;;  %v3873_v6 = vadd.f32 %v4112_v50, %v3872_v12 }
0x1bfe   : > { %3887 = vst.msk [vmem:[%s287_s28 + $0x18] sm:$0xff] %vm6170_vm12, %v3881_v8 }
0x1bff   : > { %3885 = vst.msk [vmem:[%s287_s28 + $0x8] sm:$0xff] %vm6171_vm9, %v3873_v6 }
0x1c00   : > { %4806 = shalt.err (!%p4803_p3)
}
0x1c01   : > { %s4807_s18 = scalar_lea.hbm %s6036_s12, 512  ;;  %s4811_s26 = scalar_lea.hbm %s6088_s6, 1024 }
0x1c02   : > { %p4808_p4 = scmp.ne.s32.totalorder %s6036_s12, %s4807_s18  ;;  %p4812_p9 = scmp.lt.u32.totalorder %s6036_s12, %s6088_s6 }
0x1c03   : > { %p4813_p10 = scmp.lt.u32.totalorder %s4811_s26, %s4807_s18  ;;  %p4815_p12 = scmp.lt.u32.totalorder %s4807_s18, %s6036_s12 }
0x1c04   : > { %p4809_p7 = pnand %p4808_p4, %p4950_p5 }
0x1c05   : > { %p4814_p11 = por %p4813_p10, %p4812_p9 }
0x1c06   : > { %p4810_p8 = pneg %p4809_p7 }
0x1c07   : > { %p4816_p13 = por %p4815_p12, %p4814_p11 }
0x1c09   : > { %p4817_p0 = pnand %p4816_p13, %p4810_p8 }
0x1c0b   : > { %4820 = shalt.err (!%p4817_p0)
}
0x1c0c   : > { %s4876_s11 = smov 128  }
0x1c0d   : > { %4554 = dma.vmem_to_hbm [thread:$0]  (%p4950_p5), %s6030_s29, 512, %s6036_s12, %s6040_s25, %s4876_s11, %s4876_s11, %s4868_s17  }
0x1c0e PF: > { %p4560_p1 = scmp.ge.s32.totalorder %s4855_s24, 2  ;;  %s3917_s9 = sand.u32 1, %s4843_s21  }
0x1c0f   : > { %s3918_s13 = scalar_lea.sflag [#allocation3], %s3917_s9 }
0x1c10   : > { %p4557_p2 = pnand %p4560_p1, %p4954_p6 }
0x1c12   : > { %4838 = dma.done.wait (!%p4557_p2), %s3918_s13, 512  }
0x1c13   : > { %4840 = vsyncadd (!%p4557_p2), %s3918_s13, 4294966784  ;;  %p16_p3 = scmp.ge.s32.totalorder %s4937_s27, 4   ;;  %s6172_s21 = smov %s4847_s22 }
0x1c14   : > { %s6173_s22 = smov %s4851_s23  ;;  %s6174_s23 = smov %s4948_s30 }
0x1c15   : > { %s6175_s24 = smov %s4937_s27  ;;  %18 = sbr.rel (!%p16_p3) target bundleno = 3 (0x3), region = 88 }
0x1c1c   :  { %3923 = vsyncpa [#allocation3], 1 }
0x1c1d   :  { %3925 = vsyncpa [#allocation3 + $0x1], 1 }

</bundles_post_ra>
